<compile_context>
chip_gen: v5e
topology: v5e:2x2
jax: 0.10.0
libtpu: 0.0.40
codegen_flags: <defaults>
</compile_context>

<pallas_src>
import functools
import math

import jax
import jax.numpy as jnp
from jax.experimental import pallas as pl
from jax.experimental.pallas import tpu as pltpu


def _default_vmem_limit():
    # v5e/v6e (128 MiB physical) -> 64 MiB scoped; v7x (64 MiB) -> 32 MiB.
    try:
        info = pltpu.get_tpu_info()
        cap = getattr(info, "vmem_capacity_bytes", None)
        if cap is None:
            cap = 64 * 1024 * 1024
    except Exception:  # pragma: no cover - conservative fallback
        cap = 64 * 1024 * 1024
    return int(min(cap // 2, 64 * 1024 * 1024))


_VMEM_LIMIT = _default_vmem_limit()


def _cparams(semantics):
    return pltpu.CompilerParams(dimension_semantics=semantics,
                                vmem_limit_bytes=_VMEM_LIMIT)


# ----------------------------------------------------------------------------
# Fused transformer layer kernel (projections + MHA + out-proj + LN [+FFN+LN])
# One grid step = one (stacked-layer, batch-element) pair.
# ----------------------------------------------------------------------------

def _txl_kernel(q_ref, v_ref, wkq_ref, bkq_ref, wv_ref, bv_ref,
                wout_ref, bout_ref, g1_ref, be1_ref, *rest,
                n_heads, d_head, apply_pos, eps=1e-5):
    if apply_pos:
        w1_ref, bf1_ref, w2_ref, bf2_ref, g2_ref, be2_ref, o_ref = rest
    else:
        (o_ref,) = rest

    x = q_ref[0, 0]                                   # (L, D) f32
    vin = v_ref[0, 0]                                 # (L, D)
    L, D = x.shape
    H, Dh = n_heads, d_head

    # Shared Q/K projection (kq_same=True; query == key at every call site)
    # and V projection: two full-width MXU matmuls, f32 accumulation.
    qk = (jnp.dot(x.astype(jnp.bfloat16), wkq_ref[0],
                  preferred_element_type=jnp.float32) + bkq_ref[0])   # (L, HD)
    vp = (jnp.dot(vin.astype(jnp.bfloat16), wv_ref[0],
                  preferred_element_type=jnp.float32) + bv_ref[0])    # (L, HD)

    # Head split without lane-offset slices / concats:
    #   2-D XLU transpose -> layout-preserving leading-dim split ->
    #   batched minormost transpose.  Heads become the single batch dim.
    qh = jnp.swapaxes(qk.T.reshape(H, Dh, L), 1, 2).astype(jnp.bfloat16)
    vh = jnp.swapaxes(vp.T.reshape(H, Dh, L), 1, 2).astype(jnp.bfloat16)

    # 2-D additive causal bias, broadcast over heads (mask=1: diagonal kept).
    row = jax.lax.broadcasted_iota(jnp.int32, (L, L), 0)
    col = jax.lax.broadcasted_iota(jnp.int32, (L, L), 1)
    bias = jnp.where(col <= row, 0.0, -1e30).astype(jnp.float32)

    scale = 1.0 / math.sqrt(Dh)
    # One batched einsum over all heads (Q == K), f32 softmax epilogue.
    s = jnp.einsum("hqd,hkd->hqk", qh, qh,
                   preferred_element_type=jnp.float32) * scale        # (H,L,L)
    s = s + bias[None, :, :]
    s = s - jnp.max(s, axis=-1, keepdims=True)
    pr = jnp.exp(s)
    pr = pr * pl.reciprocal(jnp.sum(pr, axis=-1, keepdims=True),
                            approx=True)                              # EUP

    ctx = jnp.einsum("hqk,hkd->hqd", pr.astype(jnp.bfloat16), vh,
                     preferred_element_type=jnp.float32)              # (H,L,Dh)

    # Output projection with head-stacked weights (H, Dh, D): one batched
    # einsum + head sum (no merge-heads lane concat).
    attn_h = jnp.einsum("hqd,hde->hqe", ctx.astype(jnp.bfloat16), wout_ref[0],
                        preferred_element_type=jnp.float32)           # (H,L,D)
    attn = bout_ref[0]                                                # (1, D)
    for h in range(H):                       # H static vector adds (VPU)
        attn = attn + attn_h[h]

    # Residual + LayerNorm 1 (f32 epilogue).
    y = x + attn
    mu = jnp.mean(y, axis=-1, keepdims=True)
    var = jnp.mean((y - mu) ** 2, axis=-1, keepdims=True)
    y = (y - mu) * jax.lax.rsqrt(var + eps) * g1_ref[0] + be1_ref[0]

    if apply_pos:
        h1 = (jnp.dot(y.astype(jnp.bfloat16), w1_ref[0],
                      preferred_element_type=jnp.float32) + bf1_ref[0])
        h1 = jnp.maximum(h1, 0.0)
        f = (jnp.dot(h1.astype(jnp.bfloat16), w2_ref[0],
                     preferred_element_type=jnp.float32) + bf2_ref[0])
        y2 = y + f
        mu2 = jnp.mean(y2, axis=-1, keepdims=True)
        var2 = jnp.mean((y2 - mu2) ** 2, axis=-1, keepdims=True)
        y = (y2 - mu2) * jax.lax.rsqrt(var2 + eps) * g2_ref[0] + be2_ref[0]

    o_ref[0, 0] = y


def _txl_cost(P, B, L, D, H, Dh, F, apply_pos):
    HD = H * Dh
    proj = 2 * L * D * HD * 2 + 2 * L * HD * D
    attn = 4 * H * L * L * Dh
    ffnf = 4 * L * D * F if apply_pos else 0
    flops = P * B * (proj + attn + ffnf)
    trans = P * B * (H * L * L + 8 * L)
    byt = P * B * 4 * 3 * L * D + P * 2 * (3 * D * HD
                                           + (2 * D * F if apply_pos else 0))
    return pl.CostEstimate(flops=int(flops), transcendentals=int(trans),
                           bytes_accessed=int(byt))


def transformer_layers(prm, q_stack, v_stack, n_heads, d_head, apply_pos):
    """Run P independent transformer layers (stacked params) in one call."""
    P, B, L, D = q_stack.shape
    act_spec = pl.BlockSpec((1, 1, L, D), lambda i, j: (i, j, 0, 0))

    def wspec(a):
        return pl.BlockSpec((1,) + a.shape[1:],
                            lambda i, j, _nd=a.ndim: (i,) + (0,) * (_nd - 1))

    args = [q_stack, v_stack, prm["wkq"], prm["bkq"], prm["wv"], prm["bv"],
            prm["wout"], prm["bout"], prm["g1"], prm["be1"]]
    in_specs = [act_spec, act_spec] + [wspec(a) for a in args[2:]]
    if apply_pos:
        extra = [prm["w1"], prm["bf1"], prm["w2"], prm["bf2"],
                 prm["g2"], prm["be2"]]
        args += extra
        in_specs += [wspec(a) for a in extra]
    F = prm["w1"].shape[-1] if apply_pos else 0

    return pl.pallas_call(
        functools.partial(_txl_kernel, n_heads=n_heads, d_head=d_head,
                          apply_pos=apply_pos),
        out_shape=jax.ShapeDtypeStruct((P, B, L, D), jnp.float32),
        grid=(P, B),                      # layer x batch, both parallel
        in_specs=in_specs,
        out_specs=act_spec,
        compiler_params=_cparams(("parallel", "parallel")),
        cost_estimate=_txl_cost(P, B, L, D, n_heads, d_head, F, apply_pos),
    )(*args)


# ----------------------------------------------------------------------------
# Fused TCN residual-block kernel: batch folded into the matmul M dimension,
# causal taps via pltpu.roll (XLU) + mask, conv1+ReLU+conv2+ReLU+res+ReLU.
# ----------------------------------------------------------------------------

def _tcn_block_kernel(x_ref, w1_ref, b1_ref, w2_ref, b2_ref, *rest,
                      K, dil, has_down):
    if has_down:
        wd_ref, bd_ref, o_ref = rest
    else:
        (o_ref,) = rest

    xb = x_ref[...]                                   # (B, L, Cin) f32
    B, L, Cin = xb.shape
    x2 = xb.reshape(B * L, Cin)                       # fold batch into M

    # Time index within each sequence: zero out rows rolled across the
    # sequence / batch boundary (causal zero-padding).
    t = jax.lax.broadcasted_iota(jnp.int32, (B * L, 1), 0) % L

    def causal_conv(inp, w_ref, b_ref):
        cout = b_ref.shape[-1]
        acc = jnp.zeros((B * L, cout), jnp.float32) + b_ref[...]
        for k in range(K):                            # static unroll over taps
            shift = (K - 1 - k) * dil
            if shift == 0:
                tap = inp
            else:
                tap = pltpu.roll(inp, shift=shift, axis=0)   # XLU sublane roll
                tap = jnp.where(t >= shift, tap, 0.0)        # causal mask
            acc = acc + jnp.dot(tap.astype(jnp.bfloat16), w_ref[k],
                                preferred_element_type=jnp.float32)
        return acc

    h = jnp.maximum(causal_conv(x2, w1_ref, b1_ref), 0.0)    # conv1 + ReLU
    y = jnp.maximum(causal_conv(h, w2_ref, b2_ref), 0.0)     # conv2 + ReLU
    if has_down:
        res = (jnp.dot(x2.astype(jnp.bfloat16), wd_ref[...],
                       preferred_element_type=jnp.float32) + bd_ref[...])
    else:
        res = x2
    o_ref[...] = jnp.maximum(y + res, 0.0)                   # residual + ReLU


def tcn_block(x, blk, K, dil):
    B, L, Cin = x.shape
    Cout = blk["b1"].shape[-1]
    has_down = "wd" in blk

    args = [x, blk["w1"], blk["b1"], blk["w2"], blk["b2"]]
    in_specs = [pl.BlockSpec((B, L, Cin), lambda i: (0, 0, 0)),
                pl.BlockSpec(blk["w1"].shape, lambda i: (0, 0, 0)),
                pl.BlockSpec(blk["b1"].shape, lambda i: (0, 0)),
                pl.BlockSpec(blk["w2"].shape, lambda i: (0, 0, 0)),
                pl.BlockSpec(blk["b2"].shape, lambda i: (0, 0))]
    if has_down:
        args += [blk["wd"], blk["bd"]]
        in_specs += [pl.BlockSpec(blk["wd"].shape, lambda i: (0, 0)),
                     pl.BlockSpec(blk["bd"].shape, lambda i: (0, 0))]

    flops = 2 * B * L * (K * Cin * Cout + K * Cout * Cout
                         + (Cin * Cout if has_down else 0))
    cost = pl.CostEstimate(
        flops=int(flops), transcendentals=0,
        bytes_accessed=int(4 * B * L * (Cin + Cout)
                           + 2 * K * Cout * (Cin + Cout)))

    out = pl.pallas_call(
        functools.partial(_tcn_block_kernel, K=K, dil=dil, has_down=has_down),
        out_shape=jax.ShapeDtypeStruct((B * L, Cout), jnp.float32),
        grid=(1,),
        in_specs=in_specs,
        out_specs=pl.BlockSpec((B * L, Cout), lambda i: (0, 0)),
        compiler_params=_cparams(("arbitrary",)),
        cost_estimate=cost,
    )(*args)
    return out.reshape(B, L, Cout)


# ----------------------------------------------------------------------------
# PositionwiseFeedForward kernel (linear -> relu -> linear [-> sigmoid])
# ----------------------------------------------------------------------------

def _pff_kernel(x_ref, w1_ref, b1_ref, w2_ref, b2_ref, o_ref, *, final_sigmoid):
    x = x_ref[...].astype(jnp.bfloat16)
    h = (jnp.dot(x, w1_ref[...], preferred_element_type=jnp.float32)
         + b1_ref[...])
    h = jnp.maximum(h, 0.0)
    y = (jnp.dot(h.astype(jnp.bfloat16), w2_ref[...],
                 preferred_element_type=jnp.float32) + b2_ref[...])
    if final_sigmoid:
        y = jax.nn.sigmoid(y)                    # f32 epilogue
    o_ref[...] = y


def _pick_row_tile(M):
    # Prefer >= 2 grid steps (v7x dual-TC / DMA overlap), bounded fallback.
    for tm in (512, 256, 128, 64, 32, 16, 8):
        if M % tm == 0 and M // tm >= 2:
            return tm
    for tm in (512, 256, 128, 64, 32, 16, 8):
        if M % tm == 0:
            return tm
    return min(M, 512)


def ffn(x, p, final_sigmoid=False):
    orig = x.shape
    M = math.prod(orig[:-1])
    K = orig[-1]
    H = p["w1"].shape[1]
    N = p["w2"].shape[1]
    tm = _pick_row_tile(M)
    grid = (pl.cdiv(M, tm),)
    cost = pl.CostEstimate(
        flops=int(2 * M * (K * H + H * N)),
        transcendentals=int(M * N if final_sigmoid else 0),
        bytes_accessed=int(4 * M * (K + N) + 2 * (K * H + H * N)))
    out = pl.pallas_call(
        functools.partial(_pff_kernel, final_sigmoid=final_sigmoid),
        out_shape=jax.ShapeDtypeStruct((M, N), jnp.float32),
        grid=grid,
        in_specs=[pl.BlockSpec((tm, K), lambda i: (i, 0)),
                  pl.BlockSpec((K, H), lambda i: (0, 0)),
                  pl.BlockSpec((1, H), lambda i: (0, 0)),
                  pl.BlockSpec((H, N), lambda i: (0, 0)),
                  pl.BlockSpec((1, N), lambda i: (0, 0))],
        out_specs=pl.BlockSpec((tm, N), lambda i: (i, 0)),
        compiler_params=_cparams(("parallel",)),
        cost_estimate=cost,
    )(x.reshape(M, K), p["w1"], p["b1"], p["w2"], p["b2"])
    return out.reshape(orig[:-1] + (N,))


# ----------------------------------------------------------------------------
# Module forward (glue between fused kernels)
# ----------------------------------------------------------------------------

def encoder_forward(p, x, y, q_num, n_heads, d_feature):
    x_embed = jnp.take(p["q_embed"], x, axis=0)              # (B, L, D)
    y_embed = jnp.take(p["a_embed"], y, axis=0)
    qa = x + q_num * y
    qa_embed = jnp.take(p["qa_embed"], qa, axis=0)
    # Both encoder transformer layers run as one gridded pallas_call.
    q_stack = jnp.stack([x_embed, qa_embed], axis=0)         # (2, B, L, D)
    v_stack = jnp.stack([x_embed, y_embed], axis=0)
    outs = transformer_layers(p["txy"], q_stack, v_stack, n_heads, d_feature,
                              apply_pos=False)
    cat = jnp.concatenate([outs[0], outs[1]], axis=-1)       # (B, L, 2*eo)
    return ffn(cat, p["proj"])


def lsktsk_forward(params, x, y, cfg):
    nh = cfg["n_heads"]
    enc = encoder_forward(params["encoder"], x, y, cfg["q_num"], nh,
                          cfg["encoder_out"] // nh)

    out_tcns = []
    for tcn_blocks in params["tcns"]:
        h = enc
        for i, blk in enumerate(tcn_blocks):
            h = tcn_block(h, blk, cfg["kernel_size"], 2 ** i)
            out_tcns.append(h)                               # one out per block

    t_stack = jnp.stack(out_tcns, axis=0)                    # (P, B, L, C)
    # All `p` atten transformer layers run as ONE gridded pallas_call.
    att = transformer_layers(params["attens"], t_stack, t_stack,
                             nh, cfg["out_size"] // nh, apply_pos=True)

    # SSAttention (squeeze-excite over the P streams) in plain jnp: a (B,P)
    # matmul -- a Pallas launch would be pure overhead.  Stack/permute of the
    # reference are pure layout, folded into this form.
    se = params["se"]
    sq = jnp.mean(att, axis=(2, 3)).T                        # (B, P) squeeze
    hid = jnp.maximum(sq @ se["w1"].astype(jnp.float32) + se["b1"], 0.0)
    gate = jax.nn.sigmoid(hid @ se["w2"].astype(jnp.float32) + se["b2"])
    out = jnp.sum(att * gate.T[:, :, None, None], axis=0)    # (B, L, C)
    return ffn(out, params["ffc"], final_sigmoid=True)       # sigmoid(ffc(.))


# ----------------------------------------------------------------------------
# Deterministic parameter initialization (matmul weights in bf16)
# ----------------------------------------------------------------------------

def _pff_params(key, din, hidden, dout, scale=0.05):
    k1, k2 = jax.random.split(key)
    return {"w1": (jax.random.normal(k1, (din, hidden), jnp.float32)
                   * scale).astype(jnp.bfloat16),
            "b1": jnp.zeros((1, hidden), jnp.float32),
            "w2": (jax.random.normal(k2, (hidden, dout), jnp.float32)
                   * scale).astype(jnp.bfloat16),
            "b2": jnp.zeros((1, dout), jnp.float32)}


def _stacked_txl_params(key, P, d_model, d_feature, n_heads, d_ff,
                        apply_pos, scale=0.05):
    HD = n_heads * d_feature
    ks = jax.random.split(key, 5)
    p = {"wkq": (jax.random.normal(ks[0], (P, d_model, HD), jnp.float32)
                 * scale).astype(jnp.bfloat16),
         "bkq": jnp.zeros((P, 1, HD), jnp.float32),
         "wv": (jax.random.normal(ks[1], (P, d_model, HD), jnp.float32)
                * scale).astype(jnp.bfloat16),
         "bv": jnp.zeros((P, 1, HD), jnp.float32),
         # output projection stored head-stacked: (P, H, Dh, d_model)
         "wout": (jax.random.normal(ks[2], (P, n_heads, d_feature, d_model),
                                    jnp.float32) * scale).astype(jnp.bfloat16),
         "bout": jnp.zeros((P, 1, d_model), jnp.float32),
         "g1": jnp.ones((P, 1, d_model), jnp.float32),
         "be1": jnp.zeros((P, 1, d_model), jnp.float32)}
    if apply_pos:
        p.update({
            "w1": (jax.random.normal(ks[3], (P, d_model, d_ff), jnp.float32)
                   * scale).astype(jnp.bfloat16),
            "bf1": jnp.zeros((P, 1, d_ff), jnp.float32),
            "w2": (jax.random.normal(ks[4], (P, d_ff, d_model), jnp.float32)
                   * scale).astype(jnp.bfloat16),
            "bf2": jnp.zeros((P, 1, d_model), jnp.float32),
            "g2": jnp.ones((P, 1, d_model), jnp.float32),
            "be2": jnp.zeros((P, 1, d_model), jnp.float32)})
    return p


def _tcn_params(key, c_in, num_channels, K, scale=0.05):
    # TODO(synk): weight_norm of the reference TCN is omitted.
    blocks = []
    keys = jax.random.split(key, len(num_channels))
    for i, c_out in enumerate(num_channels):
        ci = c_in if i == 0 else num_channels[i - 1]
        k1, k2, k3 = jax.random.split(keys[i], 3)
        blk = {"w1": (jax.random.normal(k1, (K, ci, c_out), jnp.float32)
                      * scale).astype(jnp.bfloat16),
               "b1": jnp.zeros((1, c_out), jnp.float32),
               "w2": (jax.random.normal(k2, (K, c_out, c_out), jnp.float32)
                      * scale).astype(jnp.bfloat16),
               "b2": jnp.zeros((1, c_out), jnp.float32)}
        if ci != c_out:
            blk["wd"] = (jax.random.normal(k3, (ci, c_out), jnp.float32)
                         * scale).astype(jnp.bfloat16)
            blk["bd"] = jnp.zeros((1, c_out), jnp.float32)
        blocks.append(blk)
    return blocks


def init_params(key, cfg):
    q_num, d_model, eo = cfg["q_num"], cfg["d_model"], cfg["encoder_out"]
    nh, d_ff = cfg["n_heads"], cfg["d_ff"]
    out_size = cfg["num_channels"][-1]
    N, M = cfg["n"], len(cfg["num_channels"])
    p_ch = N * M
    ks = jax.random.split(key, 9)
    enc = {"q_embed": jax.random.normal(ks[0], (q_num, d_model),
                                        jnp.float32) * 0.05,
           "a_embed": jax.random.normal(ks[1], (2, d_model),
                                        jnp.float32) * 0.05,
           "qa_embed": jax.random.normal(ks[2], (2 * q_num, d_model),
                                         jnp.float32) * 0.05,
           "txy": _stacked_txl_params(ks[3], 2, d_model, eo // nh, nh, d_ff,
                                      apply_pos=False),
           "proj": _pff_params(ks[4], 2 * eo, eo, eo)}
    tcns = [_tcn_params(k, eo, cfg["num_channels"], cfg["kernel_size"])
            for k in jax.random.split(ks[5], N)]
    attens = _stacked_txl_params(ks[6], p_ch, out_size, out_size // nh, nh,
                                 d_ff, apply_pos=True)
    hidden = max(p_ch // N, 1)
    se = _pff_params(ks[7], p_ch, hidden, p_ch)
    ffc = _pff_params(ks[8], out_size, cfg["ffn_h_num"], q_num)
    return {"encoder": enc, "tcns": tcns, "attens": attens, "se": se,
            "ffc": ffc}


# ----------------------------------------------------------------------------
# Main
# ----------------------------------------------------------------------------

if __name__ == "__main__":
    cfg = dict(kernel_size=3, num_channels=[32, 32], q_num=10, d_model=32,
               encoder_out=32, ffn_h_num=16, n=1, d_ff=64, n_heads=4)
    cfg["out_size"] = cfg["num_channels"][-1]
    B, L = 2, 8

    key = jax.random.PRNGKey(0)
    kx, ky, kp = jax.random.split(key, 3)
    x = jax.random.randint(kx, (B, L), 0, cfg["q_num"])   # question ids
    y = jax.random.randint(ky, (B, L), 0, 2)              # answers in {0, 1}
    params = init_params(kp, cfg)

    fwd = jax.jit(functools.partial(lsktsk_forward, cfg=cfg))
    out = fwd(params, x, y)
    jax.block_until_ready(out)
    assert out.shape == (B, L, cfg["q_num"]), out.shape
    assert bool(jnp.all(jnp.isfinite(out)))
    print("KERNEL_OK")
</pallas_src>

<mosaic_0001>
module attributes {stable_mosaic.version = 11 : i64} {
  func.func @_txl_kernel(%arg0: i32, %arg1: i32, %arg2: memref<1x1x8x32xf32, #tpu.memory_space<vmem>>, %arg3: memref<1x1x8x32xf32, #tpu.memory_space<vmem>>, %arg4: memref<1x32x32xbf16, #tpu.memory_space<vmem>>, %arg5: memref<1x1x32xf32, #tpu.memory_space<vmem>>, %arg6: memref<1x32x32xbf16, #tpu.memory_space<vmem>>, %arg7: memref<1x1x32xf32, #tpu.memory_space<vmem>>, %arg8: memref<1x4x8x32xbf16, #tpu.memory_space<vmem>>, %arg9: memref<1x1x32xf32, #tpu.memory_space<vmem>>, %arg10: memref<1x1x32xf32, #tpu.memory_space<vmem>>, %arg11: memref<1x1x32xf32, #tpu.memory_space<vmem>>, %arg12: memref<1x1x8x32xf32, #tpu.memory_space<vmem>>) attributes {dimension_semantics = [#tpu.dimension_semantics<parallel>, #tpu.dimension_semantics<parallel>], iteration_bounds = array<i64: 2, 2>, scalar_prefetch = 0 : i64, scratch_operands = 0 : i64, tpu.core_type = #tpu.core_type<tc>, window_params = [{transform_indices = @transform_0, window_bounds = array<i64: 1, 1, 8, 32>}, {transform_indices = @transform_1, window_bounds = array<i64: 1, 1, 8, 32>}, {transform_indices = @transform_2, window_bounds = array<i64: 1, 32, 32>}, {transform_indices = @transform_3, window_bounds = array<i64: 1, 1, 32>}, {transform_indices = @transform_4, window_bounds = array<i64: 1, 32, 32>}, {transform_indices = @transform_5, window_bounds = array<i64: 1, 1, 32>}, {transform_indices = @transform_6, window_bounds = array<i64: 1, 4, 8, 32>}, {transform_indices = @transform_7, window_bounds = array<i64: 1, 1, 32>}, {transform_indices = @transform_8, window_bounds = array<i64: 1, 1, 32>}, {transform_indices = @transform_9, window_bounds = array<i64: 1, 1, 32>}, {transform_indices = @transform_10, window_bounds = array<i64: 1, 1, 8, 32>}]} {
    %c0 = arith.constant 0 : index
    %c0_0 = arith.constant 0 : index
    %c0_1 = arith.constant 0 : index
    %c0_2 = arith.constant 0 : index
    %0 = vector.load %arg2[%c0, %c0_0, %c0_1, %c0_2] : memref<1x1x8x32xf32, #tpu.memory_space<vmem>>, vector<1x1x8x32xf32>
    %1 = vector.shape_cast %0 : vector<1x1x8x32xf32> to vector<8x32xf32>
    %c0_3 = arith.constant 0 : index
    %c0_4 = arith.constant 0 : index
    %c0_5 = arith.constant 0 : index
    %c0_6 = arith.constant 0 : index
    %2 = vector.load %arg3[%c0_3, %c0_4, %c0_5, %c0_6] : memref<1x1x8x32xf32, #tpu.memory_space<vmem>>, vector<1x1x8x32xf32>
    %3 = vector.shape_cast %2 : vector<1x1x8x32xf32> to vector<8x32xf32>
    %4 = arith.truncf %1 : vector<8x32xf32> to vector<8x32xbf16>
    %c0_7 = arith.constant 0 : index
    %c0_8 = arith.constant 0 : index
    %c0_9 = arith.constant 0 : index
    %5 = vector.load %arg4[%c0_7, %c0_8, %c0_9] : memref<1x32x32xbf16, #tpu.memory_space<vmem>>, vector<1x32x32xbf16>
    %6 = vector.shape_cast %5 : vector<1x32x32xbf16> to vector<32x32xbf16>
    %cst = arith.constant dense<0.000000e+00> : vector<8x32xf32>
    %7 = tpu.matmul %4, %6, %cst {dimension_numbers = #tpu.dot_dimension_numbers<[1], [0], [0], [1], [0, 0, 1, 1], [], []>} : vector<8x32xbf16>, vector<32x32xbf16>, vector<8x32xf32> -> vector<8x32xf32>
    %c0_10 = arith.constant 0 : index
    %c0_11 = arith.constant 0 : index
    %c0_12 = arith.constant 0 : index
    %8 = vector.load %arg5[%c0_10, %c0_11, %c0_12] : memref<1x1x32xf32, #tpu.memory_space<vmem>>, vector<1x1x32xf32>
    %9 = vector.shape_cast %8 : vector<1x1x32xf32> to vector<1x32xf32>
    %10 = vector.broadcast %9 : vector<1x32xf32> to vector<8x32xf32>
    %11 = arith.addf %7, %10 : vector<8x32xf32>
    %12 = arith.truncf %3 : vector<8x32xf32> to vector<8x32xbf16>
    %c0_13 = arith.constant 0 : index
    %c0_14 = arith.constant 0 : index
    %c0_15 = arith.constant 0 : index
    %13 = vector.load %arg6[%c0_13, %c0_14, %c0_15] : memref<1x32x32xbf16, #tpu.memory_space<vmem>>, vector<1x32x32xbf16>
    %14 = vector.shape_cast %13 : vector<1x32x32xbf16> to vector<32x32xbf16>
    %cst_16 = arith.constant dense<0.000000e+00> : vector<8x32xf32>
    %15 = tpu.matmul %12, %14, %cst_16 {dimension_numbers = #tpu.dot_dimension_numbers<[1], [0], [0], [1], [0, 0, 1, 1], [], []>} : vector<8x32xbf16>, vector<32x32xbf16>, vector<8x32xf32> -> vector<8x32xf32>
    %c0_17 = arith.constant 0 : index
    %c0_18 = arith.constant 0 : index
    %c0_19 = arith.constant 0 : index
    %16 = vector.load %arg7[%c0_17, %c0_18, %c0_19] : memref<1x1x32xf32, #tpu.memory_space<vmem>>, vector<1x1x32xf32>
    %17 = vector.shape_cast %16 : vector<1x1x32xf32> to vector<1x32xf32>
    %18 = vector.broadcast %17 : vector<1x32xf32> to vector<8x32xf32>
    %19 = arith.addf %15, %18 : vector<8x32xf32>
    %20 = tpu.transpose %11, [1, 0] : vector<8x32xf32> -> vector<32x8xf32>
    %21 = vector.shape_cast %20 : vector<32x8xf32> to vector<4x8x8xf32>
    %22 = tpu.transpose %21, [0, 2, 1] : vector<4x8x8xf32> -> vector<4x8x8xf32>
    %23 = arith.truncf %22 : vector<4x8x8xf32> to vector<4x8x8xbf16>
    %24 = tpu.transpose %19, [1, 0] : vector<8x32xf32> -> vector<32x8xf32>
    %25 = vector.shape_cast %24 : vector<32x8xf32> to vector<4x8x8xf32>
    %26 = tpu.transpose %25, [0, 2, 1] : vector<4x8x8xf32> -> vector<4x8x8xf32>
    %27 = arith.truncf %26 : vector<4x8x8xf32> to vector<4x8x8xbf16>
    %28 = tpu.iota {dimensions = array<i32: 0>} : vector<8x8xi32>
    %29 = tpu.iota {dimensions = array<i32: 1>} : vector<8x8xi32>
    %30 = arith.cmpi sle, %29, %28 : vector<8x8xi32>
    %cst_20 = arith.constant 0.000000e+00 : f32
    %cst_21 = arith.constant -1.000000e+30 : f32
    %31 = vector.broadcast %cst_20 : f32 to vector<8x8xf32>
    %32 = vector.broadcast %cst_21 : f32 to vector<8x8xf32>
    %33 = arith.select %30, %31, %32 : vector<8x8xi1>, vector<8x8xf32>
    "tpu.trace_start"() <{level = 10 : i32, message = "hqd,hkd->hqk"}> : () -> ()
    %cst_22 = arith.constant dense<0.000000e+00> : vector<4x8x8xf32>
    %34 = tpu.matmul %23, %23, %cst_22 {dimension_numbers = #tpu.dot_dimension_numbers<[2], [2], [1], [1], [0, 0, 0, 1, 1, 1], [0], [0]>} : vector<4x8x8xbf16>, vector<4x8x8xbf16>, vector<4x8x8xf32> -> vector<4x8x8xf32>
    "tpu.trace_stop"() : () -> ()
    %cst_23 = arith.constant 0.353553385 : f32
    %35 = vector.broadcast %cst_23 : f32 to vector<4x8x8xf32>
    %36 = arith.mulf %34, %35 : vector<4x8x8xf32>
    %37 = vector.shape_cast %33 : vector<8x8xf32> to vector<1x8x8xf32>
    %38 = vector.broadcast %37 : vector<1x8x8xf32> to vector<4x8x8xf32>
    %39 = arith.addf %36, %38 : vector<4x8x8xf32>
    %cst_24 = arith.constant dense<0xFF800000> : vector<4x8xf32>
    %40 = vector.multi_reduction <maximumf>, %39, %cst_24 [2] : vector<4x8x8xf32> to vector<4x8xf32>
    %41 = vector.shape_cast %40 : vector<4x8xf32> to vector<4x8x1xf32>
    %42 = vector.broadcast %41 : vector<4x8x1xf32> to vector<4x8x8xf32>
    %43 = arith.subf %39, %42 : vector<4x8x8xf32>
    %44 = math.exp %43 : vector<4x8x8xf32>
    %cst_25 = arith.constant dense<0.000000e+00> : vector<4x8xf32>
    %45 = vector.multi_reduction <add>, %44, %cst_25 [2] : vector<4x8x8xf32> to vector<4x8xf32>
    %46 = vector.shape_cast %45 : vector<4x8xf32> to vector<4x8x1xf32>
    %47 = tpu.reciprocal %46 {approx = true} : vector<4x8x1xf32> -> vector<4x8x1xf32>
    %48 = vector.broadcast %47 : vector<4x8x1xf32> to vector<4x8x8xf32>
    %49 = arith.mulf %44, %48 : vector<4x8x8xf32>
    %50 = arith.truncf %49 : vector<4x8x8xf32> to vector<4x8x8xbf16>
    "tpu.trace_start"() <{level = 10 : i32, message = "hqk,hkd->hqd"}> : () -> ()
    %cst_26 = arith.constant dense<0.000000e+00> : vector<4x8x8xf32>
    %51 = tpu.matmul %50, %27, %cst_26 {dimension_numbers = #tpu.dot_dimension_numbers<[2], [1], [1], [2], [0, 0, 0, 1, 1, 2], [0], [0]>} : vector<4x8x8xbf16>, vector<4x8x8xbf16>, vector<4x8x8xf32> -> vector<4x8x8xf32>
    "tpu.trace_stop"() : () -> ()
    %52 = arith.truncf %51 : vector<4x8x8xf32> to vector<4x8x8xbf16>
    %c0_27 = arith.constant 0 : index
    %c0_28 = arith.constant 0 : index
    %c0_29 = arith.constant 0 : index
    %c0_30 = arith.constant 0 : index
    %53 = vector.load %arg8[%c0_27, %c0_28, %c0_29, %c0_30] : memref<1x4x8x32xbf16, #tpu.memory_space<vmem>>, vector<1x4x8x32xbf16>
    %54 = vector.shape_cast %53 : vector<1x4x8x32xbf16> to vector<4x8x32xbf16>
    "tpu.trace_start"() <{level = 10 : i32, message = "hqd,hde->hqe"}> : () -> ()
    %cst_31 = arith.constant dense<0.000000e+00> : vector<4x8x32xf32>
    %55 = tpu.matmul %52, %54, %cst_31 {dimension_numbers = #tpu.dot_dimension_numbers<[2], [1], [1], [2], [0, 0, 0, 1, 1, 2], [0], [0]>} : vector<4x8x8xbf16>, vector<4x8x32xbf16>, vector<4x8x32xf32> -> vector<4x8x32xf32>
    "tpu.trace_stop"() : () -> ()
    %c0_32 = arith.constant 0 : index
    %c0_33 = arith.constant 0 : index
    %c0_34 = arith.constant 0 : index
    %56 = vector.load %arg9[%c0_32, %c0_33, %c0_34] : memref<1x1x32xf32, #tpu.memory_space<vmem>>, vector<1x1x32xf32>
    %57 = vector.shape_cast %56 : vector<1x1x32xf32> to vector<1x32xf32>
    %58 = vector.extract_strided_slice %55 {offsets = [0, 0, 0], sizes = [1, 8, 32], strides = [1, 1, 1]} : vector<4x8x32xf32> to vector<1x8x32xf32>
    %59 = vector.shape_cast %58 : vector<1x8x32xf32> to vector<8x32xf32>
    %60 = vector.broadcast %57 : vector<1x32xf32> to vector<8x32xf32>
    %61 = arith.addf %60, %59 : vector<8x32xf32>
    %62 = vector.extract_strided_slice %55 {offsets = [1, 0, 0], sizes = [1, 8, 32], strides = [1, 1, 1]} : vector<4x8x32xf32> to vector<1x8x32xf32>
    %63 = vector.shape_cast %62 : vector<1x8x32xf32> to vector<8x32xf32>
    %64 = arith.addf %61, %63 : vector<8x32xf32>
    %65 = vector.extract_strided_slice %55 {offsets = [2, 0, 0], sizes = [1, 8, 32], strides = [1, 1, 1]} : vector<4x8x32xf32> to vector<1x8x32xf32>
    %66 = vector.shape_cast %65 : vector<1x8x32xf32> to vector<8x32xf32>
    %67 = arith.addf %64, %66 : vector<8x32xf32>
    %68 = vector.extract_strided_slice %55 {offsets = [3, 0, 0], sizes = [1, 8, 32], strides = [1, 1, 1]} : vector<4x8x32xf32> to vector<1x8x32xf32>
    %69 = vector.shape_cast %68 : vector<1x8x32xf32> to vector<8x32xf32>
    %70 = arith.addf %67, %69 : vector<8x32xf32>
    %71 = arith.addf %1, %70 : vector<8x32xf32>
    %cst_35 = arith.constant dense<0.000000e+00> : vector<8xf32>
    %72 = vector.multi_reduction <add>, %71, %cst_35 [1] : vector<8x32xf32> to vector<8xf32>
    %73 = vector.shape_cast %72 : vector<8xf32> to vector<8x1xf32>
    %cst_36 = arith.constant 3.200000e+01 : f32
    %74 = vector.broadcast %cst_36 : f32 to vector<8x1xf32>
    %75 = arith.divf %73, %74 : vector<8x1xf32>
    %76 = vector.broadcast %75 : vector<8x1xf32> to vector<8x32xf32>
    %77 = arith.subf %71, %76 : vector<8x32xf32>
    %78 = arith.mulf %77, %77 : vector<8x32xf32>
    %cst_37 = arith.constant dense<0.000000e+00> : vector<8xf32>
    %79 = vector.multi_reduction <add>, %78, %cst_37 [1] : vector<8x32xf32> to vector<8xf32>
    %80 = vector.shape_cast %79 : vector<8xf32> to vector<8x1xf32>
    %cst_38 = arith.constant 3.200000e+01 : f32
    %81 = vector.broadcast %cst_38 : f32 to vector<8x1xf32>
    %82 = arith.divf %80, %81 : vector<8x1xf32>
    %83 = vector.broadcast %75 : vector<8x1xf32> to vector<8x32xf32>
    %84 = arith.subf %71, %83 : vector<8x32xf32>
    %cst_39 = arith.constant 9.99999974E-6 : f32
    %85 = vector.broadcast %cst_39 : f32 to vector<8x1xf32>
    %86 = arith.addf %82, %85 : vector<8x1xf32>
    %87 = math.rsqrt %86 : vector<8x1xf32>
    %88 = vector.broadcast %87 : vector<8x1xf32> to vector<8x32xf32>
    %89 = arith.mulf %84, %88 : vector<8x32xf32>
    %c0_40 = arith.constant 0 : index
    %c0_41 = arith.constant 0 : index
    %c0_42 = arith.constant 0 : index
    %90 = vector.load %arg10[%c0_40, %c0_41, %c0_42] : memref<1x1x32xf32, #tpu.memory_space<vmem>>, vector<1x1x32xf32>
    %91 = vector.shape_cast %90 : vector<1x1x32xf32> to vector<1x32xf32>
    %92 = vector.broadcast %91 : vector<1x32xf32> to vector<8x32xf32>
    %93 = arith.mulf %89, %92 : vector<8x32xf32>
    %c0_43 = arith.constant 0 : index
    %c0_44 = arith.constant 0 : index
    %c0_45 = arith.constant 0 : index
    %94 = vector.load %arg11[%c0_43, %c0_44, %c0_45] : memref<1x1x32xf32, #tpu.memory_space<vmem>>, vector<1x1x32xf32>
    %95 = vector.shape_cast %94 : vector<1x1x32xf32> to vector<1x32xf32>
    %96 = vector.broadcast %95 : vector<1x32xf32> to vector<8x32xf32>
    %97 = arith.addf %93, %96 : vector<8x32xf32>
    %c0_46 = arith.constant 0 : index
    %c0_47 = arith.constant 0 : index
    %c0_48 = arith.constant 0 : index
    %c0_49 = arith.constant 0 : index
    %98 = vector.load %arg12[%c0_46, %c0_47, %c0_48, %c0_49] : memref<1x1x8x32xf32, #tpu.memory_space<vmem>>, vector<1x1x8x32xf32>
    %99 = vector.shape_cast %98 : vector<1x1x8x32xf32> to vector<8x32xf32>
    %100 = vector.shape_cast %97 : vector<8x32xf32> to vector<1x1x8x32xf32>
    tpu.vector_store %arg12[%c0_46, %c0_47, %c0_48, %c0_49], %100 {strides = array<i32>} : memref<1x1x8x32xf32, #tpu.memory_space<vmem>>, vector<1x1x8x32xf32>,
    return
  }
  func.func @transform_0(%arg0: i32, %arg1: i32) -> (i32, i32, i32, i32) {
    %c0_i32 = arith.constant 0 : i32
    %c0_i32_0 = arith.constant 0 : i32
    %c0_i32_1 = arith.constant 0 : i32
    return %arg0, %arg1, %c0_i32, %c0_i32_0 : i32, i32, i32, i32
  }
  func.func @transform_1(%arg0: i32, %arg1: i32) -> (i32, i32, i32, i32) {
    %c0_i32 = arith.constant 0 : i32
    %c0_i32_0 = arith.constant 0 : i32
    %c0_i32_1 = arith.constant 0 : i32
    return %arg0, %arg1, %c0_i32, %c0_i32_0 : i32, i32, i32, i32
  }
  func.func @transform_2(%arg0: i32, %arg1: i32) -> (i32, i32, i32) {
    %c0_i32 = arith.constant 0 : i32
    %c0_i32_0 = arith.constant 0 : i32
    %c0_i32_1 = arith.constant 0 : i32
    return %arg0, %c0_i32, %c0_i32_0 : i32, i32, i32
  }
  func.func @transform_3(%arg0: i32, %arg1: i32) -> (i32, i32, i32) {
    %c0_i32 = arith.constant 0 : i32
    %c0_i32_0 = arith.constant 0 : i32
    %c0_i32_1 = arith.constant 0 : i32
    return %arg0, %c0_i32, %c0_i32_0 : i32, i32, i32
  }
  func.func @transform_4(%arg0: i32, %arg1: i32) -> (i32, i32, i32) {
    %c0_i32 = arith.constant 0 : i32
    %c0_i32_0 = arith.constant 0 : i32
    %c0_i32_1 = arith.constant 0 : i32
    return %arg0, %c0_i32, %c0_i32_0 : i32, i32, i32
  }
  func.func @transform_5(%arg0: i32, %arg1: i32) -> (i32, i32, i32) {
    %c0_i32 = arith.constant 0 : i32
    %c0_i32_0 = arith.constant 0 : i32
    %c0_i32_1 = arith.constant 0 : i32
    return %arg0, %c0_i32, %c0_i32_0 : i32, i32, i32
  }
  func.func @transform_6(%arg0: i32, %arg1: i32) -> (i32, i32, i32, i32) {
    %c0_i32 = arith.constant 0 : i32
    %c0_i32_0 = arith.constant 0 : i32
    %c0_i32_1 = arith.constant 0 : i32
    %c0_i32_2 = arith.constant 0 : i32
    return %arg0, %c0_i32, %c0_i32_0, %c0_i32_1 : i32, i32, i32, i32
  }
  func.func @transform_7(%arg0: i32, %arg1: i32) -> (i32, i32, i32) {
    %c0_i32 = arith.constant 0 : i32
    %c0_i32_0 = arith.constant 0 : i32
    %c0_i32_1 = arith.constant 0 : i32
    return %arg0, %c0_i32, %c0_i32_0 : i32, i32, i32
  }
  func.func @transform_8(%arg0: i32, %arg1: i32) -> (i32, i32, i32) {
    %c0_i32 = arith.constant 0 : i32
    %c0_i32_0 = arith.constant 0 : i32
    %c0_i32_1 = arith.constant 0 : i32
    return %arg0, %c0_i32, %c0_i32_0 : i32, i32, i32
  }
  func.func @transform_9(%arg0: i32, %arg1: i32) -> (i32, i32, i32) {
    %c0_i32 = arith.constant 0 : i32
    %c0_i32_0 = arith.constant 0 : i32
    %c0_i32_1 = arith.constant 0 : i32
    return %arg0, %c0_i32, %c0_i32_0 : i32, i32, i32
  }
  func.func @transform_10(%arg0: i32, %arg1: i32) -> (i32, i32, i32, i32) {
    %c0_i32 = arith.constant 0 : i32
    %c0_i32_0 = arith.constant 0 : i32
    %c0_i32_1 = arith.constant 0 : i32
    return %arg0, %arg1, %c0_i32, %c0_i32_0 : i32, i32, i32, i32
  }
}

module attributes {stable_mosaic.version = 11 : i64} {
  func.func @_pff_kernel(%arg0: i32, %arg1: memref<8x64xf32, #tpu.memory_space<vmem>>, %arg2: memref<64x32xbf16, #tpu.memory_space<vmem>>, %arg3: memref<1x32xf32, #tpu.memory_space<vmem>>, %arg4: memref<32x32xbf16, #tpu.memory_space<vmem>>, %arg5: memref<1x32xf32, #tpu.memory_space<vmem>>, %arg6: memref<8x32xf32, #tpu.memory_space<vmem>>) attributes {dimension_semantics = [#tpu.dimension_semantics<parallel>], iteration_bounds = array<i64: 2>, scalar_prefetch = 0 : i64, scratch_operands = 0 : i64, tpu.core_type = #tpu.core_type<tc>, window_params = [{transform_indices = @transform_0, window_bounds = array<i64: 8, 64>}, {pipeline_mode = #tpu.pipeline_mode<synchronous>, transform_indices = @transform_1, window_bounds = array<i64: 64, 32>}, {pipeline_mode = #tpu.pipeline_mode<synchronous>, transform_indices = @transform_2, window_bounds = array<i64: 1, 32>}, {pipeline_mode = #tpu.pipeline_mode<synchronous>, transform_indices = @transform_3, window_bounds = array<i64: 32, 32>}, {pipeline_mode = #tpu.pipeline_mode<synchronous>, transform_indices = @transform_4, window_bounds = array<i64: 1, 32>}, {transform_indices = @transform_5, window_bounds = array<i64: 8, 32>}]} {
    %c0 = arith.constant 0 : index
    %c0_0 = arith.constant 0 : index
    %0 = vector.load %arg1[%c0, %c0_0] : memref<8x64xf32, #tpu.memory_space<vmem>>, vector<8x64xf32>
    %1 = arith.truncf %0 : vector<8x64xf32> to vector<8x64xbf16>
    %c0_1 = arith.constant 0 : index
    %c0_2 = arith.constant 0 : index
    %2 = vector.load %arg2[%c0_1, %c0_2] : memref<64x32xbf16, #tpu.memory_space<vmem>>, vector<64x32xbf16>
    %cst = arith.constant dense<0.000000e+00> : vector<8x32xf32>
    %3 = tpu.matmul %1, %2, %cst {dimension_numbers = #tpu.dot_dimension_numbers<[1], [0], [0], [1], [0, 0, 1, 1], [], []>} : vector<8x64xbf16>, vector<64x32xbf16>, vector<8x32xf32> -> vector<8x32xf32>
    %c0_3 = arith.constant 0 : index
    %c0_4 = arith.constant 0 : index
    %4 = vector.load %arg3[%c0_3, %c0_4] : memref<1x32xf32, #tpu.memory_space<vmem>>, vector<1x32xf32>
    %5 = vector.broadcast %4 : vector<1x32xf32> to vector<8x32xf32>
    %6 = arith.addf %3, %5 : vector<8x32xf32>
    %cst_5 = arith.constant 0.000000e+00 : f32
    %7 = vector.broadcast %cst_5 : f32 to vector<8x32xf32>
    %8 = arith.maximumf %6, %7 : vector<8x32xf32>
    %9 = arith.truncf %8 : vector<8x32xf32> to vector<8x32xbf16>
    %c0_6 = arith.constant 0 : index
    %c0_7 = arith.constant 0 : index
    %10 = vector.load %arg4[%c0_6, %c0_7] : memref<32x32xbf16, #tpu.memory_space<vmem>>, vector<32x32xbf16>
    %cst_8 = arith.constant dense<0.000000e+00> : vector<8x32xf32>
    %11 = tpu.matmul %9, %10, %cst_8 {dimension_numbers = #tpu.dot_dimension_numbers<[1], [0], [0], [1], [0, 0, 1, 1], [], []>} : vector<8x32xbf16>, vector<32x32xbf16>, vector<8x32xf32> -> vector<8x32xf32>
    %c0_9 = arith.constant 0 : index
    %c0_10 = arith.constant 0 : index
    %12 = vector.load %arg5[%c0_9, %c0_10] : memref<1x32xf32, #tpu.memory_space<vmem>>, vector<1x32xf32>
    %13 = vector.broadcast %12 : vector<1x32xf32> to vector<8x32xf32>
    %14 = arith.addf %11, %13 : vector<8x32xf32>
    %c0_11 = arith.constant 0 : index
    %c0_12 = arith.constant 0 : index
    %15 = vector.load %arg6[%c0_11, %c0_12] : memref<8x32xf32, #tpu.memory_space<vmem>>, vector<8x32xf32>
    tpu.vector_store %arg6[%c0_11, %c0_12], %14 {strides = array<i32>} : memref<8x32xf32, #tpu.memory_space<vmem>>, vector<8x32xf32>,
    return
  }
  func.func @transform_0(%arg0: i32) -> (i32, i32) {
    %c0_i32 = arith.constant 0 : i32
    %c0_i32_0 = arith.constant 0 : i32
    return %arg0, %c0_i32 : i32, i32
  }
  func.func @transform_1(%arg0: i32) -> (i32, i32) {
    %c0_i32 = arith.constant 0 : i32
    %c0_i32_0 = arith.constant 0 : i32
    %c0_i32_1 = arith.constant 0 : i32
    return %c0_i32, %c0_i32_0 : i32, i32
  }
  func.func @transform_2(%arg0: i32) -> (i32, i32) {
    %c0_i32 = arith.constant 0 : i32
    %c0_i32_0 = arith.constant 0 : i32
    %c0_i32_1 = arith.constant 0 : i32
    return %c0_i32, %c0_i32_0 : i32, i32
  }
  func.func @transform_3(%arg0: i32) -> (i32, i32) {
    %c0_i32 = arith.constant 0 : i32
    %c0_i32_0 = arith.constant 0 : i32
    %c0_i32_1 = arith.constant 0 : i32
    return %c0_i32, %c0_i32_0 : i32, i32
  }
  func.func @transform_4(%arg0: i32) -> (i32, i32) {
    %c0_i32 = arith.constant 0 : i32
    %c0_i32_0 = arith.constant 0 : i32
    %c0_i32_1 = arith.constant 0 : i32
    return %c0_i32, %c0_i32_0 : i32, i32
  }
  func.func @transform_5(%arg0: i32) -> (i32, i32) {
    %c0_i32 = arith.constant 0 : i32
    %c0_i32_0 = arith.constant 0 : i32
    return %arg0, %c0_i32 : i32, i32
  }
}

module attributes {stable_mosaic.version = 11 : i64} {
  func.func @_tcn_block_kernel(%arg0: i32, %arg1: memref<2x8x32xf32, #tpu.memory_space<vmem>>, %arg2: memref<3x32x32xbf16, #tpu.memory_space<vmem>>, %arg3: memref<1x32xf32, #tpu.memory_space<vmem>>, %arg4: memref<3x32x32xbf16, #tpu.memory_space<vmem>>, %arg5: memref<1x32xf32, #tpu.memory_space<vmem>>, %arg6: memref<16x32xf32, #tpu.memory_space<vmem>>) attributes {dimension_semantics = [#tpu.dimension_semantics<arbitrary>], iteration_bounds = array<i64: 1>, scalar_prefetch = 0 : i64, scratch_operands = 0 : i64, tpu.core_type = #tpu.core_type<tc>, window_params = [{pipeline_mode = #tpu.pipeline_mode<synchronous>, transform_indices = @transform_0, window_bounds = array<i64: 2, 8, 32>}, {pipeline_mode = #tpu.pipeline_mode<synchronous>, transform_indices = @transform_1, window_bounds = array<i64: 3, 32, 32>}, {pipeline_mode = #tpu.pipeline_mode<synchronous>, transform_indices = @transform_2, window_bounds = array<i64: 1, 32>}, {pipeline_mode = #tpu.pipeline_mode<synchronous>, transform_indices = @transform_3, window_bounds = array<i64: 3, 32, 32>}, {pipeline_mode = #tpu.pipeline_mode<synchronous>, transform_indices = @transform_4, window_bounds = array<i64: 1, 32>}, {pipeline_mode = #tpu.pipeline_mode<synchronous>, transform_indices = @transform_5, window_bounds = array<i64: 16, 32>}]} {
    %c0 = arith.constant 0 : index
    %c0_0 = arith.constant 0 : index
    %c0_1 = arith.constant 0 : index
    %0 = vector.load %arg1[%c0, %c0_0, %c0_1] : memref<2x8x32xf32, #tpu.memory_space<vmem>>, vector<2x8x32xf32>
    %1 = vector.shape_cast %0 : vector<2x8x32xf32> to vector<16x32xf32>
    %2 = tpu.iota {dimensions = array<i32: 0>} : vector<16x1xi32>
    %c8_i32 = arith.constant 8 : i32
    %c0_i32 = arith.constant 0 : i32
    %3 = arith.cmpi eq, %c8_i32, %c0_i32 : i32
    %c1_i32 = arith.constant 1 : i32
    %4 = arith.select %3, %c1_i32, %c8_i32 : i32
    %5 = vector.broadcast %4 : i32 to vector<16x1xi32>
    %6 = arith.remsi %2, %5 : vector<16x1xi32>
    %c0_i32_2 = arith.constant 0 : i32
    %7 = vector.broadcast %c0_i32_2 : i32 to vector<16x1xi32>
    %8 = arith.cmpi ne, %6, %7 : vector<16x1xi32>
    %c0_i32_3 = arith.constant 0 : i32
    %9 = vector.broadcast %c0_i32_3 : i32 to vector<16x1xi32>
    %10 = arith.cmpi slt, %6, %9 : vector<16x1xi32>
    %c0_i32_4 = arith.constant 0 : i32
    %11 = arith.cmpi slt, %4, %c0_i32_4 : i32
    %12 = vector.broadcast %11 : i1 to vector<16x1xi1>
    %13 = vector.broadcast %12 : vector<16x1xi1> to vector<16x1xi1>
    %14 = arith.xori %10, %13 : vector<16x1xi1>
    %15 = arith.andi %14, %8 : vector<16x1xi1>
    %16 = vector.broadcast %4 : i32 to vector<16x1xi32>
    %17 = arith.addi %6, %16 : vector<16x1xi32>
    %18 = arith.select %15, %17, %6 : vector<16x1xi1>, vector<16x1xi32>
    %cst = arith.constant 0.000000e+00 : f32
    %19 = vector.broadcast %cst : f32 to vector<16x32xf32>
    %c0_5 = arith.constant 0 : index
    %c0_6 = arith.constant 0 : index
    %20 = vector.load %arg3[%c0_5, %c0_6] : memref<1x32xf32, #tpu.memory_space<vmem>>, vector<1x32xf32>
    %21 = vector.broadcast %20 : vector<1x32xf32> to vector<16x32xf32>
    %22 = arith.addf %19, %21 : vector<16x32xf32>
    %c2_i32 = arith.constant 2 : i32
    %23 = tpu.dynamic_rotate %1 by %c2_i32 dim 0 : vector<16x32xf32>, i32 -> vector<16x32xf32>
    %c2_i32_7 = arith.constant 2 : i32
    %24 = vector.broadcast %c2_i32_7 : i32 to vector<16x1xi32>
    %25 = arith.cmpi sge, %18, %24 : vector<16x1xi32>
    %cst_8 = arith.constant 0.000000e+00 : f32
    %26 = vector.shape_cast %25 : vector<16x1xi1> to vector<16x1xi1>
    %27 = vector.broadcast %26 : vector<16x1xi1> to vector<16x32xi1>
    %28 = vector.broadcast %cst_8 : f32 to vector<16x32xf32>
    %29 = arith.select %27, %23, %28 : vector<16x32xi1>, vector<16x32xf32>
    %30 = arith.truncf %29 : vector<16x32xf32> to vector<16x32xbf16>
    %c0_9 = arith.constant 0 : index
    %c0_10 = arith.constant 0 : index
    %c0_11 = arith.constant 0 : index
    %31 = vector.load %arg2[%c0_9, %c0_10, %c0_11] : memref<3x32x32xbf16, #tpu.memory_space<vmem>>, vector<1x32x32xbf16>
    %32 = vector.shape_cast %31 : vector<1x32x32xbf16> to vector<32x32xbf16>
    %cst_12 = arith.constant dense<0.000000e+00> : vector<16x32xf32>
    %33 = tpu.matmul %30, %32, %cst_12 {dimension_numbers = #tpu.dot_dimension_numbers<[1], [0], [0], [1], [0, 0, 1, 1], [], []>} : vector<16x32xbf16>, vector<32x32xbf16>, vector<16x32xf32> -> vector<16x32xf32>
    %34 = arith.addf %22, %33 : vector<16x32xf32>
    %c1_i32_13 = arith.constant 1 : i32
    %35 = tpu.dynamic_rotate %1 by %c1_i32_13 dim 0 : vector<16x32xf32>, i32 -> vector<16x32xf32>
    %c1_i32_14 = arith.constant 1 : i32
    %36 = vector.broadcast %c1_i32_14 : i32 to vector<16x1xi32>
    %37 = arith.cmpi sge, %18, %36 : vector<16x1xi32>
    %cst_15 = arith.constant 0.000000e+00 : f32
    %38 = vector.shape_cast %37 : vector<16x1xi1> to vector<16x1xi1>
    %39 = vector.broadcast %38 : vector<16x1xi1> to vector<16x32xi1>
    %40 = vector.broadcast %cst_15 : f32 to vector<16x32xf32>
    %41 = arith.select %39, %35, %40 : vector<16x32xi1>, vector<16x32xf32>
    %42 = arith.truncf %41 : vector<16x32xf32> to vector<16x32xbf16>
    %c1 = arith.constant 1 : index
    %c0_16 = arith.constant 0 : index
    %c0_17 = arith.constant 0 : index
    %43 = vector.load %arg2[%c1, %c0_16, %c0_17] : memref<3x32x32xbf16, #tpu.memory_space<vmem>>, vector<1x32x32xbf16>
    %44 = vector.shape_cast %43 : vector<1x32x32xbf16> to vector<32x32xbf16>
    %cst_18 = arith.constant dense<0.000000e+00> : vector<16x32xf32>
    %45 = tpu.matmul %42, %44, %cst_18 {dimension_numbers = #tpu.dot_dimension_numbers<[1], [0], [0], [1], [0, 0, 1, 1], [], []>} : vector<16x32xbf16>, vector<32x32xbf16>, vector<16x32xf32> -> vector<16x32xf32>
    %46 = arith.addf %34, %45 : vector<16x32xf32>
    %47 = arith.truncf %1 : vector<16x32xf32> to vector<16x32xbf16>
    %c2 = arith.constant 2 : index
    %c0_19 = arith.constant 0 : index
    %c0_20 = arith.constant 0 : index
    %48 = vector.load %arg2[%c2, %c0_19, %c0_20] : memref<3x32x32xbf16, #tpu.memory_space<vmem>>, vector<1x32x32xbf16>
    %49 = vector.shape_cast %48 : vector<1x32x32xbf16> to vector<32x32xbf16>
    %cst_21 = arith.constant dense<0.000000e+00> : vector<16x32xf32>
    %50 = tpu.matmul %47, %49, %cst_21 {dimension_numbers = #tpu.dot_dimension_numbers<[1], [0], [0], [1], [0, 0, 1, 1], [], []>} : vector<16x32xbf16>, vector<32x32xbf16>, vector<16x32xf32> -> vector<16x32xf32>
    %51 = arith.addf %46, %50 : vector<16x32xf32>
    %cst_22 = arith.constant 0.000000e+00 : f32
    %52 = vector.broadcast %cst_22 : f32 to vector<16x32xf32>
    %53 = arith.maximumf %51, %52 : vector<16x32xf32>
    %cst_23 = arith.constant 0.000000e+00 : f32
    %54 = vector.broadcast %cst_23 : f32 to vector<16x32xf32>
    %c0_24 = arith.constant 0 : index
    %c0_25 = arith.constant 0 : index
    %55 = vector.load %arg5[%c0_24, %c0_25] : memref<1x32xf32, #tpu.memory_space<vmem>>, vector<1x32xf32>
    %56 = vector.broadcast %55 : vector<1x32xf32> to vector<16x32xf32>
    %57 = arith.addf %54, %56 : vector<16x32xf32>
    %c2_i32_26 = arith.constant 2 : i32
    %58 = tpu.dynamic_rotate %53 by %c2_i32_26 dim 0 : vector<16x32xf32>, i32 -> vector<16x32xf32>
    %c2_i32_27 = arith.constant 2 : i32
    %59 = vector.broadcast %c2_i32_27 : i32 to vector<16x1xi32>
    %60 = arith.cmpi sge, %18, %59 : vector<16x1xi32>
    %cst_28 = arith.constant 0.000000e+00 : f32
    %61 = vector.shape_cast %60 : vector<16x1xi1> to vector<16x1xi1>
    %62 = vector.broadcast %61 : vector<16x1xi1> to vector<16x32xi1>
    %63 = vector.broadcast %cst_28 : f32 to vector<16x32xf32>
    %64 = arith.select %62, %58, %63 : vector<16x32xi1>, vector<16x32xf32>
    %65 = arith.truncf %64 : vector<16x32xf32> to vector<16x32xbf16>
    %c0_29 = arith.constant 0 : index
    %c0_30 = arith.constant 0 : index
    %c0_31 = arith.constant 0 : index
    %66 = vector.load %arg4[%c0_29, %c0_30, %c0_31] : memref<3x32x32xbf16, #tpu.memory_space<vmem>>, vector<1x32x32xbf16>
    %67 = vector.shape_cast %66 : vector<1x32x32xbf16> to vector<32x32xbf16>
    %cst_32 = arith.constant dense<0.000000e+00> : vector<16x32xf32>
    %68 = tpu.matmul %65, %67, %cst_32 {dimension_numbers = #tpu.dot_dimension_numbers<[1], [0], [0], [1], [0, 0, 1, 1], [], []>} : vector<16x32xbf16>, vector<32x32xbf16>, vector<16x32xf32> -> vector<16x32xf32>
    %69 = arith.addf %57, %68 : vector<16x32xf32>
    %c1_i32_33 = arith.constant 1 : i32
    %70 = tpu.dynamic_rotate %53 by %c1_i32_33 dim 0 : vector<16x32xf32>, i32 -> vector<16x32xf32>
    %c1_i32_34 = arith.constant 1 : i32
    %71 = vector.broadcast %c1_i32_34 : i32 to vector<16x1xi32>
    %72 = arith.cmpi sge, %18, %71 : vector<16x1xi32>
    %cst_35 = arith.constant 0.000000e+00 : f32
    %73 = vector.shape_cast %72 : vector<16x1xi1> to vector<16x1xi1>
    %74 = vector.broadcast %73 : vector<16x1xi1> to vector<16x32xi1>
    %75 = vector.broadcast %cst_35 : f32 to vector<16x32xf32>
    %76 = arith.select %74, %70, %75 : vector<16x32xi1>, vector<16x32xf32>
    %77 = arith.truncf %76 : vector<16x32xf32> to vector<16x32xbf16>
    %c1_36 = arith.constant 1 : index
    %c0_37 = arith.constant 0 : index
    %c0_38 = arith.constant 0 : index
    %78 = vector.load %arg4[%c1_36, %c0_37, %c0_38] : memref<3x32x32xbf16, #tpu.memory_space<vmem>>, vector<1x32x32xbf16>
    %79 = vector.shape_cast %78 : vector<1x32x32xbf16> to vector<32x32xbf16>
    %cst_39 = arith.constant dense<0.000000e+00> : vector<16x32xf32>
    %80 = tpu.matmul %77, %79, %cst_39 {dimension_numbers = #tpu.dot_dimension_numbers<[1], [0], [0], [1], [0, 0, 1, 1], [], []>} : vector<16x32xbf16>, vector<32x32xbf16>, vector<16x32xf32> -> vector<16x32xf32>
    %81 = arith.addf %69, %80 : vector<16x32xf32>
    %82 = arith.truncf %53 : vector<16x32xf32> to vector<16x32xbf16>
    %c2_40 = arith.constant 2 : index
    %c0_41 = arith.constant 0 : index
    %c0_42 = arith.constant 0 : index
    %83 = vector.load %arg4[%c2_40, %c0_41, %c0_42] : memref<3x32x32xbf16, #tpu.memory_space<vmem>>, vector<1x32x32xbf16>
    %84 = vector.shape_cast %83 : vector<1x32x32xbf16> to vector<32x32xbf16>
    %cst_43 = arith.constant dense<0.000000e+00> : vector<16x32xf32>
    %85 = tpu.matmul %82, %84, %cst_43 {dimension_numbers = #tpu.dot_dimension_numbers<[1], [0], [0], [1], [0, 0, 1, 1], [], []>} : vector<16x32xbf16>, vector<32x32xbf16>, vector<16x32xf32> -> vector<16x32xf32>
    %86 = arith.addf %81, %85 : vector<16x32xf32>
    %cst_44 = arith.constant 0.000000e+00 : f32
    %87 = vector.broadcast %cst_44 : f32 to vector<16x32xf32>
    %88 = arith.maximumf %86, %87 : vector<16x32xf32>
    %89 = arith.addf %88, %1 : vector<16x32xf32>
    %cst_45 = arith.constant 0.000000e+00 : f32
    %90 = vector.broadcast %cst_45 : f32 to vector<16x32xf32>
    %91 = arith.maximumf %89, %90 : vector<16x32xf32>
    %c0_46 = arith.constant 0 : index
    %c0_47 = arith.constant 0 : index
    %92 = vector.load %arg6[%c0_46, %c0_47] : memref<16x32xf32, #tpu.memory_space<vmem>>, vector<16x32xf32>
    tpu.vector_store %arg6[%c0_46, %c0_47], %91 {strides = array<i32>} : memref<16x32xf32, #tpu.memory_space<vmem>>, vector<16x32xf32>,
    return
  }
  func.func @transform_0(%arg0: i32) -> (i32, i32, i32) {
    %c0_i32 = arith.constant 0 : i32
    %c0_i32_0 = arith.constant 0 : i32
    %c0_i32_1 = arith.constant 0 : i32
    %c0_i32_2 = arith.constant 0 : i32
    return %c0_i32, %c0_i32_0, %c0_i32_1 : i32, i32, i32
  }
  func.func @transform_1(%arg0: i32) -> (i32, i32, i32) {
    %c0_i32 = arith.constant 0 : i32
    %c0_i32_0 = arith.constant 0 : i32
    %c0_i32_1 = arith.constant 0 : i32
    %c0_i32_2 = arith.constant 0 : i32
    return %c0_i32, %c0_i32_0, %c0_i32_1 : i32, i32, i32
  }
  func.func @transform_2(%arg0: i32) -> (i32, i32) {
    %c0_i32 = arith.constant 0 : i32
    %c0_i32_0 = arith.constant 0 : i32
    %c0_i32_1 = arith.constant 0 : i32
    return %c0_i32, %c0_i32_0 : i32, i32
  }
  func.func @transform_3(%arg0: i32) -> (i32, i32, i32) {
    %c0_i32 = arith.constant 0 : i32
    %c0_i32_0 = arith.constant 0 : i32
    %c0_i32_1 = arith.constant 0 : i32
    %c0_i32_2 = arith.constant 0 : i32
    return %c0_i32, %c0_i32_0, %c0_i32_1 : i32, i32, i32
  }
  func.func @transform_4(%arg0: i32) -> (i32, i32) {
    %c0_i32 = arith.constant 0 : i32
    %c0_i32_0 = arith.constant 0 : i32
    %c0_i32_1 = arith.constant 0 : i32
    return %c0_i32, %c0_i32_0 : i32, i32
  }
  func.func @transform_5(%arg0: i32) -> (i32, i32) {
    %c0_i32 = arith.constant 0 : i32
    %c0_i32_0 = arith.constant 0 : i32
    %c0_i32_1 = arith.constant 0 : i32
    return %c0_i32, %c0_i32_0 : i32, i32
  }
}

module attributes {stable_mosaic.version = 11 : i64} {
  func.func @_tcn_block_kernel(%arg0: i32, %arg1: memref<2x8x32xf32, #tpu.memory_space<vmem>>, %arg2: memref<3x32x32xbf16, #tpu.memory_space<vmem>>, %arg3: memref<1x32xf32, #tpu.memory_space<vmem>>, %arg4: memref<3x32x32xbf16, #tpu.memory_space<vmem>>, %arg5: memref<1x32xf32, #tpu.memory_space<vmem>>, %arg6: memref<16x32xf32, #tpu.memory_space<vmem>>) attributes {dimension_semantics = [#tpu.dimension_semantics<arbitrary>], iteration_bounds = array<i64: 1>, scalar_prefetch = 0 : i64, scratch_operands = 0 : i64, tpu.core_type = #tpu.core_type<tc>, window_params = [{pipeline_mode = #tpu.pipeline_mode<synchronous>, transform_indices = @transform_0, window_bounds = array<i64: 2, 8, 32>}, {pipeline_mode = #tpu.pipeline_mode<synchronous>, transform_indices = @transform_1, window_bounds = array<i64: 3, 32, 32>}, {pipeline_mode = #tpu.pipeline_mode<synchronous>, transform_indices = @transform_2, window_bounds = array<i64: 1, 32>}, {pipeline_mode = #tpu.pipeline_mode<synchronous>, transform_indices = @transform_3, window_bounds = array<i64: 3, 32, 32>}, {pipeline_mode = #tpu.pipeline_mode<synchronous>, transform_indices = @transform_4, window_bounds = array<i64: 1, 32>}, {pipeline_mode = #tpu.pipeline_mode<synchronous>, transform_indices = @transform_5, window_bounds = array<i64: 16, 32>}]} {
    %c0 = arith.constant 0 : index
    %c0_0 = arith.constant 0 : index
    %c0_1 = arith.constant 0 : index
    %0 = vector.load %arg1[%c0, %c0_0, %c0_1] : memref<2x8x32xf32, #tpu.memory_space<vmem>>, vector<2x8x32xf32>
    %1 = vector.shape_cast %0 : vector<2x8x32xf32> to vector<16x32xf32>
    %2 = tpu.iota {dimensions = array<i32: 0>} : vector<16x1xi32>
    %c8_i32 = arith.constant 8 : i32
    %c0_i32 = arith.constant 0 : i32
    %3 = arith.cmpi eq, %c8_i32, %c0_i32 : i32
    %c1_i32 = arith.constant 1 : i32
    %4 = arith.select %3, %c1_i32, %c8_i32 : i32
    %5 = vector.broadcast %4 : i32 to vector<16x1xi32>
    %6 = arith.remsi %2, %5 : vector<16x1xi32>
    %c0_i32_2 = arith.constant 0 : i32
    %7 = vector.broadcast %c0_i32_2 : i32 to vector<16x1xi32>
    %8 = arith.cmpi ne, %6, %7 : vector<16x1xi32>
    %c0_i32_3 = arith.constant 0 : i32
    %9 = vector.broadcast %c0_i32_3 : i32 to vector<16x1xi32>
    %10 = arith.cmpi slt, %6, %9 : vector<16x1xi32>
    %c0_i32_4 = arith.constant 0 : i32
    %11 = arith.cmpi slt, %4, %c0_i32_4 : i32
    %12 = vector.broadcast %11 : i1 to vector<16x1xi1>
    %13 = vector.broadcast %12 : vector<16x1xi1> to vector<16x1xi1>
    %14 = arith.xori %10, %13 : vector<16x1xi1>
    %15 = arith.andi %14, %8 : vector<16x1xi1>
    %16 = vector.broadcast %4 : i32 to vector<16x1xi32>
    %17 = arith.addi %6, %16 : vector<16x1xi32>
    %18 = arith.select %15, %17, %6 : vector<16x1xi1>, vector<16x1xi32>
    %cst = arith.constant 0.000000e+00 : f32
    %19 = vector.broadcast %cst : f32 to vector<16x32xf32>
    %c0_5 = arith.constant 0 : index
    %c0_6 = arith.constant 0 : index
    %20 = vector.load %arg3[%c0_5, %c0_6] : memref<1x32xf32, #tpu.memory_space<vmem>>, vector<1x32xf32>
    %21 = vector.broadcast %20 : vector<1x32xf32> to vector<16x32xf32>
    %22 = arith.addf %19, %21 : vector<16x32xf32>
    %c4_i32 = arith.constant 4 : i32
    %23 = tpu.dynamic_rotate %1 by %c4_i32 dim 0 : vector<16x32xf32>, i32 -> vector<16x32xf32>
    %c4_i32_7 = arith.constant 4 : i32
    %24 = vector.broadcast %c4_i32_7 : i32 to vector<16x1xi32>
    %25 = arith.cmpi sge, %18, %24 : vector<16x1xi32>
    %cst_8 = arith.constant 0.000000e+00 : f32
    %26 = vector.shape_cast %25 : vector<16x1xi1> to vector<16x1xi1>
    %27 = vector.broadcast %26 : vector<16x1xi1> to vector<16x32xi1>
    %28 = vector.broadcast %cst_8 : f32 to vector<16x32xf32>
    %29 = arith.select %27, %23, %28 : vector<16x32xi1>, vector<16x32xf32>
    %30 = arith.truncf %29 : vector<16x32xf32> to vector<16x32xbf16>
    %c0_9 = arith.constant 0 : index
    %c0_10 = arith.constant 0 : index
    %c0_11 = arith.constant 0 : index
    %31 = vector.load %arg2[%c0_9, %c0_10, %c0_11] : memref<3x32x32xbf16, #tpu.memory_space<vmem>>, vector<1x32x32xbf16>
    %32 = vector.shape_cast %31 : vector<1x32x32xbf16> to vector<32x32xbf16>
    %cst_12 = arith.constant dense<0.000000e+00> : vector<16x32xf32>
    %33 = tpu.matmul %30, %32, %cst_12 {dimension_numbers = #tpu.dot_dimension_numbers<[1], [0], [0], [1], [0, 0, 1, 1], [], []>} : vector<16x32xbf16>, vector<32x32xbf16>, vector<16x32xf32> -> vector<16x32xf32>
    %34 = arith.addf %22, %33 : vector<16x32xf32>
    %c2_i32 = arith.constant 2 : i32
    %35 = tpu.dynamic_rotate %1 by %c2_i32 dim 0 : vector<16x32xf32>, i32 -> vector<16x32xf32>
    %c2_i32_13 = arith.constant 2 : i32
    %36 = vector.broadcast %c2_i32_13 : i32 to vector<16x1xi32>
    %37 = arith.cmpi sge, %18, %36 : vector<16x1xi32>
    %cst_14 = arith.constant 0.000000e+00 : f32
    %38 = vector.shape_cast %37 : vector<16x1xi1> to vector<16x1xi1>
    %39 = vector.broadcast %38 : vector<16x1xi1> to vector<16x32xi1>
    %40 = vector.broadcast %cst_14 : f32 to vector<16x32xf32>
    %41 = arith.select %39, %35, %40 : vector<16x32xi1>, vector<16x32xf32>
    %42 = arith.truncf %41 : vector<16x32xf32> to vector<16x32xbf16>
    %c1 = arith.constant 1 : index
    %c0_15 = arith.constant 0 : index
    %c0_16 = arith.constant 0 : index
    %43 = vector.load %arg2[%c1, %c0_15, %c0_16] : memref<3x32x32xbf16, #tpu.memory_space<vmem>>, vector<1x32x32xbf16>
    %44 = vector.shape_cast %43 : vector<1x32x32xbf16> to vector<32x32xbf16>
    %cst_17 = arith.constant dense<0.000000e+00> : vector<16x32xf32>
    %45 = tpu.matmul %42, %44, %cst_17 {dimension_numbers = #tpu.dot_dimension_numbers<[1], [0], [0], [1], [0, 0, 1, 1], [], []>} : vector<16x32xbf16>, vector<32x32xbf16>, vector<16x32xf32> -> vector<16x32xf32>
    %46 = arith.addf %34, %45 : vector<16x32xf32>
    %47 = arith.truncf %1 : vector<16x32xf32> to vector<16x32xbf16>
    %c2 = arith.constant 2 : index
    %c0_18 = arith.constant 0 : index
    %c0_19 = arith.constant 0 : index
    %48 = vector.load %arg2[%c2, %c0_18, %c0_19] : memref<3x32x32xbf16, #tpu.memory_space<vmem>>, vector<1x32x32xbf16>
    %49 = vector.shape_cast %48 : vector<1x32x32xbf16> to vector<32x32xbf16>
    %cst_20 = arith.constant dense<0.000000e+00> : vector<16x32xf32>
    %50 = tpu.matmul %47, %49, %cst_20 {dimension_numbers = #tpu.dot_dimension_numbers<[1], [0], [0], [1], [0, 0, 1, 1], [], []>} : vector<16x32xbf16>, vector<32x32xbf16>, vector<16x32xf32> -> vector<16x32xf32>
    %51 = arith.addf %46, %50 : vector<16x32xf32>
    %cst_21 = arith.constant 0.000000e+00 : f32
    %52 = vector.broadcast %cst_21 : f32 to vector<16x32xf32>
    %53 = arith.maximumf %51, %52 : vector<16x32xf32>
    %cst_22 = arith.constant 0.000000e+00 : f32
    %54 = vector.broadcast %cst_22 : f32 to vector<16x32xf32>
    %c0_23 = arith.constant 0 : index
    %c0_24 = arith.constant 0 : index
    %55 = vector.load %arg5[%c0_23, %c0_24] : memref<1x32xf32, #tpu.memory_space<vmem>>, vector<1x32xf32>
    %56 = vector.broadcast %55 : vector<1x32xf32> to vector<16x32xf32>
    %57 = arith.addf %54, %56 : vector<16x32xf32>
    %c4_i32_25 = arith.constant 4 : i32
    %58 = tpu.dynamic_rotate %53 by %c4_i32_25 dim 0 : vector<16x32xf32>, i32 -> vector<16x32xf32>
    %c4_i32_26 = arith.constant 4 : i32
    %59 = vector.broadcast %c4_i32_26 : i32 to vector<16x1xi32>
    %60 = arith.cmpi sge, %18, %59 : vector<16x1xi32>
    %cst_27 = arith.constant 0.000000e+00 : f32
    %61 = vector.shape_cast %60 : vector<16x1xi1> to vector<16x1xi1>
    %62 = vector.broadcast %61 : vector<16x1xi1> to vector<16x32xi1>
    %63 = vector.broadcast %cst_27 : f32 to vector<16x32xf32>
    %64 = arith.select %62, %58, %63 : vector<16x32xi1>, vector<16x32xf32>
    %65 = arith.truncf %64 : vector<16x32xf32> to vector<16x32xbf16>
    %c0_28 = arith.constant 0 : index
    %c0_29 = arith.constant 0 : index
    %c0_30 = arith.constant 0 : index
    %66 = vector.load %arg4[%c0_28, %c0_29, %c0_30] : memref<3x32x32xbf16, #tpu.memory_space<vmem>>, vector<1x32x32xbf16>
    %67 = vector.shape_cast %66 : vector<1x32x32xbf16> to vector<32x32xbf16>
    %cst_31 = arith.constant dense<0.000000e+00> : vector<16x32xf32>
    %68 = tpu.matmul %65, %67, %cst_31 {dimension_numbers = #tpu.dot_dimension_numbers<[1], [0], [0], [1], [0, 0, 1, 1], [], []>} : vector<16x32xbf16>, vector<32x32xbf16>, vector<16x32xf32> -> vector<16x32xf32>
    %69 = arith.addf %57, %68 : vector<16x32xf32>
    %c2_i32_32 = arith.constant 2 : i32
    %70 = tpu.dynamic_rotate %53 by %c2_i32_32 dim 0 : vector<16x32xf32>, i32 -> vector<16x32xf32>
    %c2_i32_33 = arith.constant 2 : i32
    %71 = vector.broadcast %c2_i32_33 : i32 to vector<16x1xi32>
    %72 = arith.cmpi sge, %18, %71 : vector<16x1xi32>
    %cst_34 = arith.constant 0.000000e+00 : f32
    %73 = vector.shape_cast %72 : vector<16x1xi1> to vector<16x1xi1>
    %74 = vector.broadcast %73 : vector<16x1xi1> to vector<16x32xi1>
    %75 = vector.broadcast %cst_34 : f32 to vector<16x32xf32>
    %76 = arith.select %74, %70, %75 : vector<16x32xi1>, vector<16x32xf32>
    %77 = arith.truncf %76 : vector<16x32xf32> to vector<16x32xbf16>
    %c1_35 = arith.constant 1 : index
    %c0_36 = arith.constant 0 : index
    %c0_37 = arith.constant 0 : index
    %78 = vector.load %arg4[%c1_35, %c0_36, %c0_37] : memref<3x32x32xbf16, #tpu.memory_space<vmem>>, vector<1x32x32xbf16>
    %79 = vector.shape_cast %78 : vector<1x32x32xbf16> to vector<32x32xbf16>
    %cst_38 = arith.constant dense<0.000000e+00> : vector<16x32xf32>
    %80 = tpu.matmul %77, %79, %cst_38 {dimension_numbers = #tpu.dot_dimension_numbers<[1], [0], [0], [1], [0, 0, 1, 1], [], []>} : vector<16x32xbf16>, vector<32x32xbf16>, vector<16x32xf32> -> vector<16x32xf32>
    %81 = arith.addf %69, %80 : vector<16x32xf32>
    %82 = arith.truncf %53 : vector<16x32xf32> to vector<16x32xbf16>
    %c2_39 = arith.constant 2 : index
    %c0_40 = arith.constant 0 : index
    %c0_41 = arith.constant 0 : index
    %83 = vector.load %arg4[%c2_39, %c0_40, %c0_41] : memref<3x32x32xbf16, #tpu.memory_space<vmem>>, vector<1x32x32xbf16>
    %84 = vector.shape_cast %83 : vector<1x32x32xbf16> to vector<32x32xbf16>
    %cst_42 = arith.constant dense<0.000000e+00> : vector<16x32xf32>
    %85 = tpu.matmul %82, %84, %cst_42 {dimension_numbers = #tpu.dot_dimension_numbers<[1], [0], [0], [1], [0, 0, 1, 1], [], []>} : vector<16x32xbf16>, vector<32x32xbf16>, vector<16x32xf32> -> vector<16x32xf32>
    %86 = arith.addf %81, %85 : vector<16x32xf32>
    %cst_43 = arith.constant 0.000000e+00 : f32
    %87 = vector.broadcast %cst_43 : f32 to vector<16x32xf32>
    %88 = arith.maximumf %86, %87 : vector<16x32xf32>
    %89 = arith.addf %88, %1 : vector<16x32xf32>
    %cst_44 = arith.constant 0.000000e+00 : f32
    %90 = vector.broadcast %cst_44 : f32 to vector<16x32xf32>
    %91 = arith.maximumf %89, %90 : vector<16x32xf32>
    %c0_45 = arith.constant 0 : index
    %c0_46 = arith.constant 0 : index
    %92 = vector.load %arg6[%c0_45, %c0_46] : memref<16x32xf32, #tpu.memory_space<vmem>>, vector<16x32xf32>
    tpu.vector_store %arg6[%c0_45, %c0_46], %91 {strides = array<i32>} : memref<16x32xf32, #tpu.memory_space<vmem>>, vector<16x32xf32>,
    return
  }
  func.func @transform_0(%arg0: i32) -> (i32, i32, i32) {
    %c0_i32 = arith.constant 0 : i32
    %c0_i32_0 = arith.constant 0 : i32
    %c0_i32_1 = arith.constant 0 : i32
    %c0_i32_2 = arith.constant 0 : i32
    return %c0_i32, %c0_i32_0, %c0_i32_1 : i32, i32, i32
  }
  func.func @transform_1(%arg0: i32) -> (i32, i32, i32) {
    %c0_i32 = arith.constant 0 : i32
    %c0_i32_0 = arith.constant 0 : i32
    %c0_i32_1 = arith.constant 0 : i32
    %c0_i32_2 = arith.constant 0 : i32
    return %c0_i32, %c0_i32_0, %c0_i32_1 : i32, i32, i32
  }
  func.func @transform_2(%arg0: i32) -> (i32, i32) {
    %c0_i32 = arith.constant 0 : i32
    %c0_i32_0 = arith.constant 0 : i32
    %c0_i32_1 = arith.constant 0 : i32
    return %c0_i32, %c0_i32_0 : i32, i32
  }
  func.func @transform_3(%arg0: i32) -> (i32, i32, i32) {
    %c0_i32 = arith.constant 0 : i32
    %c0_i32_0 = arith.constant 0 : i32
    %c0_i32_1 = arith.constant 0 : i32
    %c0_i32_2 = arith.constant 0 : i32
    return %c0_i32, %c0_i32_0, %c0_i32_1 : i32, i32, i32
  }
  func.func @transform_4(%arg0: i32) -> (i32, i32) {
    %c0_i32 = arith.constant 0 : i32
    %c0_i32_0 = arith.constant 0 : i32
    %c0_i32_1 = arith.constant 0 : i32
    return %c0_i32, %c0_i32_0 : i32, i32
  }
  func.func @transform_5(%arg0: i32) -> (i32, i32) {
    %c0_i32 = arith.constant 0 : i32
    %c0_i32_0 = arith.constant 0 : i32
    %c0_i32_1 = arith.constant 0 : i32
    return %c0_i32, %c0_i32_0 : i32, i32
  }
}

module attributes {stable_mosaic.version = 11 : i64} {
  func.func @_txl_kernel(%arg0: i32, %arg1: i32, %arg2: memref<1x1x8x32xf32, #tpu.memory_space<vmem>>, %arg3: memref<1x1x8x32xf32, #tpu.memory_space<vmem>>, %arg4: memref<1x32x32xbf16, #tpu.memory_space<vmem>>, %arg5: memref<1x1x32xf32, #tpu.memory_space<vmem>>, %arg6: memref<1x32x32xbf16, #tpu.memory_space<vmem>>, %arg7: memref<1x1x32xf32, #tpu.memory_space<vmem>>, %arg8: memref<1x4x8x32xbf16, #tpu.memory_space<vmem>>, %arg9: memref<1x1x32xf32, #tpu.memory_space<vmem>>, %arg10: memref<1x1x32xf32, #tpu.memory_space<vmem>>, %arg11: memref<1x1x32xf32, #tpu.memory_space<vmem>>, %arg12: memref<1x32x64xbf16, #tpu.memory_space<vmem>>, %arg13: memref<1x1x64xf32, #tpu.memory_space<vmem>>, %arg14: memref<1x64x32xbf16, #tpu.memory_space<vmem>>, %arg15: memref<1x1x32xf32, #tpu.memory_space<vmem>>, %arg16: memref<1x1x32xf32, #tpu.memory_space<vmem>>, %arg17: memref<1x1x32xf32, #tpu.memory_space<vmem>>, %arg18: memref<1x1x8x32xf32, #tpu.memory_space<vmem>>) attributes {dimension_semantics = [#tpu.dimension_semantics<parallel>, #tpu.dimension_semantics<parallel>], iteration_bounds = array<i64: 2, 2>, scalar_prefetch = 0 : i64, scratch_operands = 0 : i64, tpu.core_type = #tpu.core_type<tc>, window_params = [{transform_indices = @transform_0, window_bounds = array<i64: 1, 1, 8, 32>}, {transform_indices = @transform_1, window_bounds = array<i64: 1, 1, 8, 32>}, {transform_indices = @transform_2, window_bounds = array<i64: 1, 32, 32>}, {transform_indices = @transform_3, window_bounds = array<i64: 1, 1, 32>}, {transform_indices = @transform_4, window_bounds = array<i64: 1, 32, 32>}, {transform_indices = @transform_5, window_bounds = array<i64: 1, 1, 32>}, {transform_indices = @transform_6, window_bounds = array<i64: 1, 4, 8, 32>}, {transform_indices = @transform_7, window_bounds = array<i64: 1, 1, 32>}, {transform_indices = @transform_8, window_bounds = array<i64: 1, 1, 32>}, {transform_indices = @transform_9, window_bounds = array<i64: 1, 1, 32>}, {transform_indices = @transform_10, window_bounds = array<i64: 1, 32, 64>}, {transform_indices = @transform_11, window_bounds = array<i64: 1, 1, 64>}, {transform_indices = @transform_12, window_bounds = array<i64: 1, 64, 32>}, {transform_indices = @transform_13, window_bounds = array<i64: 1, 1, 32>}, {transform_indices = @transform_14, window_bounds = array<i64: 1, 1, 32>}, {transform_indices = @transform_15, window_bounds = array<i64: 1, 1, 32>}, {transform_indices = @transform_16, window_bounds = array<i64: 1, 1, 8, 32>}]} {
    %c0 = arith.constant 0 : index
    %c0_0 = arith.constant 0 : index
    %c0_1 = arith.constant 0 : index
    %c0_2 = arith.constant 0 : index
    %0 = vector.load %arg2[%c0, %c0_0, %c0_1, %c0_2] : memref<1x1x8x32xf32, #tpu.memory_space<vmem>>, vector<1x1x8x32xf32>
    %1 = vector.shape_cast %0 : vector<1x1x8x32xf32> to vector<8x32xf32>
    %c0_3 = arith.constant 0 : index
    %c0_4 = arith.constant 0 : index
    %c0_5 = arith.constant 0 : index
    %c0_6 = arith.constant 0 : index
    %2 = vector.load %arg3[%c0_3, %c0_4, %c0_5, %c0_6] : memref<1x1x8x32xf32, #tpu.memory_space<vmem>>, vector<1x1x8x32xf32>
    %3 = vector.shape_cast %2 : vector<1x1x8x32xf32> to vector<8x32xf32>
    %4 = arith.truncf %1 : vector<8x32xf32> to vector<8x32xbf16>
    %c0_7 = arith.constant 0 : index
    %c0_8 = arith.constant 0 : index
    %c0_9 = arith.constant 0 : index
    %5 = vector.load %arg4[%c0_7, %c0_8, %c0_9] : memref<1x32x32xbf16, #tpu.memory_space<vmem>>, vector<1x32x32xbf16>
    %6 = vector.shape_cast %5 : vector<1x32x32xbf16> to vector<32x32xbf16>
    %cst = arith.constant dense<0.000000e+00> : vector<8x32xf32>
    %7 = tpu.matmul %4, %6, %cst {dimension_numbers = #tpu.dot_dimension_numbers<[1], [0], [0], [1], [0, 0, 1, 1], [], []>} : vector<8x32xbf16>, vector<32x32xbf16>, vector<8x32xf32> -> vector<8x32xf32>
    %c0_10 = arith.constant 0 : index
    %c0_11 = arith.constant 0 : index
    %c0_12 = arith.constant 0 : index
    %8 = vector.load %arg5[%c0_10, %c0_11, %c0_12] : memref<1x1x32xf32, #tpu.memory_space<vmem>>, vector<1x1x32xf32>
    %9 = vector.shape_cast %8 : vector<1x1x32xf32> to vector<1x32xf32>
    %10 = vector.broadcast %9 : vector<1x32xf32> to vector<8x32xf32>
    %11 = arith.addf %7, %10 : vector<8x32xf32>
    %12 = arith.truncf %3 : vector<8x32xf32> to vector<8x32xbf16>
    %c0_13 = arith.constant 0 : index
    %c0_14 = arith.constant 0 : index
    %c0_15 = arith.constant 0 : index
    %13 = vector.load %arg6[%c0_13, %c0_14, %c0_15] : memref<1x32x32xbf16, #tpu.memory_space<vmem>>, vector<1x32x32xbf16>
    %14 = vector.shape_cast %13 : vector<1x32x32xbf16> to vector<32x32xbf16>
    %cst_16 = arith.constant dense<0.000000e+00> : vector<8x32xf32>
    %15 = tpu.matmul %12, %14, %cst_16 {dimension_numbers = #tpu.dot_dimension_numbers<[1], [0], [0], [1], [0, 0, 1, 1], [], []>} : vector<8x32xbf16>, vector<32x32xbf16>, vector<8x32xf32> -> vector<8x32xf32>
    %c0_17 = arith.constant 0 : index
    %c0_18 = arith.constant 0 : index
    %c0_19 = arith.constant 0 : index
    %16 = vector.load %arg7[%c0_17, %c0_18, %c0_19] : memref<1x1x32xf32, #tpu.memory_space<vmem>>, vector<1x1x32xf32>
    %17 = vector.shape_cast %16 : vector<1x1x32xf32> to vector<1x32xf32>
    %18 = vector.broadcast %17 : vector<1x32xf32> to vector<8x32xf32>
    %19 = arith.addf %15, %18 : vector<8x32xf32>
    %20 = tpu.transpose %11, [1, 0] : vector<8x32xf32> -> vector<32x8xf32>
    %21 = vector.shape_cast %20 : vector<32x8xf32> to vector<4x8x8xf32>
    %22 = tpu.transpose %21, [0, 2, 1] : vector<4x8x8xf32> -> vector<4x8x8xf32>
    %23 = arith.truncf %22 : vector<4x8x8xf32> to vector<4x8x8xbf16>
    %24 = tpu.transpose %19, [1, 0] : vector<8x32xf32> -> vector<32x8xf32>
    %25 = vector.shape_cast %24 : vector<32x8xf32> to vector<4x8x8xf32>
    %26 = tpu.transpose %25, [0, 2, 1] : vector<4x8x8xf32> -> vector<4x8x8xf32>
    %27 = arith.truncf %26 : vector<4x8x8xf32> to vector<4x8x8xbf16>
    %28 = tpu.iota {dimensions = array<i32: 0>} : vector<8x8xi32>
    %29 = tpu.iota {dimensions = array<i32: 1>} : vector<8x8xi32>
    %30 = arith.cmpi sle, %29, %28 : vector<8x8xi32>
    %cst_20 = arith.constant 0.000000e+00 : f32
    %cst_21 = arith.constant -1.000000e+30 : f32
    %31 = vector.broadcast %cst_20 : f32 to vector<8x8xf32>
    %32 = vector.broadcast %cst_21 : f32 to vector<8x8xf32>
    %33 = arith.select %30, %31, %32 : vector<8x8xi1>, vector<8x8xf32>
    "tpu.trace_start"() <{level = 10 : i32, message = "hqd,hkd->hqk"}> : () -> ()
    %cst_22 = arith.constant dense<0.000000e+00> : vector<4x8x8xf32>
    %34 = tpu.matmul %23, %23, %cst_22 {dimension_numbers = #tpu.dot_dimension_numbers<[2], [2], [1], [1], [0, 0, 0, 1, 1, 1], [0], [0]>} : vector<4x8x8xbf16>, vector<4x8x8xbf16>, vector<4x8x8xf32> -> vector<4x8x8xf32>
    "tpu.trace_stop"() : () -> ()
    %cst_23 = arith.constant 0.353553385 : f32
    %35 = vector.broadcast %cst_23 : f32 to vector<4x8x8xf32>
    %36 = arith.mulf %34, %35 : vector<4x8x8xf32>
    %37 = vector.shape_cast %33 : vector<8x8xf32> to vector<1x8x8xf32>
    %38 = vector.broadcast %37 : vector<1x8x8xf32> to vector<4x8x8xf32>
    %39 = arith.addf %36, %38 : vector<4x8x8xf32>
    %cst_24 = arith.constant dense<0xFF800000> : vector<4x8xf32>
    %40 = vector.multi_reduction <maximumf>, %39, %cst_24 [2] : vector<4x8x8xf32> to vector<4x8xf32>
    %41 = vector.shape_cast %40 : vector<4x8xf32> to vector<4x8x1xf32>
    %42 = vector.broadcast %41 : vector<4x8x1xf32> to vector<4x8x8xf32>
    %43 = arith.subf %39, %42 : vector<4x8x8xf32>
    %44 = math.exp %43 : vector<4x8x8xf32>
    %cst_25 = arith.constant dense<0.000000e+00> : vector<4x8xf32>
    %45 = vector.multi_reduction <add>, %44, %cst_25 [2] : vector<4x8x8xf32> to vector<4x8xf32>
    %46 = vector.shape_cast %45 : vector<4x8xf32> to vector<4x8x1xf32>
    %47 = tpu.reciprocal %46 {approx = true} : vector<4x8x1xf32> -> vector<4x8x1xf32>
    %48 = vector.broadcast %47 : vector<4x8x1xf32> to vector<4x8x8xf32>
    %49 = arith.mulf %44, %48 : vector<4x8x8xf32>
    %50 = arith.truncf %49 : vector<4x8x8xf32> to vector<4x8x8xbf16>
    "tpu.trace_start"() <{level = 10 : i32, message = "hqk,hkd->hqd"}> : () -> ()
    %cst_26 = arith.constant dense<0.000000e+00> : vector<4x8x8xf32>
    %51 = tpu.matmul %50, %27, %cst_26 {dimension_numbers = #tpu.dot_dimension_numbers<[2], [1], [1], [2], [0, 0, 0, 1, 1, 2], [0], [0]>} : vector<4x8x8xbf16>, vector<4x8x8xbf16>, vector<4x8x8xf32> -> vector<4x8x8xf32>
    "tpu.trace_stop"() : () -> ()
    %52 = arith.truncf %51 : vector<4x8x8xf32> to vector<4x8x8xbf16>
    %c0_27 = arith.constant 0 : index
    %c0_28 = arith.constant 0 : index
    %c0_29 = arith.constant 0 : index
    %c0_30 = arith.constant 0 : index
    %53 = vector.load %arg8[%c0_27, %c0_28, %c0_29, %c0_30] : memref<1x4x8x32xbf16, #tpu.memory_space<vmem>>, vector<1x4x8x32xbf16>
    %54 = vector.shape_cast %53 : vector<1x4x8x32xbf16> to vector<4x8x32xbf16>
    "tpu.trace_start"() <{level = 10 : i32, message = "hqd,hde->hqe"}> : () -> ()
    %cst_31 = arith.constant dense<0.000000e+00> : vector<4x8x32xf32>
    %55 = tpu.matmul %52, %54, %cst_31 {dimension_numbers = #tpu.dot_dimension_numbers<[2], [1], [1], [2], [0, 0, 0, 1, 1, 2], [0], [0]>} : vector<4x8x8xbf16>, vector<4x8x32xbf16>, vector<4x8x32xf32> -> vector<4x8x32xf32>
    "tpu.trace_stop"() : () -> ()
    %c0_32 = arith.constant 0 : index
    %c0_33 = arith.constant 0 : index
    %c0_34 = arith.constant 0 : index
    %56 = vector.load %arg9[%c0_32, %c0_33, %c0_34] : memref<1x1x32xf32, #tpu.memory_space<vmem>>, vector<1x1x32xf32>
    %57 = vector.shape_cast %56 : vector<1x1x32xf32> to vector<1x32xf32>
    %58 = vector.extract_strided_slice %55 {offsets = [0, 0, 0], sizes = [1, 8, 32], strides = [1, 1, 1]} : vector<4x8x32xf32> to vector<1x8x32xf32>
    %59 = vector.shape_cast %58 : vector<1x8x32xf32> to vector<8x32xf32>
    %60 = vector.broadcast %57 : vector<1x32xf32> to vector<8x32xf32>
    %61 = arith.addf %60, %59 : vector<8x32xf32>
    %62 = vector.extract_strided_slice %55 {offsets = [1, 0, 0], sizes = [1, 8, 32], strides = [1, 1, 1]} : vector<4x8x32xf32> to vector<1x8x32xf32>
    %63 = vector.shape_cast %62 : vector<1x8x32xf32> to vector<8x32xf32>
    %64 = arith.addf %61, %63 : vector<8x32xf32>
    %65 = vector.extract_strided_slice %55 {offsets = [2, 0, 0], sizes = [1, 8, 32], strides = [1, 1, 1]} : vector<4x8x32xf32> to vector<1x8x32xf32>
    %66 = vector.shape_cast %65 : vector<1x8x32xf32> to vector<8x32xf32>
    %67 = arith.addf %64, %66 : vector<8x32xf32>
    %68 = vector.extract_strided_slice %55 {offsets = [3, 0, 0], sizes = [1, 8, 32], strides = [1, 1, 1]} : vector<4x8x32xf32> to vector<1x8x32xf32>
    %69 = vector.shape_cast %68 : vector<1x8x32xf32> to vector<8x32xf32>
    %70 = arith.addf %67, %69 : vector<8x32xf32>
    %71 = arith.addf %1, %70 : vector<8x32xf32>
    %cst_35 = arith.constant dense<0.000000e+00> : vector<8xf32>
    %72 = vector.multi_reduction <add>, %71, %cst_35 [1] : vector<8x32xf32> to vector<8xf32>
    %73 = vector.shape_cast %72 : vector<8xf32> to vector<8x1xf32>
    %cst_36 = arith.constant 3.200000e+01 : f32
    %74 = vector.broadcast %cst_36 : f32 to vector<8x1xf32>
    %75 = arith.divf %73, %74 : vector<8x1xf32>
    %76 = vector.broadcast %75 : vector<8x1xf32> to vector<8x32xf32>
    %77 = arith.subf %71, %76 : vector<8x32xf32>
    %78 = arith.mulf %77, %77 : vector<8x32xf32>
    %cst_37 = arith.constant dense<0.000000e+00> : vector<8xf32>
    %79 = vector.multi_reduction <add>, %78, %cst_37 [1] : vector<8x32xf32> to vector<8xf32>
    %80 = vector.shape_cast %79 : vector<8xf32> to vector<8x1xf32>
    %cst_38 = arith.constant 3.200000e+01 : f32
    %81 = vector.broadcast %cst_38 : f32 to vector<8x1xf32>
    %82 = arith.divf %80, %81 : vector<8x1xf32>
    %83 = vector.broadcast %75 : vector<8x1xf32> to vector<8x32xf32>
    %84 = arith.subf %71, %83 : vector<8x32xf32>
    %cst_39 = arith.constant 9.99999974E-6 : f32
    %85 = vector.broadcast %cst_39 : f32 to vector<8x1xf32>
    %86 = arith.addf %82, %85 : vector<8x1xf32>
    %87 = math.rsqrt %86 : vector<8x1xf32>
    %88 = vector.broadcast %87 : vector<8x1xf32> to vector<8x32xf32>
    %89 = arith.mulf %84, %88 : vector<8x32xf32>
    %c0_40 = arith.constant 0 : index
    %c0_41 = arith.constant 0 : index
    %c0_42 = arith.constant 0 : index
    %90 = vector.load %arg10[%c0_40, %c0_41, %c0_42] : memref<1x1x32xf32, #tpu.memory_space<vmem>>, vector<1x1x32xf32>
    %91 = vector.shape_cast %90 : vector<1x1x32xf32> to vector<1x32xf32>
    %92 = vector.broadcast %91 : vector<1x32xf32> to vector<8x32xf32>
    %93 = arith.mulf %89, %92 : vector<8x32xf32>
    %c0_43 = arith.constant 0 : index
    %c0_44 = arith.constant 0 : index
    %c0_45 = arith.constant 0 : index
    %94 = vector.load %arg11[%c0_43, %c0_44, %c0_45] : memref<1x1x32xf32, #tpu.memory_space<vmem>>, vector<1x1x32xf32>
    %95 = vector.shape_cast %94 : vector<1x1x32xf32> to vector<1x32xf32>
    %96 = vector.broadcast %95 : vector<1x32xf32> to vector<8x32xf32>
    %97 = arith.addf %93, %96 : vector<8x32xf32>
    %98 = arith.truncf %97 : vector<8x32xf32> to vector<8x32xbf16>
    %c0_46 = arith.constant 0 : index
    %c0_47 = arith.constant 0 : index
    %c0_48 = arith.constant 0 : index
    %99 = vector.load %arg12[%c0_46, %c0_47, %c0_48] : memref<1x32x64xbf16, #tpu.memory_space<vmem>>, vector<1x32x64xbf16>
    %100 = vector.shape_cast %99 : vector<1x32x64xbf16> to vector<32x64xbf16>
    %cst_49 = arith.constant dense<0.000000e+00> : vector<8x64xf32>
    %101 = tpu.matmul %98, %100, %cst_49 {dimension_numbers = #tpu.dot_dimension_numbers<[1], [0], [0], [1], [0, 0, 1, 1], [], []>} : vector<8x32xbf16>, vector<32x64xbf16>, vector<8x64xf32> -> vector<8x64xf32>
    %c0_50 = arith.constant 0 : index
    %c0_51 = arith.constant 0 : index
    %c0_52 = arith.constant 0 : index
    %102 = vector.load %arg13[%c0_50, %c0_51, %c0_52] : memref<1x1x64xf32, #tpu.memory_space<vmem>>, vector<1x1x64xf32>
    %103 = vector.shape_cast %102 : vector<1x1x64xf32> to vector<1x64xf32>
    %104 = vector.broadcast %103 : vector<1x64xf32> to vector<8x64xf32>
    %105 = arith.addf %101, %104 : vector<8x64xf32>
    %cst_53 = arith.constant 0.000000e+00 : f32
    %106 = vector.broadcast %cst_53 : f32 to vector<8x64xf32>
    %107 = arith.maximumf %105, %106 : vector<8x64xf32>
    %108 = arith.truncf %107 : vector<8x64xf32> to vector<8x64xbf16>
    %c0_54 = arith.constant 0 : index
    %c0_55 = arith.constant 0 : index
    %c0_56 = arith.constant 0 : index
    %109 = vector.load %arg14[%c0_54, %c0_55, %c0_56] : memref<1x64x32xbf16, #tpu.memory_space<vmem>>, vector<1x64x32xbf16>
    %110 = vector.shape_cast %109 : vector<1x64x32xbf16> to vector<64x32xbf16>
    %cst_57 = arith.constant dense<0.000000e+00> : vector<8x32xf32>
    %111 = tpu.matmul %108, %110, %cst_57 {dimension_numbers = #tpu.dot_dimension_numbers<[1], [0], [0], [1], [0, 0, 1, 1], [], []>} : vector<8x64xbf16>, vector<64x32xbf16>, vector<8x32xf32> -> vector<8x32xf32>
    %c0_58 = arith.constant 0 : index
    %c0_59 = arith.constant 0 : index
    %c0_60 = arith.constant 0 : index
    %112 = vector.load %arg15[%c0_58, %c0_59, %c0_60] : memref<1x1x32xf32, #tpu.memory_space<vmem>>, vector<1x1x32xf32>
    %113 = vector.shape_cast %112 : vector<1x1x32xf32> to vector<1x32xf32>
    %114 = vector.broadcast %113 : vector<1x32xf32> to vector<8x32xf32>
    %115 = arith.addf %111, %114 : vector<8x32xf32>
    %116 = arith.addf %97, %115 : vector<8x32xf32>
    %cst_61 = arith.constant dense<0.000000e+00> : vector<8xf32>
    %117 = vector.multi_reduction <add>, %116, %cst_61 [1] : vector<8x32xf32> to vector<8xf32>
    %118 = vector.shape_cast %117 : vector<8xf32> to vector<8x1xf32>
    %cst_62 = arith.constant 3.200000e+01 : f32
    %119 = vector.broadcast %cst_62 : f32 to vector<8x1xf32>
    %120 = arith.divf %118, %119 : vector<8x1xf32>
    %121 = vector.broadcast %120 : vector<8x1xf32> to vector<8x32xf32>
    %122 = arith.subf %116, %121 : vector<8x32xf32>
    %123 = arith.mulf %122, %122 : vector<8x32xf32>
    %cst_63 = arith.constant dense<0.000000e+00> : vector<8xf32>
    %124 = vector.multi_reduction <add>, %123, %cst_63 [1] : vector<8x32xf32> to vector<8xf32>
    %125 = vector.shape_cast %124 : vector<8xf32> to vector<8x1xf32>
    %cst_64 = arith.constant 3.200000e+01 : f32
    %126 = vector.broadcast %cst_64 : f32 to vector<8x1xf32>
    %127 = arith.divf %125, %126 : vector<8x1xf32>
    %128 = vector.broadcast %120 : vector<8x1xf32> to vector<8x32xf32>
    %129 = arith.subf %116, %128 : vector<8x32xf32>
    %cst_65 = arith.constant 9.99999974E-6 : f32
    %130 = vector.broadcast %cst_65 : f32 to vector<8x1xf32>
    %131 = arith.addf %127, %130 : vector<8x1xf32>
    %132 = math.rsqrt %131 : vector<8x1xf32>
    %133 = vector.broadcast %132 : vector<8x1xf32> to vector<8x32xf32>
    %134 = arith.mulf %129, %133 : vector<8x32xf32>
    %c0_66 = arith.constant 0 : index
    %c0_67 = arith.constant 0 : index
    %c0_68 = arith.constant 0 : index
    %135 = vector.load %arg16[%c0_66, %c0_67, %c0_68] : memref<1x1x32xf32, #tpu.memory_space<vmem>>, vector<1x1x32xf32>
    %136 = vector.shape_cast %135 : vector<1x1x32xf32> to vector<1x32xf32>
    %137 = vector.broadcast %136 : vector<1x32xf32> to vector<8x32xf32>
    %138 = arith.mulf %134, %137 : vector<8x32xf32>
    %c0_69 = arith.constant 0 : index
    %c0_70 = arith.constant 0 : index
    %c0_71 = arith.constant 0 : index
    %139 = vector.load %arg17[%c0_69, %c0_70, %c0_71] : memref<1x1x32xf32, #tpu.memory_space<vmem>>, vector<1x1x32xf32>
    %140 = vector.shape_cast %139 : vector<1x1x32xf32> to vector<1x32xf32>
    %141 = vector.broadcast %140 : vector<1x32xf32> to vector<8x32xf32>
    %142 = arith.addf %138, %141 : vector<8x32xf32>
    %c0_72 = arith.constant 0 : index
    %c0_73 = arith.constant 0 : index
    %c0_74 = arith.constant 0 : index
    %c0_75 = arith.constant 0 : index
    %143 = vector.load %arg18[%c0_72, %c0_73, %c0_74, %c0_75] : memref<1x1x8x32xf32, #tpu.memory_space<vmem>>, vector<1x1x8x32xf32>
    %144 = vector.shape_cast %143 : vector<1x1x8x32xf32> to vector<8x32xf32>
    %145 = vector.shape_cast %142 : vector<8x32xf32> to vector<1x1x8x32xf32>
    tpu.vector_store %arg18[%c0_72, %c0_73, %c0_74, %c0_75], %145 {strides = array<i32>} : memref<1x1x8x32xf32, #tpu.memory_space<vmem>>, vector<1x1x8x32xf32>,
    return
  }
  func.func @transform_0(%arg0: i32, %arg1: i32) -> (i32, i32, i32, i32) {
    %c0_i32 = arith.constant 0 : i32
    %c0_i32_0 = arith.constant 0 : i32
    %c0_i32_1 = arith.constant 0 : i32
    return %arg0, %arg1, %c0_i32, %c0_i32_0 : i32, i32, i32, i32
  }
  func.func @transform_1(%arg0: i32, %arg1: i32) -> (i32, i32, i32, i32) {
    %c0_i32 = arith.constant 0 : i32
    %c0_i32_0 = arith.constant 0 : i32
    %c0_i32_1 = arith.constant 0 : i32
    return %arg0, %arg1, %c0_i32, %c0_i32_0 : i32, i32, i32, i32
  }
  func.func @transform_2(%arg0: i32, %arg1: i32) -> (i32, i32, i32) {
    %c0_i32 = arith.constant 0 : i32
    %c0_i32_0 = arith.constant 0 : i32
    %c0_i32_1 = arith.constant 0 : i32
    return %arg0, %c0_i32, %c0_i32_0 : i32, i32, i32
  }
  func.func @transform_3(%arg0: i32, %arg1: i32) -> (i32, i32, i32) {
    %c0_i32 = arith.constant 0 : i32
    %c0_i32_0 = arith.constant 0 : i32
    %c0_i32_1 = arith.constant 0 : i32
    return %arg0, %c0_i32, %c0_i32_0 : i32, i32, i32
  }
  func.func @transform_4(%arg0: i32, %arg1: i32) -> (i32, i32, i32) {
    %c0_i32 = arith.constant 0 : i32
    %c0_i32_0 = arith.constant 0 : i32
    %c0_i32_1 = arith.constant 0 : i32
    return %arg0, %c0_i32, %c0_i32_0 : i32, i32, i32
  }
  func.func @transform_5(%arg0: i32, %arg1: i32) -> (i32, i32, i32) {
    %c0_i32 = arith.constant 0 : i32
    %c0_i32_0 = arith.constant 0 : i32
    %c0_i32_1 = arith.constant 0 : i32
    return %arg0, %c0_i32, %c0_i32_0 : i32, i32, i32
  }
  func.func @transform_6(%arg0: i32, %arg1: i32) -> (i32, i32, i32, i32) {
    %c0_i32 = arith.constant 0 : i32
    %c0_i32_0 = arith.constant 0 : i32
    %c0_i32_1 = arith.constant 0 : i32
    %c0_i32_2 = arith.constant 0 : i32
    return %arg0, %c0_i32, %c0_i32_0, %c0_i32_1 : i32, i32, i32, i32
  }
  func.func @transform_7(%arg0: i32, %arg1: i32) -> (i32, i32, i32) {
    %c0_i32 = arith.constant 0 : i32
    %c0_i32_0 = arith.constant 0 : i32
    %c0_i32_1 = arith.constant 0 : i32
    return %arg0, %c0_i32, %c0_i32_0 : i32, i32, i32
  }
  func.func @transform_8(%arg0: i32, %arg1: i32) -> (i32, i32, i32) {
    %c0_i32 = arith.constant 0 : i32
    %c0_i32_0 = arith.constant 0 : i32
    %c0_i32_1 = arith.constant 0 : i32
    return %arg0, %c0_i32, %c0_i32_0 : i32, i32, i32
  }
  func.func @transform_9(%arg0: i32, %arg1: i32) -> (i32, i32, i32) {
    %c0_i32 = arith.constant 0 : i32
    %c0_i32_0 = arith.constant 0 : i32
    %c0_i32_1 = arith.constant 0 : i32
    return %arg0, %c0_i32, %c0_i32_0 : i32, i32, i32
  }
  func.func @transform_10(%arg0: i32, %arg1: i32) -> (i32, i32, i32) {
    %c0_i32 = arith.constant 0 : i32
    %c0_i32_0 = arith.constant 0 : i32
    %c0_i32_1 = arith.constant 0 : i32
    return %arg0, %c0_i32, %c0_i32_0 : i32, i32, i32
  }
  func.func @transform_11(%arg0: i32, %arg1: i32) -> (i32, i32, i32) {
    %c0_i32 = arith.constant 0 : i32
    %c0_i32_0 = arith.constant 0 : i32
    %c0_i32_1 = arith.constant 0 : i32
    return %arg0, %c0_i32, %c0_i32_0 : i32, i32, i32
  }
  func.func @transform_12(%arg0: i32, %arg1: i32) -> (i32, i32, i32) {
    %c0_i32 = arith.constant 0 : i32
    %c0_i32_0 = arith.constant 0 : i32
    %c0_i32_1 = arith.constant 0 : i32
    return %arg0, %c0_i32, %c0_i32_0 : i32, i32, i32
  }
  func.func @transform_13(%arg0: i32, %arg1: i32) -> (i32, i32, i32) {
    %c0_i32 = arith.constant 0 : i32
    %c0_i32_0 = arith.constant 0 : i32
    %c0_i32_1 = arith.constant 0 : i32
    return %arg0, %c0_i32, %c0_i32_0 : i32, i32, i32
  }
  func.func @transform_14(%arg0: i32, %arg1: i32) -> (i32, i32, i32) {
    %c0_i32 = arith.constant 0 : i32
    %c0_i32_0 = arith.constant 0 : i32
    %c0_i32_1 = arith.constant 0 : i32
    return %arg0, %c0_i32, %c0_i32_0 : i32, i32, i32
  }
  func.func @transform_15(%arg0: i32, %arg1: i32) -> (i32, i32, i32) {
    %c0_i32 = arith.constant 0 : i32
    %c0_i32_0 = arith.constant 0 : i32
    %c0_i32_1 = arith.constant 0 : i32
    return %arg0, %c0_i32, %c0_i32_0 : i32, i32, i32
  }
  func.func @transform_16(%arg0: i32, %arg1: i32) -> (i32, i32, i32, i32) {
    %c0_i32 = arith.constant 0 : i32
    %c0_i32_0 = arith.constant 0 : i32
    %c0_i32_1 = arith.constant 0 : i32
    return %arg0, %arg1, %c0_i32, %c0_i32_0 : i32, i32, i32, i32
  }
}

module attributes {stable_mosaic.version = 11 : i64} {
  func.func @_pff_kernel(%arg0: i32, %arg1: memref<8x32xf32, #tpu.memory_space<vmem>>, %arg2: memref<32x16xbf16, #tpu.memory_space<vmem>>, %arg3: memref<1x16xf32, #tpu.memory_space<vmem>>, %arg4: memref<16x10xbf16, #tpu.memory_space<vmem>>, %arg5: memref<1x10xf32, #tpu.memory_space<vmem>>, %arg6: memref<8x10xf32, #tpu.memory_space<vmem>>) attributes {dimension_semantics = [#tpu.dimension_semantics<parallel>], iteration_bounds = array<i64: 2>, scalar_prefetch = 0 : i64, scratch_operands = 0 : i64, tpu.core_type = #tpu.core_type<tc>, window_params = [{transform_indices = @transform_0, window_bounds = array<i64: 8, 32>}, {pipeline_mode = #tpu.pipeline_mode<synchronous>, transform_indices = @transform_1, window_bounds = array<i64: 32, 16>}, {pipeline_mode = #tpu.pipeline_mode<synchronous>, transform_indices = @transform_2, window_bounds = array<i64: 1, 16>}, {pipeline_mode = #tpu.pipeline_mode<synchronous>, transform_indices = @transform_3, window_bounds = array<i64: 16, 10>}, {pipeline_mode = #tpu.pipeline_mode<synchronous>, transform_indices = @transform_4, window_bounds = array<i64: 1, 10>}, {transform_indices = @transform_5, window_bounds = array<i64: 8, 10>}]} {
    %c0 = arith.constant 0 : index
    %c0_0 = arith.constant 0 : index
    %0 = vector.load %arg1[%c0, %c0_0] : memref<8x32xf32, #tpu.memory_space<vmem>>, vector<8x32xf32>
    %1 = arith.truncf %0 : vector<8x32xf32> to vector<8x32xbf16>
    %c0_1 = arith.constant 0 : index
    %c0_2 = arith.constant 0 : index
    %2 = vector.load %arg2[%c0_1, %c0_2] : memref<32x16xbf16, #tpu.memory_space<vmem>>, vector<32x16xbf16>
    %cst = arith.constant dense<0.000000e+00> : vector<8x16xf32>
    %3 = tpu.matmul %1, %2, %cst {dimension_numbers = #tpu.dot_dimension_numbers<[1], [0], [0], [1], [0, 0, 1, 1], [], []>} : vector<8x32xbf16>, vector<32x16xbf16>, vector<8x16xf32> -> vector<8x16xf32>
    %c0_3 = arith.constant 0 : index
    %c0_4 = arith.constant 0 : index
    %4 = vector.load %arg3[%c0_3, %c0_4] : memref<1x16xf32, #tpu.memory_space<vmem>>, vector<1x16xf32>
    %5 = vector.broadcast %4 : vector<1x16xf32> to vector<8x16xf32>
    %6 = arith.addf %3, %5 : vector<8x16xf32>
    %cst_5 = arith.constant 0.000000e+00 : f32
    %7 = vector.broadcast %cst_5 : f32 to vector<8x16xf32>
    %8 = arith.maximumf %6, %7 : vector<8x16xf32>
    %9 = arith.truncf %8 : vector<8x16xf32> to vector<8x16xbf16>
    %c0_6 = arith.constant 0 : index
    %c0_7 = arith.constant 0 : index
    %10 = vector.load %arg4[%c0_6, %c0_7] : memref<16x10xbf16, #tpu.memory_space<vmem>>, vector<16x10xbf16>
    %cst_8 = arith.constant dense<0.000000e+00> : vector<8x10xf32>
    %11 = tpu.matmul %9, %10, %cst_8 {dimension_numbers = #tpu.dot_dimension_numbers<[1], [0], [0], [1], [0, 0, 1, 1], [], []>} : vector<8x16xbf16>, vector<16x10xbf16>, vector<8x10xf32> -> vector<8x10xf32>
    %c0_9 = arith.constant 0 : index
    %c0_10 = arith.constant 0 : index
    %12 = vector.load %arg5[%c0_9, %c0_10] : memref<1x10xf32, #tpu.memory_space<vmem>>, vector<1x10xf32>
    %13 = vector.broadcast %12 : vector<1x10xf32> to vector<8x10xf32>
    %14 = arith.addf %11, %13 : vector<8x10xf32>
    %15 = arith.negf %14 : vector<8x10xf32>
    %16 = math.exp %15 : vector<8x10xf32>
    %cst_11 = arith.constant 1.000000e+00 : f32
    %17 = vector.broadcast %cst_11 : f32 to vector<8x10xf32>
    %18 = arith.addf %17, %16 : vector<8x10xf32>
    %19 = arith.divf %17, %18 : vector<8x10xf32>
    %c0_12 = arith.constant 0 : index
    %c0_13 = arith.constant 0 : index
    %20 = vector.load %arg6[%c0_12, %c0_13] : memref<8x10xf32, #tpu.memory_space<vmem>>, vector<8x10xf32>
    tpu.vector_store %arg6[%c0_12, %c0_13], %19 {strides = array<i32>} : memref<8x10xf32, #tpu.memory_space<vmem>>, vector<8x10xf32>,
    return
  }
  func.func @transform_0(%arg0: i32) -> (i32, i32) {
    %c0_i32 = arith.constant 0 : i32
    %c0_i32_0 = arith.constant 0 : i32
    return %arg0, %c0_i32 : i32, i32
  }
  func.func @transform_1(%arg0: i32) -> (i32, i32) {
    %c0_i32 = arith.constant 0 : i32
    %c0_i32_0 = arith.constant 0 : i32
    %c0_i32_1 = arith.constant 0 : i32
    return %c0_i32, %c0_i32_0 : i32, i32
  }
  func.func @transform_2(%arg0: i32) -> (i32, i32) {
    %c0_i32 = arith.constant 0 : i32
    %c0_i32_0 = arith.constant 0 : i32
    %c0_i32_1 = arith.constant 0 : i32
    return %c0_i32, %c0_i32_0 : i32, i32
  }
  func.func @transform_3(%arg0: i32) -> (i32, i32) {
    %c0_i32 = arith.constant 0 : i32
    %c0_i32_0 = arith.constant 0 : i32
    %c0_i32_1 = arith.constant 0 : i32
    return %c0_i32, %c0_i32_0 : i32, i32
  }
  func.func @transform_4(%arg0: i32) -> (i32, i32) {
    %c0_i32 = arith.constant 0 : i32
    %c0_i32_0 = arith.constant 0 : i32
    %c0_i32_1 = arith.constant 0 : i32
    return %c0_i32, %c0_i32_0 : i32, i32
  }
  func.func @transform_5(%arg0: i32) -> (i32, i32) {
    %c0_i32 = arith.constant 0 : i32
    %c0_i32_0 = arith.constant 0 : i32
    return %arg0, %c0_i32 : i32, i32
  }
}

</mosaic_0001>

<bundles_post_ra>
// kernel: lsktsk_forward.9
= control target key start
LH: loop header
LB: loop body
LE: loop exit
PB: predicated region body
PF: predicated region fallthrough
CT: control target
= control target key end

     0   :  { %v23_v0 = vlaneseq  ;;  %vm85_vm4 = vcmask 261120   ;;  %s575_s1 = inlined_call_operand.vmem [shape: bf16[3,32,32], index: 1, kind: input, shape index: {}]   ;;  %s576_s0 = inlined_call_operand.vmem [shape: f32[2,8,32], index: 0, kind: input, shape index: {}]   ;;  %s577_s2 = inlined_call_operand.vmem [shape: f32[1,32], index: 2, kind: input, shape index: {}]   ;;  %s578_s3 = inlined_call_operand.vmem [shape: bf16[3,32,32], index: 3, kind: input, shape index: {}]   ;;  %s579_s4 = inlined_call_operand.vmem [shape: f32[1,32], index: 4, kind: input, shape index: {}]   ;;  %s580_s5 = inlined_call_operand.vmem [shape: f32[16,32], index: 5, kind: output, shape index: {}]  }
   0x1   :  { %v408_v1 = vld [vmem:[%s575_s1 + $0x28] sm:$0xff]  ;;  %v406_v3 = vld [vmem:[%s575_s1 + $0x18] sm:$0xff]  ;;  %v407_v4 = vld [vmem:[%s575_s1 + $0x20] sm:$0xff] }
   0x2   :  { %v404_v2 = vld [vmem:[%s575_s1 + $0x8] sm:$0xff]  ;;  %v403_v5 = vld [vmem:[%s575_s1] sm:$0xff]  ;;  %v462_v6 = vshrl.u32 %v23_v0, 7  ;;  %182 = vmatpush.bf16.msra.mxu2 %v408_v1  ;;  %145 = vmatpush.bf16.msra.mxu1 %v406_v3  ;;  %v405_v9 = vld [vmem:[%s575_s1 + $0x10] sm:$0xff] }
   0x3   :  { %95 = vmatpush.bf16.msra.mxu0 %v404_v2  ;;  %v467_v7 = vld [vmem:[%s576_s0] sm:$0xff]  ;;  %v472_v8 = vld [vmem:[%s576_s0 + $0x8] sm:$0xff]  ;;  %v412_v33 = vld [vmem:[%s578_s3 + $0x18] sm:$0xff] }
   0x4   :  { %v155_v10 = vpack.c.bf16 %v472_v8, %v467_v7  ;;  %v25_v11 = vadd.s32 8, %v462_v6  ;;  %v30_v12 = vand.u32 7, %v462_v6  ;;  %v55_v13 = vrot.slane %v467_v7, 4  ;;  %v414_v32 = vld [vmem:[%s578_s3 + $0x28] sm:$0xff]  ;;  %v413_v35 = vld [vmem:[%s578_s3 + $0x20] sm:$0xff]  ;;  %v411_v37 = vld [vmem:[%s578_s3 + $0x10] sm:$0xff] }
   0x5   :  { %v56_v14 = vrot.slane %v472_v8, 4  ;;  %vm57_vm0 = vcmp.lt.s32.totalorder %v462_v6, 4  ;;  %v105_v15 = vrot.slane %v467_v7, 6  ;;  %v106_v16 = vrot.slane %v472_v8, 6  ;;  %v410_v34 = vld [vmem:[%s578_s3 + $0x8] sm:$0xff]  ;;  %v409_v36 = vld [vmem:[%s578_s3] sm:$0xff] }
   0x6   :  { %v37_v17 = vand.u32 7, %v25_v11  ;;  %vm486_vm1 = vcmp.ge.s32.totalorder %v30_v12, 4  ;;  %vm107_vm2 = vcmp.lt.s32.totalorder %v462_v6, 2  ;;  %vm491_vm3 = vcmp.ge.s32.totalorder %v30_v12, 2  ;;  %183 = vmatpush.bf16.msra.mxu2 %v407_v4  ;;  %146 = vmatpush.bf16.msra.mxu1 %v405_v9  ;;  %v415_v38 = vld [vmem:[%s577_s2] ss:$0 sm:$0xff] }
   0x7   :  { %96 = vmatpush.bf16.msra.mxu0 %v403_v5  ;;  %v58_v20 = vsel %vm57_vm0, %v55_v13, %v56_v14  ;;  %v59_v21 = vsel %vm57_vm0, %v56_v14, %v55_v13  ;;  %v108_v22 = vsel %vm107_vm2, %v105_v15, %v106_v16  ;;  %v109_v25 = vsel %vm107_vm2, %v106_v16, %v105_v15  ;;  %v416_v4 = vld [vmem:[%s579_s4] ss:$0 sm:$0xff] }
   0x8   :  { %vm501_vm5 = vcmp.ge.s32.totalorder %v37_v17, 4  ;;  %v66_v24 = vsel %vm486_vm1, %v59_v21, 0.0  ;;  %vm509_vm6 = vcmp.ge.s32.totalorder %v37_v17, 2  ;;  %v116_v28 = vsel %vm491_vm3, %v109_v25, 0.0  ;;  %231 = vmatpush.bf16.msra.mxu3 %v410_v34 }
   0x9   :  { %v67_v27 = vsel %vm501_vm5, %v58_v20, 0.0  ;;  %v117_v29 = vsel %vm509_vm6, %v108_v22, 0.0  ;;  %367 = vmatmul.msk.bf16.vlgmr.msra.gmra.mxu2 %vm85_vm4, %v155_v10 }
   0xa   :  { %v68_v30 = vpack.c.bf16 %v67_v27, %v66_v24  ;;  %v118_v31 = vpack.c.bf16 %v117_v29, %v116_v28  ;;  %311 = vmatpush.bf16.msrb.mxu1 %v414_v32 }
   0xb   :  { %274 = vmatpush.bf16.msrb.mxu0 %v412_v33 }
   0xc   :  { %341 = vmatmul.msk.bf16.vlgmr.msra.gmra.mxu0 %vm85_vm4, %v68_v30  ;;  %354 = vmatmul.msk.bf16.vlgmr.msra.gmra.mxu1 %vm85_vm4, %v118_v31 }
   0xd   :  { %232 = vmatpush.bf16.msra.mxu3 %v409_v36 }
   0xe   :  { %312 = vmatpush.bf16.msrb.mxu1 %v413_v35 }
   0xf   :  { %275 = vmatpush.bf16.msrb.mxu0 %v411_v37 }
  0x89   :  { %v98_v39 = vpop.f32.mrf.mxu0  ;;  %v148_v40 = vpop.f32.mrf.mxu1 }
  0x8a   :  { %v103_v41 = vadd.f32 %v415_v38, %v98_v39 }
  0x8c   :  { %v153_v42 = vadd.f32 %v148_v40, %v103_v41  ;;  %v185_v43 = vpop.f32.mrf.mxu2 }
  0x8e   :  { %v190_v44 = vadd.f32 %v185_v43, %v153_v42 }
  0x90   :  { %v192_v49 = vmax.f32 %v190_v44, 0.0 }
  0x91   :  { %v100_v45 = vpop.f32.mrf.mxu0  ;;  %v150_v47 = vpop.f32.mrf.mxu1 }
  0x92   :  { %v104_v46 = vadd.f32 %v415_v38, %v100_v45  ;;  %v199_v53 = vrot.slane %v192_v49, 4  ;;  %v241_v54 = vrot.slane %v192_v49, 6 }
  0x94   :  { %v154_v48 = vadd.f32 %v150_v47, %v104_v46  ;;  %v187_v50 = vpop.f32.mrf.mxu2 }
  0x96   :  { %v191_v51 = vadd.f32 %v187_v50, %v154_v48 }
  0x98   :  { %v193_v52 = vmax.f32 %v191_v51, 0.0 }
  0x9a   :  { %v200_v55 = vrot.slane %v193_v52, 4  ;;  %v242_v56 = vrot.slane %v193_v52, 6  ;;  %v284_v57 = vpack.c.bf16 %v193_v52, %v192_v49 }
  0x9c   :  { %402 = vmatmul.msk.bf16.vlgmr.msrb.gmra.mxu1 %vm85_vm4, %v284_v57  ;;  %v201_v58 = vsel %vm57_vm0, %v199_v53, %v200_v55  ;;  %v202_v59 = vsel %vm57_vm0, %v200_v55, %v199_v53  ;;  %v243_v60 = vsel %vm107_vm2, %v241_v54, %v242_v56  ;;  %v244_v61 = vsel %vm107_vm2, %v242_v56, %v241_v54 }
  0x9d   :  { %v203_v62 = vsel %vm486_vm1, %v202_v59, 0.0  ;;  %v204_v63 = vsel %vm501_vm5, %v201_v58, 0.0  ;;  %v245_v0 = vsel %vm491_vm3, %v244_v61, 0.0  ;;  %v246_v1 = vsel %vm509_vm6, %v243_v60, 0.0 }
  0x9e   :  { %v205_v2 = vpack.c.bf16 %v204_v63, %v203_v62  ;;  %v247_v3 = vpack.c.bf16 %v246_v1, %v245_v0 }
  0xa0   :  { %376 = vmatmul.msk.bf16.vlgmr.msra.gmra.mxu3 %vm85_vm4, %v205_v2  ;;  %389 = vmatmul.msk.bf16.vlgmr.msrb.gmra.mxu0 %vm85_vm4, %v247_v3 }
 0x119   :  { %v314_v10 = vpop.f32.mrf.mxu1 }
 0x11d   :  { %v277_v5 = vpop.f32.mrf.mxu0 }
 0x121   :  { %v316_v20 = vpop.f32.mrf.mxu1 }
 0x123   :  { %v234_v6 = vpop.f32.mrf.mxu3 }
 0x124   :  { %v239_v9 = vadd.f32 %v416_v4, %v234_v6 }
 0x125   :  { %v279_v17 = vpop.f32.mrf.mxu0 }
 0x126   :  { %v282_v11 = vadd.f32 %v277_v5, %v239_v9 }
 0x128   :  { %v319_v12 = vadd.f32 %v314_v10, %v282_v11 }
 0x12a   :  { %v321_v13 = vmax.f32 %v319_v12, 0.0 }
 0x12b   :  { %v236_v14 = vpop.f32.mrf.mxu3 }
 0x12c   :  { %v323_v15 = vadd.f32 %v321_v13, %v467_v7  ;;  %v240_v16 = vadd.f32 %v416_v4, %v236_v14 }
 0x12e   :  { %v325_v18 = vmax.f32 %v323_v15, 0.0  ;;  %v283_v19 = vadd.f32 %v279_v17, %v240_v16 }
 0x130   :  { %327 = vst.msk [vmem:[%s580_s5] sm:$0xff] %vm85_vm4, %v325_v18  ;;  %v320_v21 = vadd.f32 %v316_v20, %v283_v19 }
 0x132   :  { %v322_v22 = vmax.f32 %v320_v21, 0.0 }
 0x134   :  { %v324_v23 = vadd.f32 %v322_v22, %v472_v8 }
 0x136   :  { %v326_v24 = vmax.f32 %v324_v23, 0.0 }
 0x138   :  { %328 = vst.msk [vmem:[%s580_s5 + $0x8] sm:$0xff] %vm85_vm4, %v326_v24 }

// kernel: lsktsk_forward.7
= control target key start
LH: loop header
LB: loop body
LE: loop exit
PB: predicated region body
PF: predicated region fallthrough
CT: control target
= control target key end

     0   :  { %s458_s18 = smov 0   ;;  %s499_s0 = inlined_call_operand.vmem [shape: f32[16,64], index: 0, kind: input, shape index: {}]   ;;  %s500_s1 = inlined_call_operand.vmem [shape: bf16[64,32], index: 1, kind: input, shape index: {}]   ;;  %s501_s2 = inlined_call_operand.vmem [shape: f32[1,32], index: 2, kind: input, shape index: {}]   ;;  %s502_s3 = inlined_call_operand.vmem [shape: bf16[32,32], index: 3, kind: input, shape index: {}]   ;;  %s503_s4 = inlined_call_operand.vmem [shape: f32[1,32], index: 4, kind: input, shape index: {}]   ;;  %s504_s5 = inlined_call_operand.vmem [shape: f32[16,32], index: 5, kind: output, shape index: {}]  }
   0x1 LB: > { %s369_s19 = sadd.s32 4294967295, %s426_s18   ;;  %p373_p0 = scmp.ge.s32.totalorder %s426_s18, 1  ;;  %s426_s18 = sphi %s458_s18, %s15_s18  }
   0x2   : > { %p186_p1 = scmp.lt.s32.totalorder %s426_s18, 3 }
   0x4   : > { %p187_p2 = pnand %p373_p0, %p186_p1 }
   0x5   : > { %p212_p3 = scmp.lt.s32.totalorder (!%p187_p2), %s369_s19, 1 }
   0x6   : > { %190 = sbr.rel (%p187_p2) target bundleno = 293 (0x125), region = 40 }
   0xb   : > { %v407_v0 = vld [vmem:[%s500_s1 + $0x18] sm:$0xff]  ;;  %v406_v1 = vld [vmem:[%s500_s1 + $0x10] sm:$0xff]  ;;  %s506_s19 = smov (!%p212_p3, %s369_s19), 1  ;;  %v405_v2 = vld [vmem:[%s500_s1 + $0x8] sm:$0xff]  ;;  %vm259_vm0 = vcmask 523264   ;;  %vm298_vm1 = vcmask 261120  }
   0xc   : > { %267 = vmatpush.bf16.msra.mxu0 %v407_v0  ;;  %s374_s24 = sshll.u32 %s506_s19, 3  ;;  %v404_v3 = vld [vmem:[%s500_s1] sm:$0xff]  ;;  %v409_v6 = vld [vmem:[%s502_s3 + $0x8] sm:$0xff] }
   0xd   : > { %s215_s29 = scalar_lea.vmem %s499_s0, %s374_s24  ;;  %308 = vmatpush.bf16.msra.mxu1 %v409_v6  ;;  %v408_v7 = vld [vmem:[%s502_s3] sm:$0xff]  ;;  %s219_s17 = scalar_lea.vmem %s504_s5, %s374_s24 }
   0xe   : > { %v221_v4 = vld [vmem:[%s215_s29] sm:$0xff] }
   0xf   : > { %v222_v5 = vpack.c.bf16 %v221_v4, %v221_v4  ;;  %v418_v8 = vld [vmem:[%s501_s2] ss:$0 sm:$0xff] }
  0x10   : > { %268 = vmatpush.bf16.msra.mxu0 %v406_v1  ;;  %v419_v14 = vld [vmem:[%s503_s4] ss:$0 sm:$0xff] }
  0x11   : > { %309 = vmatpush.bf16.msra.mxu1 %v408_v7 }
  0x14   : > { %269 = vmatpush.bf16.msra.mxu0 %v405_v2 }
  0x18   : > { %270 = vmatpush.bf16.msra.mxu0 %v404_v3 }
  0x1b   : > { %392 = vmatmul.msk.bf16.vlgmr.msra.gmra.mxu0 %vm259_vm0, %v222_v5 }
  0x98   : > { %v272_v9 = vpop.f32.mrf.mxu0 }
  0x99   : > { %v273_v10 = vadd.f32 %v418_v8, %v272_v9 }
  0x9b   : > { %v276_v11 = vmax.f32 %v273_v10, 0.0 }
  0x9d   : > { %v277_v12 = vpack.c.bf16 %v276_v11, %v276_v11 }
  0x9f   : > { %401 = vmatmul.msk.bf16.vlgmr.msra.gmra.mxu1 %vm298_vm1, %v277_v12 }
  0xa0   : > { %v274_v13 = vpop.f32.mrf.mxu0 }
 0x11c   : > { %v311_v15 = vpop.f32.mrf.mxu1 }
 0x11d   : > { %v312_v16 = vadd.f32 %v419_v14, %v311_v15 }
 0x11f   : > { %315 = vst.msk [vmem:[%s219_s17] sm:$0xff] %vm298_vm1, %v312_v16 }
 0x124   : > { %v313_v17 = vpop.f32.mrf.mxu1 }
 0x125 PF: > { %s15_s18 = sadd.s32 1, %s426_s18  }
 0x126   : > { %p12_p4 = scmp.ge.s32.totalorder %s15_s18, 4  }
 0x128   :  { %14 = sbr.rel (!%p12_p4) target bundleno = 1 (0x1), region = 70 }

// kernel: lsktsk_forward.8
= control target key start
LH: loop header
LB: loop body
LE: loop exit
PB: predicated region body
PF: predicated region fallthrough
CT: control target
= control target key end

     0   :  { %v23_v0 = vlaneseq  ;;  %vm85_vm4 = vcmask 261120   ;;  %s575_s1 = inlined_call_operand.vmem [shape: bf16[3,32,32], index: 1, kind: input, shape index: {}]   ;;  %s576_s0 = inlined_call_operand.vmem [shape: f32[2,8,32], index: 0, kind: input, shape index: {}]   ;;  %s577_s2 = inlined_call_operand.vmem [shape: f32[1,32], index: 2, kind: input, shape index: {}]   ;;  %s578_s3 = inlined_call_operand.vmem [shape: bf16[3,32,32], index: 3, kind: input, shape index: {}]   ;;  %s579_s4 = inlined_call_operand.vmem [shape: f32[1,32], index: 4, kind: input, shape index: {}]   ;;  %s580_s5 = inlined_call_operand.vmem [shape: f32[16,32], index: 5, kind: output, shape index: {}]  }
   0x1   :  { %v408_v1 = vld [vmem:[%s575_s1 + $0x28] sm:$0xff]  ;;  %v406_v3 = vld [vmem:[%s575_s1 + $0x18] sm:$0xff]  ;;  %v407_v4 = vld [vmem:[%s575_s1 + $0x20] sm:$0xff] }
   0x2   :  { %v404_v2 = vld [vmem:[%s575_s1 + $0x8] sm:$0xff]  ;;  %v403_v5 = vld [vmem:[%s575_s1] sm:$0xff]  ;;  %v462_v6 = vshrl.u32 %v23_v0, 7  ;;  %182 = vmatpush.bf16.msra.mxu2 %v408_v1  ;;  %145 = vmatpush.bf16.msra.mxu1 %v406_v3  ;;  %v405_v9 = vld [vmem:[%s575_s1 + $0x10] sm:$0xff] }
   0x3   :  { %95 = vmatpush.bf16.msra.mxu0 %v404_v2  ;;  %v467_v7 = vld [vmem:[%s576_s0] sm:$0xff]  ;;  %v472_v8 = vld [vmem:[%s576_s0 + $0x8] sm:$0xff]  ;;  %v412_v33 = vld [vmem:[%s578_s3 + $0x18] sm:$0xff] }
   0x4   :  { %v155_v10 = vpack.c.bf16 %v472_v8, %v467_v7  ;;  %v25_v11 = vadd.s32 8, %v462_v6  ;;  %v30_v12 = vand.u32 7, %v462_v6  ;;  %v55_v13 = vrot.slane %v467_v7, 6  ;;  %v414_v32 = vld [vmem:[%s578_s3 + $0x28] sm:$0xff]  ;;  %v413_v35 = vld [vmem:[%s578_s3 + $0x20] sm:$0xff]  ;;  %v411_v37 = vld [vmem:[%s578_s3 + $0x10] sm:$0xff] }
   0x5   :  { %v56_v14 = vrot.slane %v472_v8, 6  ;;  %vm57_vm0 = vcmp.lt.s32.totalorder %v462_v6, 2  ;;  %v105_v15 = vrot.slane %v467_v7, 7  ;;  %v106_v16 = vrot.slane %v472_v8, 7  ;;  %v410_v34 = vld [vmem:[%s578_s3 + $0x8] sm:$0xff]  ;;  %v409_v36 = vld [vmem:[%s578_s3] sm:$0xff] }
   0x6   :  { %v37_v17 = vand.u32 7, %v25_v11  ;;  %vm486_vm1 = vcmp.ge.s32.totalorder %v30_v12, 2  ;;  %vm107_vm2 = vcmp.lt.s32.totalorder %v462_v6, 1  ;;  %vm491_vm3 = vcmp.ge.s32.totalorder %v30_v12, 1  ;;  %183 = vmatpush.bf16.msra.mxu2 %v407_v4  ;;  %146 = vmatpush.bf16.msra.mxu1 %v405_v9  ;;  %v415_v38 = vld [vmem:[%s577_s2] ss:$0 sm:$0xff] }
   0x7   :  { %96 = vmatpush.bf16.msra.mxu0 %v403_v5  ;;  %v58_v20 = vsel %vm57_vm0, %v55_v13, %v56_v14  ;;  %v59_v21 = vsel %vm57_vm0, %v56_v14, %v55_v13  ;;  %v108_v22 = vsel %vm107_vm2, %v105_v15, %v106_v16  ;;  %v109_v25 = vsel %vm107_vm2, %v106_v16, %v105_v15  ;;  %v416_v4 = vld [vmem:[%s579_s4] ss:$0 sm:$0xff] }
   0x8   :  { %vm501_vm5 = vcmp.ge.s32.totalorder %v37_v17, 2  ;;  %v66_v24 = vsel %vm486_vm1, %v59_v21, 0.0  ;;  %vm509_vm6 = vcmp.ge.s32.totalorder %v37_v17, 1  ;;  %v116_v28 = vsel %vm491_vm3, %v109_v25, 0.0  ;;  %231 = vmatpush.bf16.msra.mxu3 %v410_v34 }
   0x9   :  { %v67_v27 = vsel %vm501_vm5, %v58_v20, 0.0  ;;  %v117_v29 = vsel %vm509_vm6, %v108_v22, 0.0  ;;  %367 = vmatmul.msk.bf16.vlgmr.msra.gmra.mxu2 %vm85_vm4, %v155_v10 }
   0xa   :  { %v68_v30 = vpack.c.bf16 %v67_v27, %v66_v24  ;;  %v118_v31 = vpack.c.bf16 %v117_v29, %v116_v28  ;;  %311 = vmatpush.bf16.msrb.mxu1 %v414_v32 }
   0xb   :  { %274 = vmatpush.bf16.msrb.mxu0 %v412_v33 }
   0xc   :  { %341 = vmatmul.msk.bf16.vlgmr.msra.gmra.mxu0 %vm85_vm4, %v68_v30  ;;  %354 = vmatmul.msk.bf16.vlgmr.msra.gmra.mxu1 %vm85_vm4, %v118_v31 }
   0xd   :  { %232 = vmatpush.bf16.msra.mxu3 %v409_v36 }
   0xe   :  { %312 = vmatpush.bf16.msrb.mxu1 %v413_v35 }
   0xf   :  { %275 = vmatpush.bf16.msrb.mxu0 %v411_v37 }
  0x89   :  { %v98_v39 = vpop.f32.mrf.mxu0  ;;  %v148_v40 = vpop.f32.mrf.mxu1 }
  0x8a   :  { %v103_v41 = vadd.f32 %v415_v38, %v98_v39 }
  0x8c   :  { %v153_v42 = vadd.f32 %v148_v40, %v103_v41  ;;  %v185_v43 = vpop.f32.mrf.mxu2 }
  0x8e   :  { %v190_v44 = vadd.f32 %v185_v43, %v153_v42 }
  0x90   :  { %v192_v49 = vmax.f32 %v190_v44, 0.0 }
  0x91   :  { %v100_v45 = vpop.f32.mrf.mxu0  ;;  %v150_v47 = vpop.f32.mrf.mxu1 }
  0x92   :  { %v104_v46 = vadd.f32 %v415_v38, %v100_v45  ;;  %v199_v53 = vrot.slane %v192_v49, 6  ;;  %v241_v54 = vrot.slane %v192_v49, 7 }
  0x94   :  { %v154_v48 = vadd.f32 %v150_v47, %v104_v46  ;;  %v187_v50 = vpop.f32.mrf.mxu2 }
  0x96   :  { %v191_v51 = vadd.f32 %v187_v50, %v154_v48 }
  0x98   :  { %v193_v52 = vmax.f32 %v191_v51, 0.0 }
  0x9a   :  { %v200_v55 = vrot.slane %v193_v52, 6  ;;  %v242_v56 = vrot.slane %v193_v52, 7  ;;  %v284_v57 = vpack.c.bf16 %v193_v52, %v192_v49 }
  0x9c   :  { %402 = vmatmul.msk.bf16.vlgmr.msrb.gmra.mxu1 %vm85_vm4, %v284_v57  ;;  %v201_v58 = vsel %vm57_vm0, %v199_v53, %v200_v55  ;;  %v202_v59 = vsel %vm57_vm0, %v200_v55, %v199_v53  ;;  %v243_v60 = vsel %vm107_vm2, %v241_v54, %v242_v56  ;;  %v244_v61 = vsel %vm107_vm2, %v242_v56, %v241_v54 }
  0x9d   :  { %v203_v62 = vsel %vm486_vm1, %v202_v59, 0.0  ;;  %v204_v63 = vsel %vm501_vm5, %v201_v58, 0.0  ;;  %v245_v0 = vsel %vm491_vm3, %v244_v61, 0.0  ;;  %v246_v1 = vsel %vm509_vm6, %v243_v60, 0.0 }
  0x9e   :  { %v205_v2 = vpack.c.bf16 %v204_v63, %v203_v62  ;;  %v247_v3 = vpack.c.bf16 %v246_v1, %v245_v0 }
  0xa0   :  { %376 = vmatmul.msk.bf16.vlgmr.msra.gmra.mxu3 %vm85_vm4, %v205_v2  ;;  %389 = vmatmul.msk.bf16.vlgmr.msrb.gmra.mxu0 %vm85_vm4, %v247_v3 }
 0x119   :  { %v314_v10 = vpop.f32.mrf.mxu1 }
 0x11d   :  { %v277_v5 = vpop.f32.mrf.mxu0 }
 0x121   :  { %v316_v20 = vpop.f32.mrf.mxu1 }
 0x123   :  { %v234_v6 = vpop.f32.mrf.mxu3 }
 0x124   :  { %v239_v9 = vadd.f32 %v416_v4, %v234_v6 }
 0x125   :  { %v279_v17 = vpop.f32.mrf.mxu0 }
 0x126   :  { %v282_v11 = vadd.f32 %v277_v5, %v239_v9 }
 0x128   :  { %v319_v12 = vadd.f32 %v314_v10, %v282_v11 }
 0x12a   :  { %v321_v13 = vmax.f32 %v319_v12, 0.0 }
 0x12b   :  { %v236_v14 = vpop.f32.mrf.mxu3 }
 0x12c   :  { %v323_v15 = vadd.f32 %v321_v13, %v467_v7  ;;  %v240_v16 = vadd.f32 %v416_v4, %v236_v14 }
 0x12e   :  { %v325_v18 = vmax.f32 %v323_v15, 0.0  ;;  %v283_v19 = vadd.f32 %v279_v17, %v240_v16 }
 0x130   :  { %327 = vst.msk [vmem:[%s580_s5] sm:$0xff] %vm85_vm4, %v325_v18  ;;  %v320_v21 = vadd.f32 %v316_v20, %v283_v19 }
 0x132   :  { %v322_v22 = vmax.f32 %v320_v21, 0.0 }
 0x134   :  { %v324_v23 = vadd.f32 %v322_v22, %v472_v8 }
 0x136   :  { %v326_v24 = vmax.f32 %v324_v23, 0.0 }
 0x138   :  { %328 = vst.msk [vmem:[%s580_s5 + $0x8] sm:$0xff] %vm85_vm4, %v326_v24 }

// kernel: lsktsk_forward.6
= control target key start
LH: loop header
LB: loop body
LE: loop exit
PB: predicated region body
PF: predicated region fallthrough
CT: control target
= control target key end

     0   :  { %s1729_s13 = smov 0   ;;  %s1731_s14 = smov 0   ;;  %s1883_s0 = inlined_call_operand.vmem [shape: f32[2,2,8,32], index: 0, kind: input, shape index: {}]   ;;  %s1884_s1 = inlined_call_operand.vmem [shape: f32[2,2,8,32], index: 1, kind: input, shape index: {}]   ;;  %s1885_s2 = inlined_call_operand.vmem [shape: bf16[2,32,32], index: 2, kind: input, shape index: {}]   ;;  %s1886_s3 = inlined_call_operand.vmem [shape: f32[2,1,32], index: 3, kind: input, shape index: {}]   ;;  %s1887_s4 = inlined_call_operand.vmem [shape: bf16[2,32,32], index: 4, kind: input, shape index: {}]   ;;  %s1888_s5 = inlined_call_operand.vmem [shape: f32[2,1,32], index: 5, kind: input, shape index: {}]   ;;  %s1889_s6 = inlined_call_operand.vmem [shape: bf16[2,4,8,32], index: 6, kind: input, shape index: {}]   ;;  %s1890_s7 = inlined_call_operand.vmem [shape: f32[2,1,32], index: 7, kind: input, shape index: {}]   ;;  %s1891_s8 = inlined_call_operand.vmem [shape: f32[2,1,32], index: 8, kind: input, shape index: {}]   ;;  %s1892_s9 = inlined_call_operand.vmem [shape: f32[2,1,32], index: 9, kind: input, shape index: {}]   ;;  %s1893_s10 = inlined_call_operand.vmem [shape: f32[2,2,8,32], index: 10, kind: output, shape index: {}]  }
   0x1   :  { %s1733_s15 = smov 0   ;;  %s1735_s16 = smov 0  }
   0x2   :  { %s1737_s17 = smov 0  }
   0x3 LB: > { %s29_s18 = sadd.s32 1, %s1662_s15  ;;  %s32_s19 = sadd.s32 1, %s1666_s16  ;;  %s1670_s17 = sphi %s1737_s17, %s20_s17   ;;  %s1666_s16 = sphi %s1735_s16, %s1897_s16   ;;  %s1662_s15 = sphi %s1733_s15, %s1896_s15   ;;  %s1658_s14 = sphi %s1731_s14, %s1895_s14   ;;  %s1654_s13 = sphi %s1729_s13, %s1894_s13  }
   0x4   : > { %p30_p0 = scmp.ge.s32.totalorder %s29_s18, 2  ;;  %p1484_p1 = scmp.ge.s32.totalorder %s1670_s17, 1 }
   0x5   : > { %p416_p2 = scmp.lt.s32.totalorder %s1670_s17, 5 }
   0x6   : > { %s1899_s18 = smov (%p30_p0, %s29_s18), 0  ;;  %s1901_s19 = smov (!%p30_p0, %s32_s19), %s1666_s16 }
   0x7   : > { %p417_p3 = pnand %p1484_p1, %p416_p2  ;;  %p34_p4 = scmp.ge.s32.totalorder %s1901_s19, 2 }
   0x8   : > { %p498_p5 = scmp.lt.s32.totalorder (!%p417_p3), %s1658_s14, 1  ;;  %p500_p6 = scmp.lt.s32.totalorder (!%p417_p3), %s1654_s13, 1 }
   0x9   : > { %s1903_s19 = smov (%p34_p4, %s1901_s19), 0  ;;  %420 = sbr.rel (%p417_p3) target bundleno = 1534 (0x5fe), region = 60 }
   0xe   : > { %s1905_s14 = smov (!%p498_p5, %s1658_s14), 1  ;;  %s1907_s13 = smov (!%p500_p6, %s1654_s13), 1  ;;  %vm576_vm0 = vcmask 261120   ;;  %vm964_vm1 = vcmask 64512   ;;  %v958_v36 = vlaneseq  ;;  %v1672_v41 = vmov -1e+30  }
   0xf   : > { %s1762_s20 = sshll.u32 %s1905_s14, 4  ;;  %s1485_s21 = sshll.u32 %s1905_s14, 1  ;;  %vm1088_vm3 = vcmask 1043456  }
  0x10   : > { %s518_s24 = scalar_lea.vmem %s1885_s2, %s1762_s20  ;;  %s503_s25 = sadd.s32 %s1485_s21, %s1907_s13  ;;  %v959_v37 = vshrl.u32 %v958_v36, 7  ;;  %v961_v38 = vand.u32 127, %v958_v36 }
  0x11   : > { %v1533_v0 = vld [vmem:[%s518_s24 + $0x8] sm:$0xff]  ;;  %s1769_s26 = sshll.u32 %s503_s25, 3  ;;  %v1532_v1 = vld [vmem:[%s518_s24] sm:$0xff]  ;;  %s521_s12 = scalar_lea.vmem %s1886_s3, %s1905_s14 }
  0x12   : > { %s505_s29 = scalar_lea.vmem %s1883_s0, %s1769_s26  ;;  %586 = vmatpush.bf16.msra.mxu0 %v1533_v0  ;;  %v1607_v4 = vld [vmem:[%s521_s12] ss:$0 sm:$0xff]  ;;  %s529_s22 = scalar_lea.vmem %s1888_s5, %s1905_s14  ;;  %vm962_vm2 = vcmp.le.s32.totalorder %v961_v38, %v959_v37 }
  0x13   : > { %v1775_v2 = vld [vmem:[%s505_s29] sm:$0xff]  ;;  %s526_s25 = scalar_lea.vmem %s1887_s4, %s1762_s20  ;;  %s513_s29 = scalar_lea.vmem %s1884_s1, %s1769_s26  ;;  %v963_v42 = vsel %vm962_vm2, 0.0, %v1672_v41 }
  0x14   : > { %v555_v3 = vpack.c.bf16 %v1775_v2, %v1775_v2  ;;  %v1535_v14 = vld [vmem:[%s526_s25 + $0x8] sm:$0xff]  ;;  %v1534_v15 = vld [vmem:[%s526_s25] sm:$0xff]  ;;  %s534_s21 = scalar_lea.vmem %s1889_s6, %s1762_s20  ;;  %s537_s23 = scalar_lea.vmem %s1890_s7, %s1905_s14 }
  0x15   : > { %623 = vmatpush.bf16.msra.mxu1 %v1535_v14  ;;  %v554_v16 = vld [vmem:[%s513_s29] sm:$0xff]  ;;  %s540_s27 = scalar_lea.vmem %s1891_s8, %s1905_s14  ;;  %s543_s30 = scalar_lea.vmem %s1892_s9, %s1905_s14 }
  0x16   : > { %587 = vmatpush.bf16.msra.mxu0 %v1532_v1  ;;  %v593_v17 = vpack.c.bf16 %v554_v16, %v554_v16  ;;  %v1608_v32 = vld [vmem:[%s529_s22] ss:$0 sm:$0xff] }
  0x19   : > { %1505 = vmatmul.msk.bf16.vlgmr.msra.gmra.mxu0 %vm576_vm0, %v555_v3  ;;  %624 = vmatpush.bf16.msra.mxu1 %v1534_v15 }
  0x1c   : > { %1514 = vmatmul.msk.bf16.vlgmr.msra.gmra.mxu1 %vm576_vm0, %v593_v17 }
  0x96   : > { %v589_v5 = vpop.f32.mrf.mxu0 }
  0x97   : > { %v590_v6 = vadd.f32 %v1607_v4, %v589_v5 }
  0x99   : > { %630 = vxpose.xlu0.b32.start.end [1/1] (short) (narrow) %v590_v6, 32  ;;  %v626_v33 = vpop.f32.mrf.mxu1 }
  0x9a   : > { %v627_v34 = vadd.f32 %v1608_v32, %v626_v33 }
  0x9e   : > { %v591_v7 = vpop.f32.mrf.mxu0 }
  0xa1   : > { %v628_v35 = vpop.f32.mrf.mxu1 }
 0x13d   : > { %v646_v8 = vpop.trf.xlu0 }
 0x145   : > { %v647_v9 = vpop.trf.xlu0 }
 0x146   : > { %v1579_v10 = vpack.i.bf16 %v647_v9, %v646_v8 }
 0x148   : > { %1580 = vxpose.xlu0.b32.start.end [1/1] (short) (narrow) %v1579_v10, 8 }
 0x14d   : > { %v648_v11 = vpop.trf.xlu0 }
 0x150   : > { %794 = vxpose.xlu0.b32.start.end [1/1] (short) (narrow) %v627_v34, 32 }
 0x155   : > { %v649_v12 = vpop.trf.xlu0 }
 0x156   : > { %v1586_v13 = vpack.i.bf16 %v649_v12, %v648_v11 }
 0x158   : > { %1587 = vxpose.xlu1.b32.start.end [1/1] (short) (narrow) %v1586_v13, 8 }
 0x1ec   : > { %v1581_v18 = vpop.trf.xlu0 }
 0x1ed   : > { %v1582_v19 = vunpack.i.l.bf16 %v1581_v18  ;;  %v1585_v20 = vunpack.i.h.bf16 %v1581_v18 }
 0x1ef   : > { %v790_v21 = vpack.c.bf16 %v1582_v19, %v1582_v19  ;;  %v791_v22 = vpack.c.bf16 %v1585_v20, %v1585_v20 }
 0x1f1   : > { %v966_v23 = vsel %vm964_vm1, %v790_v21, 0  ;;  %v982_v24 = vsel %vm964_vm1, %v791_v22, 0 }
 0x1f2   : > { %975 = vmatpush.bf16.xpose.msra.mxu2 %v966_v23  ;;  %991 = vmatpush.bf16.xpose.msra.mxu3 %v982_v24 }
 0x1f4   : > { %v810_v18 = vpop.trf.xlu0 }
 0x1f9   : > { %1515 = vmatmul.msk.bf16.vlgmr.msra.gmra.mxu2 %vm964_vm1, %v790_v21  ;;  %1516 = vmatmul.msk.bf16.vlgmr.msra.gmra.mxu3 %vm964_vm1, %v791_v22 }
 0x1fc   : > { %v1588_v25 = vpop.trf.xlu1  ;;  %v811_v19 = vpop.trf.xlu0 }
 0x1fd   : > { %v1589_v26 = vunpack.i.l.bf16 %v1588_v25  ;;  %v1592_v27 = vunpack.i.h.bf16 %v1588_v25  ;;  %v1593_v21 = vpack.i.bf16 %v811_v19, %v810_v18 }
 0x1ff   : > { %v792_v28 = vpack.c.bf16 %v1589_v26, %v1589_v26  ;;  %v793_v29 = vpack.c.bf16 %v1592_v27, %v1592_v27 }
 0x201   : > { %v998_v30 = vsel %vm964_vm1, %v792_v28, 0  ;;  %v1014_v31 = vsel %vm964_vm1, %v793_v29, 0 }
 0x202   : > { %1007 = vmatpush.bf16.xpose.msrb.mxu0 %v998_v30  ;;  %1023 = vmatpush.bf16.xpose.msrb.mxu1 %v1014_v31 }
 0x204   : > { %v812_v20 = vpop.trf.xlu0 }
 0x209   : > { %1517 = vmatmul.msk.bf16.vlgmr.msrb.gmra.mxu0 %vm964_vm1, %v792_v28  ;;  %1518 = vmatmul.msk.bf16.vlgmr.msrb.gmra.mxu1 %vm964_vm1, %v793_v29 }
 0x20c   : > { %v813_v22 = vpop.trf.xlu0 }
 0x20d   : > { %v1600_v23 = vpack.i.bf16 %v813_v22, %v812_v20 }
 0x27c   : > { %v977_v39 = vpop.f32.mrf.mxu2  ;;  %v993_v40 = vpop.f32.mrf.mxu3 }
 0x27d   : > { %v1029_v43 = vmul.f32 0.35355338, %v977_v39  ;;  %v1030_v44 = vmul.f32 0.35355338, %v993_v40 }
 0x27f   : > { %v1034_v45 = vadd.f32 %v1030_v44, %v963_v42  ;;  %v1033_v46 = vadd.f32 %v1029_v43, %v963_v42 }
 0x281   : > { %v1040_v47 = vsel %vm964_vm1, %v1034_v45, -inf  ;;  %v1037_v48 = vsel %vm964_vm1, %v1033_v46, -inf }
 0x282   : > { %1041 = vmax.xlane.f32.xlu2 %v1040_v47  ;;  %1038 = vmax.xlane.f32.xlu1 %v1037_v48 }
 0x284   : > { %v979_v49 = vpop.f32.mrf.mxu2  ;;  %v995_v50 = vpop.f32.mrf.mxu3 }
 0x286   : > { %v1009_v51 = vpop.f32.mrf.mxu0  ;;  %v1025_v52 = vpop.f32.mrf.mxu1 }
 0x287   : > { %v1031_v53 = vmul.f32 0.35355338, %v1009_v51  ;;  %v1032_v55 = vmul.f32 0.35355338, %v1025_v52 }
 0x289   : > { %v1035_v54 = vadd.f32 %v1031_v53, %v963_v42  ;;  %v1036_v59 = vadd.f32 %v1032_v55, %v963_v42  ;;  %v1167_v55 = vld [vmem:[%s534_s21 + $0x4] sm:$0xf] }
 0x28b   : > { %v1043_v56 = vsel %vm964_vm1, %v1035_v54, -inf  ;;  %v1046_v60 = vsel %vm964_vm1, %v1036_v59, -inf }
 0x28c   : > { %1044 = vmax.xlane.f32.xlu2 %v1043_v56 }
 0x28e   : > { %v1011_v57 = vpop.f32.mrf.mxu0  ;;  %v1027_v58 = vpop.f32.mrf.mxu1 }
 0x28f   : > { %v1193_v57 = vsel %vm1088_vm3, %v1167_v55, 0  ;;  %v1168_v58 = vld [vmem:[%s534_s21 + $0x8] sm:$0xf] }
 0x294   : > { %1047 = vmax.xlane.f32.xlu2 %v1046_v60  ;;  %v1212_v60 = vsel %vm1088_vm3, %v1168_v58, 0 }
 0x2f5   : > { %v1039_v61 = vpop.xlane.xlu1 %1038  ;;  %v1042_v62 = vpop.xlane.xlu2 %1041 }
 0x2f6   : > { %v1049_v63 = vsub.f32 %v1033_v46, %v1039_v61  ;;  %v1050_v1 = vsub.f32 %v1034_v45, %v1042_v62 }
 0x2f8   : > { %v1053_v0 = vmul.f32 1.442695, %v1049_v63  ;;  %v1055_v3 = vmul.f32 1.442695, %v1050_v1 }
 0x2fa   : > { %1612 = vpow2.f32 %v1053_v0 }
 0x2fb   : > { %1614 = vpow2.f32 %v1055_v3 }
 0x2ff   : > { %v1045_v4 = vpop.xlane.xlu2 %1044 }
 0x300   : > { %v1613_v5 = vpop.eup %1612  ;;  %v1051_v6 = vsub.f32 %v1035_v54, %v1045_v4  ;;  %v1166_v54 = vld [vmem:[%s534_s21] sm:$0xf] }
 0x301   : > { %v1061_v7 = vsel %vm964_vm1, %v1613_v5, 0.0  ;;  %v1615_v9 = vpop.eup %1614  ;;  %v1174_v56 = vsel %vm1088_vm3, %v1166_v54, 0 }
 0x302   : > { %1062 = vadd.xlane.f32.xlu2 %v1061_v7  ;;  %v1057_v8 = vmul.f32 1.442695, %v1051_v6  ;;  %v1064_v13 = vsel %vm964_vm1, %v1615_v9, 0.0 }
 0x304   : > { %1616 = vpow2.f32 %v1057_v8 }
 0x307   : > { %v1048_v10 = vpop.xlane.xlu2 %1047 }
 0x308   : > { %v1052_v11 = vsub.f32 %v1036_v59, %v1048_v10  ;;  %v1169_v59 = vld [vmem:[%s534_s21 + $0xc] sm:$0xf] }
 0x309   : > { %v1231_v61 = vsel %vm1088_vm3, %v1169_v59, 0 }
 0x30a   : > { %v1059_v12 = vmul.f32 1.442695, %v1052_v11  ;;  %1065 = vadd.xlane.f32.xlu2 %v1064_v13  ;;  %v1617_v14 = vpop.eup %1616  ;;  %v1609_v13 = vld [vmem:[%s537_s23] ss:$0 sm:$0xff]  ;;  %s551_s23 = scalar_lea.vmem %s1893_s10, %s1769_s26 }
 0x30b   : > { %v1067_v16 = vsel %vm964_vm1, %v1617_v14, 0.0 }
 0x30c   : > { %1618 = vpow2.f32 %v1059_v12 }
 0x312   : > { %v1619_v15 = vpop.eup %1618  ;;  %1068 = vadd.xlane.f32.xlu2 %v1067_v16 }
 0x313   : > { %v1070_v17 = vsel %vm964_vm1, %v1619_v15, 0.0 }
 0x314   : > { %1071 = vadd.xlane.f32.xlu0 %v1070_v17 }
 0x33b   : > { %1594 = vxpose.xlu2.b32.start.end [1/1] (short) (narrow) %v1593_v21, 8 }
 0x343   : > { %1601 = vxpose.xlu2.b32.start.end [1/1] (short) (narrow) %v1600_v23, 8 }
 0x375   : > { %v1063_v24 = vpop.xlane.xlu2 %1062 }
 0x376   : > { %1620 = vrcp.f32 %v1063_v24 }
 0x37c   : > { %v1621_v27 = vpop.eup %1620 }
 0x37d   : > { %v1066_v25 = vpop.xlane.xlu2 %1065  ;;  %v1077_v33 = vmul.f32 %v1621_v27, %v1613_v5 }
 0x37e   : > { %1622 = vrcp.f32 %v1066_v25 }
 0x37f   : > { %v1081_v40 = vpack.c.bf16 %v1077_v33, %v1077_v33 }
 0x384   : > { %v1623_v29 = vpop.eup %1622 }
 0x385   : > { %v1069_v26 = vpop.xlane.xlu2 %1068  ;;  %v1078_v34 = vmul.f32 %v1623_v29, %v1615_v9 }
 0x386   : > { %1624 = vrcp.f32 %v1069_v26  ;;  %v1673_v26 = vmov 32.0  }
 0x387   : > { %v1072_v28 = vpop.xlane.xlu0 %1071  ;;  %v1082_v41 = vpack.c.bf16 %v1078_v34, %v1078_v34 }
 0x388   : > { %1626 = vrcp.f32 %v1072_v28 }
 0x389   : > { %1628 = vrcp.f32 %v1673_v26 }
 0x38c   : > { %v1625_v39 = vpop.eup %1624 }
 0x38d   : > { %v1079_v46 = vmul.f32 %v1625_v39, %v1617_v14 }
 0x38e   : > { %v1627_v42 = vpop.eup %1626 }
 0x38f   : > { %v1080_v47 = vmul.f32 %v1627_v42, %v1619_v15  ;;  %v1083_v52 = vpack.c.bf16 %v1079_v46, %v1079_v46  ;;  %v1629_v27 = vpop.eup %1628  ;;  %v1610_v46 = vld [vmem:[%s540_s27] ss:$0 sm:$0xff] }
 0x390   : > { %v1259_v28 = vmul.f32 32.0, %v1629_v27  ;;  %vm1263_vm4 = vweird.f32 %v1629_v27 }
 0x391   : > { %v1084_v53 = vpack.c.bf16 %v1080_v47, %v1080_v47 }
 0x392   : > { %v1260_v29 = vsub.f32 1.0, %v1259_v28 }
 0x3d4   : > { %v1595_v30 = vpop.trf.xlu2 }
 0x3d5   : > { %v1596_v31 = vunpack.i.l.bf16 %v1595_v30  ;;  %v1599_v32 = vunpack.i.h.bf16 %v1595_v30  ;;  %v1261_v30 = vmul.f32 %v1629_v27, %v1260_v29 }
 0x3d7   : > { %v954_v35 = vpack.c.bf16 %v1596_v31, %v1596_v31  ;;  %v955_v36 = vpack.c.bf16 %v1599_v32, %v1599_v32  ;;  %v1262_v31 = vadd.f32 %v1629_v27, %v1261_v30 }
 0x3d9   : > { %v1090_v37 = vsel %vm1088_vm3, %v954_v35, 0  ;;  %v1109_v38 = vsel %vm1088_vm3, %v955_v36, 0  ;;  %v1264_v32 = vsel %vm1263_vm4, %v1629_v27, %v1262_v31 }
 0x3da   : > { %1099 = vmatpush.bf16.msrb.mxu2 %v1090_v37  ;;  %1118 = vmatpush.bf16.msrb.mxu3 %v1109_v38 }
 0x3dc   : > { %v1602_v43 = vpop.trf.xlu2 }
 0x3dd   : > { %v1606_v44 = vunpack.i.h.bf16 %v1602_v43  ;;  %v1603_v45 = vunpack.i.l.bf16 %v1602_v43  ;;  %1519 = vmatmul.msk.bf16.vlgmr.msrb.gmra.mxu2 %vm964_vm1, %v1081_v40  ;;  %1520 = vmatmul.msk.bf16.vlgmr.msrb.gmra.mxu3 %vm964_vm1, %v1082_v41 }
 0x3de   : > { %1183 = vmatpush.bf16.msra.mxu2 %v1174_v56  ;;  %1202 = vmatpush.bf16.msra.mxu3 %v1193_v57 }
 0x3df   : > { %v956_v48 = vpack.c.bf16 %v1603_v45, %v1603_v45  ;;  %v957_v49 = vpack.c.bf16 %v1606_v44, %v1606_v44 }
 0x3e1   : > { %v1128_v50 = vsel %vm1088_vm3, %v956_v48, 0  ;;  %v1147_v51 = vsel %vm1088_vm3, %v957_v49, 0  ;;  %v1611_v48 = vld [vmem:[%s543_s30] ss:$0 sm:$0xff] }
 0x3e2   : > { %1137 = vmatpush.bf16.msra.mxu0 %v1128_v50  ;;  %1156 = vmatpush.bf16.msra.mxu1 %v1147_v51 }
 0x3e5   : > { %1521 = vmatmul.msk.bf16.vlgmr.msra.gmra.mxu0 %vm964_vm1, %v1083_v52  ;;  %1522 = vmatmul.msk.bf16.vlgmr.msra.gmra.mxu1 %vm964_vm1, %v1084_v53 }
 0x3e6   : > { %1221 = vmatpush.bf16.msrb.mxu0 %v1212_v60  ;;  %1240 = vmatpush.bf16.msrb.mxu1 %v1231_v61 }
 0x460   : > { %v1101_v62 = vpop.f32.mrf.mxu2  ;;  %v1120_v63 = vpop.f32.mrf.mxu3 }
 0x461   : > { %v1162_v0 = vpack.c.bf16 %v1101_v62, %v1101_v62  ;;  %v1163_v1 = vpack.c.bf16 %v1120_v63, %v1120_v63 }
 0x462   : > { %v1139_v3 = vpop.f32.mrf.mxu0  ;;  %v1158_v4 = vpop.f32.mrf.mxu1 }
 0x463   : > { %v1164_v5 = vpack.c.bf16 %v1139_v3, %v1139_v3  ;;  %v1165_v6 = vpack.c.bf16 %v1158_v4, %v1158_v4  ;;  %1523 = vmatmul.msk.bf16.vlgmr.msra.gmra.mxu2 %vm964_vm1, %v1162_v0  ;;  %1524 = vmatmul.msk.bf16.vlgmr.msra.gmra.mxu3 %vm964_vm1, %v1163_v1 }
 0x465   : > { %1525 = vmatmul.msk.bf16.vlgmr.msrb.gmra.mxu0 %vm964_vm1, %v1164_v5  ;;  %1526 = vmatmul.msk.bf16.vlgmr.msrb.gmra.mxu1 %vm964_vm1, %v1165_v6 }
 0x468   : > { %v1103_v7 = vpop.f32.mrf.mxu2  ;;  %v1122_v8 = vpop.f32.mrf.mxu3 }
 0x46a   : > { %v1141_v9 = vpop.f32.mrf.mxu0  ;;  %v1160_v10 = vpop.f32.mrf.mxu1 }
 0x4e2   : > { %v1223_v11 = vpop.f32.mrf.mxu0  ;;  %v1242_v12 = vpop.f32.mrf.mxu1 }
 0x4e6   : > { %v1185_v14 = vpop.f32.mrf.mxu2  ;;  %v1204_v15 = vpop.f32.mrf.mxu3 }
 0x4e7   : > { %v1250_v16 = vadd.f32 %v1609_v13, %v1185_v14 }
 0x4e9   : > { %v1251_v17 = vadd.f32 %v1250_v16, %v1204_v15 }
 0x4ea   : > { %v1225_v18 = vpop.f32.mrf.mxu0  ;;  %v1244_v19 = vpop.f32.mrf.mxu1 }
 0x4eb   : > { %v1252_v20 = vadd.f32 %v1251_v17, %v1223_v11 }
 0x4ed   : > { %v1253_v21 = vadd.f32 %v1252_v20, %v1242_v12 }
 0x4ee   : > { %v1187_v22 = vpop.f32.mrf.mxu2  ;;  %v1206_v23 = vpop.f32.mrf.mxu3 }
 0x4ef   : > { %v1254_v24 = vadd.f32 %v1253_v21, %v1775_v2 }
 0x4f1   : > { %v1255_v25 = vsel %vm576_vm0, %v1254_v24, 0.0 }
 0x4f2   : > { %1256 = vadd.xlane.f32.xlu2 %v1255_v25 }
 0x565   : > { %v1257_v33 = vpop.xlane.xlu2 %1256 }
 0x566   : > { %v1265_v34 = vmul.f32 %v1264_v32, %v1257_v33 }
 0x568   : > { %v1266_v35 = vsub.f32 %v1254_v24, %v1265_v34 }
 0x56a   : > { %v1267_v36 = vmul.f32 %v1266_v35, %v1266_v35 }
 0x56c   : > { %v1268_v37 = vsel %vm576_vm0, %v1267_v36, 0.0 }
 0x56d   : > { %1269 = vadd.xlane.f32.xlu1 %v1268_v37 }
 0x5e0   : > { %v1270_v2 = vpop.xlane.xlu1 %1269 }
 0x5e1   : > { %v1271_v38 = vmul.f32 %v1270_v2, %v1264_v32 }
 0x5e3   : > { %v1272_v39 = vadd.f32 1e-05, %v1271_v38 }
 0x5e5   : > { %1630 = vrsqrt.f32 %v1272_v39  ;;  %vm1279_vm6 = vweird.f32 %v1272_v39 }
 0x5eb   : > { %v1631_v40 = vpop.eup %1630 }
 0x5ec   : > { %v1274_v41 = vmul.f32 %v1631_v40, %v1272_v39  ;;  %vm1280_vm5 = vweird.f32 %v1631_v40 }
 0x5ed   : > { %vm1281_vm7 = vmor %vm1279_vm6, %vm1280_vm5 }
 0x5ee   : > { %v1275_v42 = vmul.f32 %v1631_v40, %v1274_v41 }
 0x5f0   : > { %v1276_v43 = vmul.f32 0.5, %v1275_v42 }
 0x5f2   : > { %v1277_v44 = vsub.f32 1.5, %v1276_v43 }
 0x5f4   : > { %v1278_v45 = vmul.f32 %v1631_v40, %v1277_v44 }
 0x5f6   : > { %v1282_v47 = vsel %vm1281_vm7, %v1631_v40, %v1278_v45 }
 0x5f7   : > { %v1283_v49 = vmul.f32 %v1282_v47, %v1266_v35 }
 0x5f9   : > { %v1288_v50 = vmul.f32 %v1610_v46, %v1283_v49 }
 0x5fb   : > { %v1293_v51 = vadd.f32 %v1611_v48, %v1288_v50 }
 0x5fd   : > { %1294 = vst.msk [vmem:[%s551_s23] sm:$0xff] %vm576_vm0, %v1293_v51 }
 0x5fe PF: > { %s20_s17 = sadd.s32 1, %s1670_s17   ;;  %s1894_s13 = smov %s1662_s15 }
 0x5ff   : > { %p17_p7 = scmp.ge.s32.totalorder %s20_s17, 6   ;;  %s1895_s14 = smov %s1666_s16 }
 0x600   : > { %s1896_s15 = smov %s1899_s18  ;;  %s1897_s16 = smov %s1903_s19 }
 0x601   :  { %19 = sbr.rel (!%p17_p7) target bundleno = 3 (0x3), region = 117 }

// kernel: lsktsk_forward.11
= control target key start
LH: loop header
LB: loop body
LE: loop exit
PB: predicated region body
PF: predicated region fallthrough
CT: control target
= control target key end

     0   :  { %10 = vsyncpa [#allocation3], 0  ;;  %s654_s0 = inlined_call_operand.vmem [shape: f32[16,32], index: 0, kind: input, shape index: {}]   ;;  %s655_s1 = inlined_call_operand.vmem [shape: bf16[32,16], index: 1, kind: input, shape index: {}]   ;;  %s656_s2 = inlined_call_operand.vmem [shape: f32[1,16], index: 2, kind: input, shape index: {}]   ;;  %s657_s3 = inlined_call_operand.vmem [shape: bf16[16,10], index: 3, kind: input, shape index: {}]   ;;  %s658_s4 = inlined_call_operand.vmem [shape: f32[1,10], index: 4, kind: input, shape index: {}]   ;;  %s659_s5 = inlined_call_operand.hbm [shape: f32[16,10], index: 5, kind: output, shape index: {}]  }
   0x1   :  { %12 = vsyncpa [#allocation3 + $0x1], 0  ;;  %s554_s18 = smov 0   ;;  %s556_s19 = smov 0  }
   0x2   :  { %s558_s20 = smov 0   ;;  %s560_s21 = smov 0  }
   0x3 LB: > { %s575_s22 = sadd.s32 4294967295, %s522_s21   ;;  %s387_s23 = sadd.s32 4294967294, %s522_s21   ;;  %s522_s21 = sphi %s560_s21, %s665_s21   ;;  %s518_s20 = sphi %s558_s20, %s664_s20   ;;  %s514_s19 = sphi %s556_s19, %s663_s19   ;;  %s510_s18 = sphi %s554_s18, %s662_s18  }
   0x4   : > { %s579_s24 = sadd.s32 1, %s522_s21   ;;  %s135_s25 = sadd.s32 1, %s518_s20 }
   0x5   : > { %s132_s26 = ssub.s32 %s522_s21, %s579_s24  ;;  %p145_p0 = scmp.ne.s32.totalorder %s518_s20, %s514_s19 }
   0x6   : > { %p133_p1 = scmp.eq.s32.totalorder %s132_s26, 0  ;;  %p146_p2 = scmp.eq.s32.totalorder %s575_s22, 1 }
   0x7   : > { %p151_p3 = scmp.ne.s32.totalorder %s514_s19, %s510_s18  ;;  %p152_p4 = scmp.eq.s32.totalorder %s387_s23, 1 }
   0x8   : > { %s590_s27 = scalar_select %p133_p1, %s518_s20, %s135_s25  }
   0x9   : > { %p592_p5 = por %p146_p2, %p145_p0  ;;  %p596_p6 = por %p152_p4, %p151_p3 }
   0xa   : > { %p390_p7 = scmp.ge.s32.totalorder %s522_s21, 1  ;;  %p189_p8 = scmp.lt.s32.totalorder %s522_s21, 3 }
   0xc   : > { %p190_p9 = pnand %p390_p7, %p189_p8 }
   0xd   : > { %p216_p10 = scmp.lt.s32.totalorder (!%p190_p9), %s575_s22, 1  ;;  %s213_s26 = sand.u32 (!%p190_p9), 1, %s514_s19  }
   0xe   : > { %193 = sbr.rel (%p190_p9) target bundleno = 318 (0x13e), region = 40  ;;  %s391_s30 = sshll.u32 (!%p190_p9), %s213_s26, 3 }
   0xf   : > { %s409_s6 = sshll.u32 (!%p190_p9), %s575_s22, 3  ;;  %s480_s17 = scalar_lea.hbm (!%p190_p9), %s659_s5, 16 }
  0x13   : > { %v413_v0 = vld [vmem:[%s655_s1 + $0x8] sm:$0xff]  ;;  %v412_v1 = vld [vmem:[%s655_s1] sm:$0xff]  ;;  %s217_s9 = scalar_select %p216_p10, %s575_s22, 1  ;;  %vm243_vm0 = vcmask 261120   ;;  %vm274_vm1 = vcmask 130048   ;;  %vm310_vm5 = vcmask 80896  }
  0x14   : > { %253 = vmatpush.bf16.msra.mxu0 %v413_v0  ;;  %v414_v4 = vld [vmem:[%s657_s3] sm:$0xff]  ;;  %s313_s22 = scalar_lea.sflag [#allocation3], %s213_s26 }
  0x15   : > { %s392_s10 = sshll.u32 %s217_s9, 3  ;;  %285 = vmatpush.bf16.msra.mxu1 %v414_v4  ;;  %v454_v5 = vld [vmem:[%s656_s2] ss:$0 sm:$0xff]  ;;  %s323_s9 = scalar_lea.hbm %s659_s5, %s409_s6 }
  0x16   : > { %s219_s13 = scalar_lea.vmem %s654_s0, %s392_s10  ;;  %v455_v11 = vld [vmem:[%s658_s4] ss:$0 sm:$0xff]  ;;  %s215_s10 = scalar_lea.vmem [#allocation2], %s391_s30 }
  0x17   : > { %v221_v2 = vld [vmem:[%s219_s13] sm:$0xff]  ;;  %s325_s11 = sshll.u32 %s215_s10, 4  ;;  %s327_s12 = sshll.u32 %s323_s9, 4  ;;  %s326_s11 = int_to_ptr.vmem [resolvable:$true] %s325_s11  ;;  %s328_s12 = int_to_ptr.hbm [resolvable:$true] %s327_s12 }
  0x18   : > { %254 = vmatpush.bf16.msra.mxu0 %v412_v1  ;;  %v222_v3 = vpack.c.bf16 %v221_v2, %v221_v2  ;;  %s474_s13 = sshra.s32 %s328_s12, 4  ;;  %s475_s13 = int_to_ptr.hbm [resolvable:$true] %s474_s13 }
  0x19   : > { %s476_s14 = scalar_lea.hbm %s475_s13, 8  ;;  %p481_p0 = scmp.lt.s32.totalorder %s475_s13, %s659_s5 }
  0x1a   : > { %p477_p11 = scmp.ne.s32.totalorder %s475_s13, %s476_s14  ;;  %p482_p1 = scmp.lt.s32.totalorder %s480_s17, %s476_s14 }
  0x1b   : > { %401 = vmatmul.msk.bf16.vlgmr.msra.gmra.mxu0 %vm243_vm0, %v222_v3 }
  0x1c   : > { %p478_p12 = pnand %p477_p11, %p592_p5  ;;  %p483_p2 = por %p482_p1, %p481_p0 }
  0x1e   : > { %p479_p13 = pneg %p478_p12 }
  0x20   : > { %p484_p3 = pnand %p483_p2, %p479_p13 }
  0x98   : > { %v256_v6 = vpop.f32.mrf.mxu0 }
  0x99   : > { %v257_v7 = vadd.f32 %v454_v5, %v256_v6 }
  0x9b   : > { %v260_v8 = vmax.f32 %v257_v7, 0.0 }
  0x9d   : > { %v261_v9 = vpack.c.bf16 %v260_v8, %v260_v8 }
  0x9f   : > { %406 = vmatmul.msk.bf16.vlgmr.msra.gmra.mxu1 %vm274_vm1, %v261_v9 }
  0xa0   : > { %v258_v10 = vpop.f32.mrf.mxu0 }
 0x11c   : > { %v287_v12 = vpop.f32.mrf.mxu1 }
 0x11d   : > { %v288_v13 = vadd.f32 %v455_v11, %v287_v12 }
 0x11f   : > { %v407_v14 = vmul.f32 -1.442695, %v288_v13 }
 0x121   : > { %456 = vpow2.f32 %v407_v14 }
 0x124   : > { %v289_v15 = vpop.f32.mrf.mxu1 }
 0x127   : > { %v457_v16 = vpop.eup %456 }
 0x128   : > { %v294_v17 = vadd.f32 1.0, %v457_v16 }
 0x12a   : > { %458 = vrcp.f32 %v294_v17  ;;  %v306_v21 = vand.u32 2147483648, %v294_v17  ;;  %v304_v23 = vand.u32 2147483647, %v294_v17  ;;  %vm300_vm3 = vweird.f32 %v294_v17 }
 0x12c   : > { %v307_v25 = vor.u32 1.1754944e-38, %v306_v21  ;;  %vm305_vm6 = vcmp.eq.f32.partialorder %v304_v23, 8.507059e+37 }
 0x130   : > { %v459_v18 = vpop.eup %458 }
 0x131   : > { %v296_v19 = vmul.f32 %v459_v18, %v294_v17  ;;  %vm301_vm2 = vweird.f32 %v459_v18 }
 0x132   : > { %vm302_vm4 = vmor %vm300_vm3, %vm301_vm2 }
 0x133   : > { %v297_v20 = vsub.f32 1.0, %v296_v19 }
 0x135   : > { %v298_v22 = vmul.f32 %v459_v18, %v297_v20 }
 0x137   : > { %v299_v24 = vadd.f32 %v459_v18, %v298_v22 }
 0x139   : > { %v303_v26 = vsel %vm302_vm4, %v459_v18, %v299_v24 }
 0x13a   : > { %v308_v27 = vsel %vm305_vm6, %v307_v25, %v303_v26 }
 0x13b   : > { %311 = vst.msk [vmem:[%s215_s10] sm:$0xff] %vm310_vm5, %v308_v27 }
 0x13c   : > { %487 = shalt.err (!%p484_p3)
}
 0x13d   : > { %415 = dma.vmem_to_hbm [thread:$0]  (%p592_p5), %s326_s11, 128, %s328_s12, %s313_s22  }
 0x13e PF: > { %p421_p4 = scmp.ge.s32.totalorder %s522_s21, 2  ;;  %s339_s26 = sand.u32 1, %s510_s18  }
 0x13f   : > { %s340_s30 = scalar_lea.sflag [#allocation3], %s339_s26 }
 0x140   : > { %p418_p7 = pnand %p421_p4, %p596_p6 }
 0x142   : > { %p419_p8 = pneg %p418_p7 }
 0x144   : > { %505 = dma.done.wait (%p419_p8), %s340_s30, 128  }
 0x145   : > { %507 = vsyncadd (%p419_p8), %s340_s30, 4294967168  ;;  %p15_p9 = scmp.ge.s32.totalorder %s579_s24, 4   ;;  %s662_s18 = smov %s514_s19 }
 0x146   : > { %s663_s19 = smov %s518_s20  ;;  %s664_s20 = smov %s590_s27 }
 0x147   : > { %s665_s21 = smov %s579_s24  ;;  %17 = sbr.rel (!%p15_p9) target bundleno = 3 (0x3), region = 75 }
 0x14c   :  { %346 = vsyncpa [#allocation3], 1 }
 0x14d   :  { %348 = vsyncpa [#allocation3 + $0x1], 1 }

// kernel: lsktsk_forward.10
= control target key start
LH: loop header
LB: loop body
LE: loop exit
PB: predicated region body
PF: predicated region fallthrough
CT: control target
= control target key end

     0   :  { %s2246_s21 = smov 0   ;;  %s2248_s22 = smov 0   ;;  %s2438_s0 = inlined_call_operand.vmem [shape: f32[2,2,8,32], index: 0, kind: input, shape index: {}, may-alias: {0,1}]   ;;  %s2439_s1 = inlined_call_operand.vmem [shape: f32[2,2,8,32], index: 1, kind: input, shape index: {}, may-alias: {0,1}]   ;;  %s2440_s2 = inlined_call_operand.vmem [shape: bf16[2,32,32], index: 2, kind: input, shape index: {}]   ;;  %s2441_s3 = inlined_call_operand.vmem [shape: f32[2,1,32], index: 3, kind: input, shape index: {}]   ;;  %s2442_s4 = inlined_call_operand.vmem [shape: bf16[2,32,32], index: 4, kind: input, shape index: {}]   ;;  %s2443_s5 = inlined_call_operand.vmem [shape: f32[2,1,32], index: 5, kind: input, shape index: {}]   ;;  %s2444_s6 = inlined_call_operand.vmem [shape: bf16[2,4,8,32], index: 6, kind: input, shape index: {}]   ;;  %s2445_s7 = inlined_call_operand.vmem [shape: f32[2,1,32], index: 7, kind: input, shape index: {}]   ;;  %s2446_s8 = inlined_call_operand.vmem [shape: f32[2,1,32], index: 8, kind: input, shape index: {}]   ;;  %s2447_s9 = inlined_call_operand.vmem [shape: f32[2,1,32], index: 9, kind: input, shape index: {}]   ;;  %s2448_s10 = inlined_call_operand.vmem [shape: bf16[2,32,64], index: 10, kind: input, shape index: {}]   ;;  %s2449_s11 = inlined_call_operand.vmem [shape: f32[2,1,64], index: 11, kind: input, shape index: {}]   ;;  %s2450_s12 = inlined_call_operand.vmem [shape: bf16[2,64,32], index: 12, kind: input, shape index: {}]   ;;  %s2451_s13 = inlined_call_operand.vmem [shape: f32[2,1,32], index: 13, kind: input, shape index: {}]   ;;  %s2452_s14 = inlined_call_operand.vmem [shape: f32[2,1,32], index: 14, kind: input, shape index: {}]   ;;  %s2453_s15 = inlined_call_operand.vmem [shape: f32[2,1,32], index: 15, kind: input, shape index: {}]   ;;  %s2454_s16 = inlined_call_operand.vmem [shape: f32[2,2,8,32], index: 16, kind: output, shape index: {}]  }
   0x1   :  { %2458 = sst [smem:[#allocation7_spill]] %s2438_s0  ;;  %s2250_s23 = smov 0  }
   0x2   :  { %2459 = sst [smem:[#allocation8_spill]] %s2454_s16  ;;  %s2252_s24 = smov 0  }
   0x3   :  { %s2254_s25 = smov 0  }
   0x4 LB: > { %2460 = sst [smem:[#allocation2_spill]] %s2149_s23  ;;  %s35_s26 = sadd.s32 1, %s2149_s23  ;;  %s2157_s25 = sphi %s2254_s25, %s26_s25   ;;  %s2153_s24 = sphi %s2252_s24, %s2471_s24   ;;  %s2149_s23 = sphi %s2250_s23, %s2470_s23   ;;  %s2145_s22 = sphi %s2248_s22, %s2469_s22   ;;  %s2141_s21 = sphi %s2246_s21, %s2468_s21  }
   0x5   : > { %2461 = sst [smem:[#allocation3_spill]] %s2153_s24  ;;  %s38_s27 = sadd.s32 1, %s2153_s24 }
   0x6   : > { %2462 = sst [smem:[#allocation4_spill]] %s2157_s25  ;;  %p36_p0 = scmp.ge.s32.totalorder %s35_s26, 2 }
   0x7   : > { %p1927_p1 = scmp.ge.s32.totalorder %s2157_s25, 1  ;;  %p618_p2 = scmp.lt.s32.totalorder %s2157_s25, 5 }
   0x8   : > { %s2473_s26 = smov (%p36_p0, %s35_s26), 0  ;;  %s2475_s27 = smov (!%p36_p0, %s38_s27), %s2153_s24 }
   0x9   : > { %2463 = sst [smem:[#allocation5_spill]] %s2473_s26  ;;  %p619_p3 = pnand %p1927_p1, %p618_p2 }
   0xa   : > { %p40_p4 = scmp.ge.s32.totalorder %s2475_s27, 2  ;;  %p734_p5 = scmp.lt.s32.totalorder (!%p619_p3), %s2145_s22, 1 }
   0xb   : > { %622 = sbr.rel (%p619_p3) target bundleno = 2080 (0x820), region = 84  ;;  %p736_p6 = scmp.lt.s32.totalorder (!%p619_p3), %s2141_s21, 1 }
   0xc   : > { %s2477_s27 = smov (%p40_p4, %s2475_s27), 0  ;;  %s2465_s26 = sld [smem:[#allocation7_spill]] (!%p619_p3) }
   0xd   : > { %2464 = sst [smem:[#allocation6_spill]] %s2477_s27 }
  0x10   : > { %s2479_s22 = smov (!%p734_p5, %s2145_s22), 1  ;;  %s2481_s21 = smov (!%p736_p6, %s2141_s21), 1  ;;  %vm834_vm0 = vcmask 261120   ;;  %vm1222_vm1 = vcmask 64512   ;;  %v1216_v36 = vlaneseq  ;;  %v2159_v41 = vmov -1e+30  }
  0x11   : > { %s2279_s28 = sshll.u32 %s2479_s22, 4  ;;  %s1928_s29 = sshll.u32 %s2479_s22, 1  ;;  %vm1346_vm3 = vcmask 1043456   ;;  %vm1627_vm8 = vcmask 523264  }
  0x12   : > { %s754_s17 = scalar_lea.vmem %s2440_s2, %s2279_s28  ;;  %s739_s18 = sadd.s32 %s1928_s29, %s2481_s21  ;;  %v1217_v37 = vshrl.u32 %v1216_v36, 7  ;;  %v1219_v38 = vand.u32 127, %v1216_v36 }
  0x13   : > { %v2008_v0 = vld [vmem:[%s754_s17 + $0x8] sm:$0xff]  ;;  %s2286_s19 = sshll.u32 %s739_s18, 3  ;;  %v2007_v1 = vld [vmem:[%s754_s17] sm:$0xff]  ;;  %s757_s16 = scalar_lea.vmem %s2441_s3, %s2479_s22 }
  0x14   : > { %s741_s24 = scalar_lea.vmem %s2465_s26, %s2286_s19  ;;  %844 = vmatpush.bf16.msra.mxu0 %v2008_v0  ;;  %v2088_v4 = vld [vmem:[%s757_s16] ss:$0 sm:$0xff]  ;;  %s762_s16 = scalar_lea.vmem %s2442_s4, %s2279_s28  ;;  %vm1220_vm2 = vcmp.le.s32.totalorder %v1219_v38, %v1217_v37 }
  0x15   : > { %v2292_v2 = vld [vmem:[%s741_s24] sm:$0xff]  ;;  %s765_s24 = scalar_lea.vmem %s2443_s5, %s2479_s22  ;;  %v2010_v14 = vld [vmem:[%s762_s16 + $0x8] sm:$0xff]  ;;  %s749_s30 = scalar_lea.vmem %s2439_s1, %s2286_s19  ;;  %v1221_v42 = vsel %vm1220_vm2, 0.0, %v2159_v41 }
  0x16   : > { %v813_v3 = vpack.c.bf16 %v2292_v2, %v2292_v2  ;;  %881 = vmatpush.bf16.msra.mxu1 %v2010_v14  ;;  %v2009_v15 = vld [vmem:[%s762_s16] sm:$0xff]  ;;  %s770_s21 = scalar_lea.vmem %s2444_s6, %s2279_s28  ;;  %s773_s25 = scalar_lea.vmem %s2445_s7, %s2479_s22 }
  0x17   : > { %v812_v16 = vld [vmem:[%s749_s30] sm:$0xff]  ;;  %s776_s27 = scalar_lea.vmem %s2446_s8, %s2479_s22  ;;  %s779_s0 = scalar_lea.vmem %s2447_s9, %s2479_s22 }
  0x18   : > { %845 = vmatpush.bf16.msra.mxu0 %v2007_v1  ;;  %v851_v17 = vpack.c.bf16 %v812_v16, %v812_v16  ;;  %v2089_v32 = vld [vmem:[%s765_s24] ss:$0 sm:$0xff]  ;;  %s787_s20 = scalar_lea.vmem %s2449_s11, %s2479_s22  ;;  %s784_s24 = scalar_lea.vmem %s2448_s10, %s2279_s28 }
  0x19   : > { %s798_s16 = scalar_lea.vmem %s2452_s14, %s2479_s22  ;;  %s801_s30 = scalar_lea.vmem %s2453_s15, %s2479_s22 }
  0x1a   : > { %882 = vmatpush.bf16.msra.mxu1 %v2009_v15  ;;  %s2466_s17 = sld [smem:[#allocation8_spill]] }
  0x1b   : > { %1952 = vmatmul.msk.bf16.vlgmr.msra.gmra.mxu0 %vm834_vm0, %v813_v3 }
  0x1d   : > { %1961 = vmatmul.msk.bf16.vlgmr.msra.gmra.mxu1 %vm834_vm0, %v851_v17 }
  0x20   : > { %s809_s18 = scalar_lea.vmem %s2466_s17, %s2286_s19 }
  0x98   : > { %v847_v5 = vpop.f32.mrf.mxu0 }
  0x99   : > { %v848_v6 = vadd.f32 %v2088_v4, %v847_v5 }
  0x9a   : > { %v884_v33 = vpop.f32.mrf.mxu1 }
  0x9b   : > { %888 = vxpose.xlu0.b32.start.end [1/1] (short) (narrow) %v848_v6, 32  ;;  %v885_v34 = vadd.f32 %v2089_v32, %v884_v33 }
  0xa0   : > { %v849_v7 = vpop.f32.mrf.mxu0 }
  0xa2   : > { %v886_v35 = vpop.f32.mrf.mxu1 }
 0x13f   : > { %v904_v8 = vpop.trf.xlu0 }
 0x147   : > { %v905_v9 = vpop.trf.xlu0 }
 0x148   : > { %v2060_v10 = vpack.i.bf16 %v905_v9, %v904_v8 }
 0x14a   : > { %2061 = vxpose.xlu0.b32.start.end [1/1] (short) (narrow) %v2060_v10, 8 }
 0x14f   : > { %v906_v11 = vpop.trf.xlu0 }
 0x152   : > { %1052 = vxpose.xlu0.b32.start.end [1/1] (short) (narrow) %v885_v34, 32 }
 0x157   : > { %v907_v12 = vpop.trf.xlu0 }
 0x158   : > { %v2067_v13 = vpack.i.bf16 %v907_v12, %v906_v11 }
 0x15a   : > { %2068 = vxpose.xlu1.b32.start.end [1/1] (short) (narrow) %v2067_v13, 8 }
 0x1ee   : > { %v2062_v18 = vpop.trf.xlu0 }
 0x1ef   : > { %v2063_v19 = vunpack.i.l.bf16 %v2062_v18  ;;  %v2066_v20 = vunpack.i.h.bf16 %v2062_v18 }
 0x1f1   : > { %v1048_v21 = vpack.c.bf16 %v2063_v19, %v2063_v19  ;;  %v1049_v22 = vpack.c.bf16 %v2066_v20, %v2066_v20 }
 0x1f3   : > { %v1224_v23 = vsel %vm1222_vm1, %v1048_v21, 0  ;;  %v1240_v24 = vsel %vm1222_vm1, %v1049_v22, 0 }
 0x1f4   : > { %1233 = vmatpush.bf16.xpose.msra.mxu2 %v1224_v23  ;;  %1249 = vmatpush.bf16.xpose.msra.mxu3 %v1240_v24 }
 0x1f6   : > { %v1068_v18 = vpop.trf.xlu0 }
 0x1fb   : > { %1962 = vmatmul.msk.bf16.vlgmr.msra.gmra.mxu2 %vm1222_vm1, %v1048_v21  ;;  %1963 = vmatmul.msk.bf16.vlgmr.msra.gmra.mxu3 %vm1222_vm1, %v1049_v22 }
 0x1fe   : > { %v2069_v25 = vpop.trf.xlu1  ;;  %v1069_v19 = vpop.trf.xlu0 }
 0x1ff   : > { %v2070_v26 = vunpack.i.l.bf16 %v2069_v25  ;;  %v2073_v27 = vunpack.i.h.bf16 %v2069_v25  ;;  %v2074_v21 = vpack.i.bf16 %v1069_v19, %v1068_v18 }
 0x201   : > { %v1050_v28 = vpack.c.bf16 %v2070_v26, %v2070_v26  ;;  %v1051_v29 = vpack.c.bf16 %v2073_v27, %v2073_v27 }
 0x203   : > { %v1256_v30 = vsel %vm1222_vm1, %v1050_v28, 0  ;;  %v1272_v31 = vsel %vm1222_vm1, %v1051_v29, 0 }
 0x204   : > { %1265 = vmatpush.bf16.xpose.msrb.mxu0 %v1256_v30  ;;  %1281 = vmatpush.bf16.xpose.msrb.mxu1 %v1272_v31 }
 0x206   : > { %v1070_v20 = vpop.trf.xlu0 }
 0x20b   : > { %1964 = vmatmul.msk.bf16.vlgmr.msrb.gmra.mxu0 %vm1222_vm1, %v1050_v28  ;;  %1965 = vmatmul.msk.bf16.vlgmr.msrb.gmra.mxu1 %vm1222_vm1, %v1051_v29 }
 0x20e   : > { %v1071_v22 = vpop.trf.xlu0 }
 0x20f   : > { %v2081_v23 = vpack.i.bf16 %v1071_v22, %v1070_v20 }
 0x27e   : > { %v1235_v39 = vpop.f32.mrf.mxu2  ;;  %v1251_v40 = vpop.f32.mrf.mxu3 }
 0x27f   : > { %v1287_v43 = vmul.f32 0.35355338, %v1235_v39  ;;  %v1288_v44 = vmul.f32 0.35355338, %v1251_v40 }
 0x281   : > { %v1292_v45 = vadd.f32 %v1288_v44, %v1221_v42  ;;  %v1291_v46 = vadd.f32 %v1287_v43, %v1221_v42 }
 0x283   : > { %v1298_v47 = vsel %vm1222_vm1, %v1292_v45, -inf  ;;  %v1295_v48 = vsel %vm1222_vm1, %v1291_v46, -inf }
 0x284   : > { %1299 = vmax.xlane.f32.xlu2 %v1298_v47  ;;  %1296 = vmax.xlane.f32.xlu1 %v1295_v48 }
 0x286   : > { %v1237_v49 = vpop.f32.mrf.mxu2  ;;  %v1253_v50 = vpop.f32.mrf.mxu3 }
 0x288   : > { %v1267_v51 = vpop.f32.mrf.mxu0  ;;  %v1283_v52 = vpop.f32.mrf.mxu1 }
 0x289   : > { %v1289_v53 = vmul.f32 0.35355338, %v1267_v51  ;;  %v1290_v55 = vmul.f32 0.35355338, %v1283_v52 }
 0x28b   : > { %v1293_v54 = vadd.f32 %v1289_v53, %v1221_v42  ;;  %v1294_v59 = vadd.f32 %v1290_v55, %v1221_v42  ;;  %v1425_v55 = vld [vmem:[%s770_s21 + $0x4] sm:$0xf] }
 0x28d   : > { %v1301_v56 = vsel %vm1222_vm1, %v1293_v54, -inf  ;;  %v1304_v60 = vsel %vm1222_vm1, %v1294_v59, -inf }
 0x28e   : > { %1302 = vmax.xlane.f32.xlu2 %v1301_v56 }
 0x290   : > { %v1269_v57 = vpop.f32.mrf.mxu0  ;;  %v1285_v58 = vpop.f32.mrf.mxu1 }
 0x291   : > { %v1451_v57 = vsel %vm1346_vm3, %v1425_v55, 0  ;;  %v1426_v58 = vld [vmem:[%s770_s21 + $0x8] sm:$0xf] }
 0x296   : > { %1305 = vmax.xlane.f32.xlu2 %v1304_v60  ;;  %v1470_v60 = vsel %vm1346_vm3, %v1426_v58, 0 }
 0x2f7   : > { %v1297_v61 = vpop.xlane.xlu1 %1296  ;;  %v1300_v62 = vpop.xlane.xlu2 %1299 }
 0x2f8   : > { %v1307_v63 = vsub.f32 %v1291_v46, %v1297_v61  ;;  %v1308_v1 = vsub.f32 %v1292_v45, %v1300_v62 }
 0x2fa   : > { %v1311_v0 = vmul.f32 1.442695, %v1307_v63  ;;  %v1313_v3 = vmul.f32 1.442695, %v1308_v1 }
 0x2fc   : > { %2097 = vpow2.f32 %v1311_v0 }
 0x2fd   : > { %2099 = vpow2.f32 %v1313_v3 }
 0x301   : > { %v1303_v4 = vpop.xlane.xlu2 %1302 }
 0x302   : > { %v2098_v5 = vpop.eup %2097  ;;  %v1309_v6 = vsub.f32 %v1293_v54, %v1303_v4  ;;  %v1424_v54 = vld [vmem:[%s770_s21] sm:$0xf] }
 0x303   : > { %v1319_v7 = vsel %vm1222_vm1, %v2098_v5, 0.0  ;;  %v2100_v9 = vpop.eup %2099  ;;  %v1432_v56 = vsel %vm1346_vm3, %v1424_v54, 0 }
 0x304   : > { %1320 = vadd.xlane.f32.xlu2 %v1319_v7  ;;  %v1315_v8 = vmul.f32 1.442695, %v1309_v6  ;;  %v1322_v13 = vsel %vm1222_vm1, %v2100_v9, 0.0 }
 0x306   : > { %2101 = vpow2.f32 %v1315_v8 }
 0x309   : > { %v1306_v10 = vpop.xlane.xlu2 %1305 }
 0x30a   : > { %v1310_v11 = vsub.f32 %v1294_v59, %v1306_v10  ;;  %v1427_v59 = vld [vmem:[%s770_s21 + $0xc] sm:$0xf] }
 0x30b   : > { %v1489_v61 = vsel %vm1346_vm3, %v1427_v59, 0  ;;  %v2093_v59 = vld [vmem:[%s787_s20] ss:$0 sm:$0xff] }
 0x30c   : > { %v1317_v12 = vmul.f32 1.442695, %v1310_v11  ;;  %1323 = vadd.xlane.f32.xlu2 %v1322_v13  ;;  %v2102_v14 = vpop.eup %2101  ;;  %v2090_v13 = vld [vmem:[%s773_s25] ss:$0 sm:$0xff]  ;;  %s2006_s25 = sshll.u32 %s2479_s22, 5 }
 0x30d   : > { %v1325_v16 = vsel %vm1222_vm1, %v2102_v14, 0.0  ;;  %s792_s29 = scalar_lea.vmem %s2450_s12, %s2006_s25 }
 0x30e   : > { %2103 = vpow2.f32 %v1317_v12  ;;  %v2013_v58 = vld [vmem:[%s792_s29] sm:$0xff] }
 0x314   : > { %v2104_v15 = vpop.eup %2103  ;;  %1326 = vadd.xlane.f32.xlu2 %v1325_v16 }
 0x315   : > { %v1328_v17 = vsel %vm1222_vm1, %v2104_v15, 0.0 }
 0x316   : > { %1329 = vadd.xlane.f32.xlu0 %v1328_v17 }
 0x33d   : > { %2075 = vxpose.xlu2.b32.start.end [1/1] (short) (narrow) %v2074_v21, 8 }
 0x345   : > { %2082 = vxpose.xlu2.b32.start.end [1/1] (short) (narrow) %v2081_v23, 8 }
 0x377   : > { %v1321_v24 = vpop.xlane.xlu2 %1320 }
 0x378   : > { %2105 = vrcp.f32 %v1321_v24 }
 0x37e   : > { %v2106_v27 = vpop.eup %2105 }
 0x37f   : > { %v1324_v25 = vpop.xlane.xlu2 %1323  ;;  %v1335_v33 = vmul.f32 %v2106_v27, %v2098_v5 }
 0x380   : > { %2107 = vrcp.f32 %v1324_v25 }
 0x381   : > { %v1339_v40 = vpack.c.bf16 %v1335_v33, %v1335_v33 }
 0x386   : > { %v2108_v29 = vpop.eup %2107 }
 0x387   : > { %v1327_v26 = vpop.xlane.xlu2 %1326  ;;  %v1336_v34 = vmul.f32 %v2108_v29, %v2100_v9 }
 0x388   : > { %2109 = vrcp.f32 %v1327_v26  ;;  %v2160_v26 = vmov 32.0  }
 0x389   : > { %v1330_v28 = vpop.xlane.xlu0 %1329  ;;  %v1340_v41 = vpack.c.bf16 %v1336_v34, %v1336_v34 }
 0x38a   : > { %2111 = vrcp.f32 %v1330_v28 }
 0x38b   : > { %2113 = vrcp.f32 %v2160_v26 }
 0x38e   : > { %v2110_v39 = vpop.eup %2109 }
 0x38f   : > { %v1337_v46 = vmul.f32 %v2110_v39, %v2102_v14  ;;  %v2016_v39 = vld [vmem:[%s792_s29 + $0x18] sm:$0xff] }
 0x390   : > { %v2112_v42 = vpop.eup %2111 }
 0x391   : > { %v1338_v47 = vmul.f32 %v2112_v42, %v2104_v15  ;;  %v1341_v52 = vpack.c.bf16 %v1337_v46, %v1337_v46  ;;  %v2114_v27 = vpop.eup %2113  ;;  %v2015_v42 = vld [vmem:[%s792_s29 + $0x10] sm:$0xff] }
 0x392   : > { %v1517_v28 = vmul.f32 32.0, %v2114_v27  ;;  %vm1521_vm4 = vweird.f32 %v2114_v27 }
 0x393   : > { %v1342_v53 = vpack.c.bf16 %v1338_v47, %v1338_v47 }
 0x394   : > { %v1518_v29 = vsub.f32 1.0, %v1517_v28 }
 0x3d6   : > { %v2076_v30 = vpop.trf.xlu2 }
 0x3d7   : > { %v2077_v31 = vunpack.i.l.bf16 %v2076_v30  ;;  %v2080_v32 = vunpack.i.h.bf16 %v2076_v30  ;;  %v1519_v30 = vmul.f32 %v2114_v27, %v1518_v29 }
 0x3d9   : > { %v1212_v35 = vpack.c.bf16 %v2077_v31, %v2077_v31  ;;  %v1213_v36 = vpack.c.bf16 %v2080_v32, %v2080_v32  ;;  %v1520_v31 = vadd.f32 %v2114_v27, %v1519_v30 }
 0x3db   : > { %v1348_v37 = vsel %vm1346_vm3, %v1212_v35, 0  ;;  %v1367_v38 = vsel %vm1346_vm3, %v1213_v36, 0  ;;  %v2369_v32 = vsel %vm1521_vm4, %v2114_v27, %v1520_v31 }
 0x3dc   : > { %1357 = vmatpush.bf16.msrb.mxu2 %v1348_v37  ;;  %1376 = vmatpush.bf16.msrb.mxu3 %v1367_v38  ;;  %v2012_v37 = vld [vmem:[%s784_s24 + $0x8] sm:$0xff]  ;;  %v2011_v38 = vld [vmem:[%s784_s24] sm:$0xff]  ;;  %s795_s24 = scalar_lea.vmem %s2451_s13, %s2479_s22 }
 0x3de   : > { %v2083_v43 = vpop.trf.xlu2 }
 0x3df   : > { %v2087_v44 = vunpack.i.h.bf16 %v2083_v43  ;;  %v2084_v45 = vunpack.i.l.bf16 %v2083_v43  ;;  %1966 = vmatmul.msk.bf16.vlgmr.msrb.gmra.mxu2 %vm1222_vm1, %v1339_v40  ;;  %1967 = vmatmul.msk.bf16.vlgmr.msrb.gmra.mxu3 %vm1222_vm1, %v1340_v41 }
 0x3e0   : > { %1441 = vmatpush.bf16.msra.mxu2 %v1432_v56  ;;  %1460 = vmatpush.bf16.msra.mxu3 %v1451_v57  ;;  %v2014_v57 = vld [vmem:[%s792_s29 + $0x8] sm:$0xff] }
 0x3e1   : > { %v1214_v48 = vpack.c.bf16 %v2084_v45, %v2084_v45  ;;  %v1215_v49 = vpack.c.bf16 %v2087_v44, %v2087_v44 }
 0x3e3   : > { %v1386_v50 = vsel %vm1346_vm3, %v1214_v48, 0  ;;  %v1405_v51 = vsel %vm1346_vm3, %v1215_v49, 0 }
 0x3e4   : > { %1395 = vmatpush.bf16.msra.mxu0 %v1386_v50  ;;  %1414 = vmatpush.bf16.msra.mxu1 %v1405_v51  ;;  %v2091_v50 = vld [vmem:[%s776_s27] ss:$0 sm:$0xff] }
 0x3e5   : > { %1582 = vmatpush.bf16.msrb.mxu2 %v2012_v37  ;;  %1635 = vmatpush.bf16.msrb.mxu3 %v2016_v39 }
 0x3e7   : > { %1968 = vmatmul.msk.bf16.vlgmr.msra.gmra.mxu0 %vm1222_vm1, %v1341_v52  ;;  %1969 = vmatmul.msk.bf16.vlgmr.msra.gmra.mxu1 %vm1222_vm1, %v1342_v53  ;;  %v2092_v52 = vld [vmem:[%s779_s0] ss:$0 sm:$0xff] }
 0x3e8   : > { %1479 = vmatpush.bf16.msrb.mxu0 %v1470_v60  ;;  %1498 = vmatpush.bf16.msrb.mxu1 %v1489_v61 }
 0x3e9   : > { %1583 = vmatpush.bf16.msrb.mxu2 %v2011_v38  ;;  %1636 = vmatpush.bf16.msrb.mxu3 %v2015_v42 }
 0x3ed   : > { %1637 = vmatpush.bf16.msrb.mxu3 %v2014_v57 }
 0x3f1   : > { %1638 = vmatpush.bf16.msrb.mxu3 %v2013_v58 }
 0x462   : > { %v1359_v62 = vpop.f32.mrf.mxu2  ;;  %v1378_v63 = vpop.f32.mrf.mxu3 }
 0x463   : > { %v1420_v0 = vpack.c.bf16 %v1359_v62, %v1359_v62  ;;  %v1421_v1 = vpack.c.bf16 %v1378_v63, %v1378_v63 }
 0x464   : > { %v1397_v3 = vpop.f32.mrf.mxu0  ;;  %v1416_v4 = vpop.f32.mrf.mxu1 }
 0x465   : > { %v1422_v5 = vpack.c.bf16 %v1397_v3, %v1397_v3  ;;  %v1423_v6 = vpack.c.bf16 %v1416_v4, %v1416_v4  ;;  %1970 = vmatmul.msk.bf16.vlgmr.msra.gmra.mxu2 %vm1222_vm1, %v1420_v0  ;;  %1971 = vmatmul.msk.bf16.vlgmr.msra.gmra.mxu3 %vm1222_vm1, %v1421_v1  ;;  %v2094_v1 = vld [vmem:[%s795_s24] ss:$0 sm:$0xff] }
 0x467   : > { %1972 = vmatmul.msk.bf16.vlgmr.msrb.gmra.mxu0 %vm1222_vm1, %v1422_v5  ;;  %1973 = vmatmul.msk.bf16.vlgmr.msrb.gmra.mxu1 %vm1222_vm1, %v1423_v6 }
 0x46a   : > { %v1361_v7 = vpop.f32.mrf.mxu2  ;;  %v1380_v8 = vpop.f32.mrf.mxu3 }
 0x46c   : > { %v1399_v9 = vpop.f32.mrf.mxu0  ;;  %v1418_v10 = vpop.f32.mrf.mxu1 }
 0x4e4   : > { %v1481_v11 = vpop.f32.mrf.mxu0  ;;  %v1500_v12 = vpop.f32.mrf.mxu1 }
 0x4e8   : > { %v1443_v14 = vpop.f32.mrf.mxu2  ;;  %v1462_v15 = vpop.f32.mrf.mxu3 }
 0x4e9   : > { %v1508_v16 = vadd.f32 %v2090_v13, %v1443_v14 }
 0x4eb   : > { %v1509_v17 = vadd.f32 %v1508_v16, %v1462_v15 }
 0x4ec   : > { %v1483_v18 = vpop.f32.mrf.mxu0  ;;  %v1502_v19 = vpop.f32.mrf.mxu1 }
 0x4ed   : > { %v1510_v20 = vadd.f32 %v1509_v17, %v1481_v11 }
 0x4ef   : > { %v1511_v21 = vadd.f32 %v1510_v20, %v1500_v12 }
 0x4f0   : > { %v1445_v22 = vpop.f32.mrf.mxu2  ;;  %v1464_v23 = vpop.f32.mrf.mxu3 }
 0x4f1   : > { %v1512_v24 = vadd.f32 %v1511_v21, %v2292_v2  ;;  %v2095_v22 = vld [vmem:[%s798_s16] ss:$0 sm:$0xff] }
 0x4f3   : > { %v1513_v25 = vsel %vm834_vm0, %v1512_v24, 0.0 }
 0x4f4   : > { %1514 = vadd.xlane.f32.xlu2 %v1513_v25 }
 0x567   : > { %v1515_v33 = vpop.xlane.xlu2 %1514 }
 0x568   : > { %v1523_v34 = vmul.f32 %v2369_v32, %v1515_v33 }
 0x56a   : > { %v1524_v2 = vsub.f32 %v1512_v24, %v1523_v34  ;;  %v2096_v24 = vld [vmem:[%s801_s30] ss:$0 sm:$0xff] }
 0x56c   : > { %v1525_v35 = vmul.f32 %v1524_v2, %v1524_v2 }
 0x56e   : > { %v1526_v36 = vsel %vm834_vm0, %v1525_v35, 0.0 }
 0x56f   : > { %1527 = vadd.xlane.f32.xlu1 %v1526_v36 }
 0x5e2   : > { %v1528_v40 = vpop.xlane.xlu1 %1527 }
 0x5e3   : > { %v1529_v41 = vmul.f32 %v1528_v40, %v2369_v32 }
 0x5e5   : > { %v1530_v43 = vadd.f32 1e-05, %v1529_v41 }
 0x5e7   : > { %2115 = vrsqrt.f32 %v1530_v43  ;;  %vm1537_vm6 = vweird.f32 %v1530_v43 }
 0x5ed   : > { %v2116_v44 = vpop.eup %2115 }
 0x5ee   : > { %v1532_v45 = vmul.f32 %v2116_v44, %v1530_v43  ;;  %vm1538_vm5 = vweird.f32 %v2116_v44 }
 0x5ef   : > { %vm1539_vm7 = vmor %vm1537_vm6, %vm1538_vm5 }
 0x5f0   : > { %v1533_v46 = vmul.f32 %v2116_v44, %v1532_v45 }
 0x5f2   : > { %v1534_v47 = vmul.f32 0.5, %v1533_v46 }
 0x5f4   : > { %v1535_v48 = vsub.f32 1.5, %v1534_v47 }
 0x5f6   : > { %v1536_v49 = vmul.f32 %v2116_v44, %v1535_v48 }
 0x5f8   : > { %v1540_v51 = vsel %vm1539_vm7, %v2116_v44, %v1536_v49 }
 0x5f9   : > { %v1541_v53 = vmul.f32 %v1540_v51, %v1524_v2 }
 0x5fb   : > { %v1546_v54 = vmul.f32 %v2091_v50, %v1541_v53 }
 0x5fd   : > { %v1551_v55 = vadd.f32 %v2092_v52, %v1546_v54 }
 0x5ff   : > { %v1552_v56 = vpack.c.bf16 %v1551_v55, %v1551_v55 }
 0x601   : > { %1982 = vmatmul.msk.bf16.vlgmr.msrb.gmra.mxu2 %vm834_vm0, %v1552_v56 }
 0x684   : > { %v1585_v60 = vpop.f32.mrf.mxu2 }
 0x685   : > { %v1586_v61 = vadd.f32 %v2093_v59, %v1585_v60 }
 0x687   : > { %v1589_v62 = vmax.f32 %v1586_v61, 0.0 }
 0x689   : > { %v1590_v63 = vpack.c.bf16 %v1589_v62, %v1589_v62 }
 0x68b   : > { %1999 = vmatmul.msk.bf16.vlgmr.msrb.gmra.mxu3 %vm1627_vm8, %v1590_v63 }
 0x68c   : > { %v1587_v0 = vpop.f32.mrf.mxu2 }
 0x70e   : > { %v1640_v3 = vpop.f32.mrf.mxu3 }
 0x70f   : > { %v1641_v4 = vadd.f32 %v2094_v1, %v1640_v3 }
 0x711   : > { %v1644_v5 = vadd.f32 %v1641_v4, %v1551_v55 }
 0x713   : > { %v1645_v6 = vsel %vm834_vm0, %v1644_v5, 0.0 }
 0x714   : > { %1646 = vadd.xlane.f32.xlu1 %v1645_v6 }
 0x716   : > { %v1642_v7 = vpop.f32.mrf.mxu3 }
 0x787   : > { %v1647_v8 = vpop.xlane.xlu1 %1646 }
 0x788   : > { %v1648_v9 = vmul.f32 %v1647_v8, %v2369_v32 }
 0x78a   : > { %v1649_v10 = vsub.f32 %v1644_v5, %v1648_v9 }
 0x78c   : > { %v1650_v11 = vmul.f32 %v1649_v10, %v1649_v10 }
 0x78e   : > { %v1651_v12 = vsel %vm834_vm0, %v1650_v11, 0.0 }
 0x78f   : > { %1652 = vadd.xlane.f32.xlu1 %v1651_v12 }
 0x802   : > { %v1653_v13 = vpop.xlane.xlu1 %1652 }
 0x803   : > { %v1654_v14 = vmul.f32 %v1653_v13, %v2369_v32 }
 0x805   : > { %v1655_v15 = vadd.f32 1e-05, %v1654_v14 }
 0x807   : > { %2117 = vrsqrt.f32 %v1655_v15  ;;  %vm1662_vm10 = vweird.f32 %v1655_v15 }
 0x80d   : > { %v2118_v16 = vpop.eup %2117 }
 0x80e   : > { %v1657_v17 = vmul.f32 %v2118_v16, %v1655_v15  ;;  %vm1663_vm9 = vweird.f32 %v2118_v16 }
 0x80f   : > { %vm1664_vm11 = vmor %vm1662_vm10, %vm1663_vm9 }
 0x810   : > { %v1658_v18 = vmul.f32 %v2118_v16, %v1657_v17 }
 0x812   : > { %v1659_v19 = vmul.f32 0.5, %v1658_v18 }
 0x814   : > { %v1660_v20 = vsub.f32 1.5, %v1659_v19 }
 0x816   : > { %v1661_v21 = vmul.f32 %v2118_v16, %v1660_v20 }
 0x818   : > { %v1665_v23 = vsel %vm1664_vm11, %v2118_v16, %v1661_v21 }
 0x819   : > { %v1666_v25 = vmul.f32 %v1665_v23, %v1649_v10 }
 0x81b   : > { %v1671_v26 = vmul.f32 %v2095_v22, %v1666_v25 }
 0x81d   : > { %v1676_v27 = vadd.f32 %v2096_v24, %v1671_v26 }
 0x81f   : > { %1677 = vst.msk [vmem:[%s809_s18] sm:$0xff] %vm834_vm0, %v1676_v27 }
 0x820 PF: > { %s2467_s21 = sld [smem:[#allocation4_spill]] }
 0x821   : > { %s2469_s22 = sld [smem:[#allocation3_spill]] }
 0x822   : > { %s2470_s23 = sld [smem:[#allocation5_spill]] }
 0x823   : > { %s2471_s24 = sld [smem:[#allocation6_spill]] }
 0x826   : > { %s26_s25 = sadd.s32 1, %s2467_s21   ;;  %s2468_s21 = sld [smem:[#allocation2_spill]] }
 0x827   : > { %p23_p7 = scmp.ge.s32.totalorder %s26_s25, 6  }
 0x829   :  { %25 = sbr.rel (!%p23_p7) target bundleno = 4 (0x4), region = 159 }

</bundles_post_ra>
